<compile_context>
chip_gen: v5e
topology: v5e:2x2
jax: 0.10.0
libtpu: 0.0.40
codegen_flags: <defaults>
</compile_context>

<pallas_src>
import jax
import jax.numpy as jnp
from jax.experimental import pallas as pl
from jax.experimental.pallas import tpu as pltpu

HALO = 2     # vertical halo rows: conv_w (3x1) and conv_3x3 each need +-1 row
LANE = 128   # lane width / channel padding granularity


def _round_up(v, m):
    return (v + m - 1) // m * m


def _make_sepconv_kernel(TH, W, nh, Cip, Cp):
    R = TH + 2 * HALO       # rows in the halo'd working slab
    R2 = R - 2              # rows remaining after conv_w (3x1)

    def kernel(xp_ref, xc_ref, xn_ref, w1_ref, b1_ref, wd_ref, ww_ref,
               w3_ref, b3_ref, y_ref, sum_ref, ssq_ref, pad_ref):
        h = pl.program_id(1)
        # 0/1 multipliers: slab rows hanging over the top/bottom image edge -> 0
        top = jnp.where(h > 0, 1.0, 0.0)
        bot = jnp.where(h < nh - 1, 1.0, 0.0)

        def pw(a, w):
            # channel contraction on the MXU: bf16 operands, f32 accumulation
            return jnp.dot(a.astype(jnp.bfloat16), w,
                           preferred_element_type=jnp.float32)

        def zero_rows(v, n_top, n_bot):
            # zero the first n_top / last n_bot image rows of a flat (rows*W, C)
            # slab (pieces are multiples of 8 sublanes -> aligned concatenate)
            nr = v.shape[0]
            return jnp.concatenate(
                [v[:n_top * W] * top,
                 v[n_top * W:nr - n_bot * W],
                 v[nr - n_bot * W:] * bot], axis=0)

        # zero ONLY the two halo columns of the W-padded staging slab (interior
        # is always fully overwritten) -> horizontal zero padding for the convs
        zcol = jnp.zeros((R, 1, Cp), jnp.float32)
        pad_ref[:, 0:1, :] = zcol
        pad_ref[:, W + 1:W + 2, :] = zcol

        def hshifts(v, rows):
            # store the flat (rows*W, C) slab into the W-padded buffer and read
            # back the +-1 column shifted views (halo columns are zero)
            pad_ref[0:rows, 1:W + 1, :] = v.reshape(rows, W, Cp)
            left = pad_ref[0:rows, 0:W, :].reshape(rows * W, Cp)        # v[w-1]
            right = pad_ref[0:rows, 2:W + 2, :].reshape(rows * W, Cp)   # v[w+1]
            return left, right

        # ---- assemble halo'd input slab: image rows [h*TH-2, (h+1)*TH+2) ----
        x_top = xp_ref[0, TH - HALO:TH, :, :].reshape(HALO * W, Cip)
        x_mid = xc_ref[0, :, :, :].reshape(TH * W, Cip)
        x_bot = xn_ref[0, 0:HALO, :, :].reshape(HALO * W, Cip)
        x = jnp.concatenate([x_top, x_mid, x_bot], axis=0)              # (R*W, Cip)

        # ---- ReLU + conv_1x1 (+bias) ----
        y1 = pw(jnp.maximum(x, 0.0), w1_ref[...]) + b1_ref[...]
        y1 = zero_rows(y1, HALO, HALO)        # out-of-image halo rows -> 0

        # ---- conv_d: kernel (1,3), padding (0,1), no bias ----
        l1, r1 = hshifts(y1, R)
        y2 = pw(l1, wd_ref[0]) + pw(y1, wd_ref[1]) + pw(r1, wd_ref[2])

        # ---- conv_w: kernel (3,1), padding (1,0), no bias (rows shrink by 2) ----
        y3 = (pw(y2[0:R2 * W], ww_ref[0])
              + pw(y2[W:(R2 + 1) * W], ww_ref[1])
              + pw(y2[2 * W:(R2 + 2) * W], ww_ref[2]))
        y3 = zero_rows(y3, 1, 1)              # conv_w output outside the image -> 0

        # ---- conv_3x3: kernel 3x3, padding 1, with bias (rows shrink by 2) ----
        l3, r3 = hshifts(y3, R2)
        taps = (l3, y3, r3)                   # kw = 0,1,2  ->  columns w-1, w, w+1
        acc = jnp.zeros((TH * W, Cp), jnp.float32)
        for kh in range(3):
            for kw in range(3):
                acc = acc + pw(taps[kw][kh * W:(kh + TH) * W], w3_ref[kh, kw])
        y4 = acc + b3_ref[...]

        # ---- outputs: pre-BN activation + per-tile BN partial statistics ----
        y_ref[...] = y4.reshape(1, TH, W, Cp)
        sum_ref[...] = jnp.sum(y4, axis=0, keepdims=True).reshape(1, 1, 1, Cp)
        ssq_ref[...] = jnp.sum(y4 * y4, axis=0, keepdims=True).reshape(1, 1, 1, Cp)

    return kernel


def _bn_apply_kernel(y_ref, sc_ref, sh_ref, o_ref):
    c = sc_ref.shape[-1]
    o_ref[...] = (y_ref[...] * sc_ref[...].reshape(1, 1, 1, c)
                  + sh_ref[...].reshape(1, 1, 1, c))


@jax.jit
def seperable_conv2d(x_nchw, params):
    w1, b1, wd, ww, w3, b3, gamma, beta = params
    N, Cin, H, W = x_nchw.shape
    Cout = w1.shape[1]
    assert W % 8 == 0, "W is kept on the sublane axis; pad W to a multiple of 8"
    TH = 8 if H % 8 == 0 else H           # output rows per grid step
    assert H % TH == 0 and TH >= HALO
    nh = H // TH

    Cip = _round_up(Cin, LANE)            # lane-dense input channels
    Cp = _round_up(Cout, LANE)            # lane-dense output channels
    f32, bf16 = jnp.float32, jnp.bfloat16

    # NCHW -> NHWC + channel pad: layout glue only (a real NHWC / >=128-channel
    # network would not need these transposes around the kernel).
    x = jnp.transpose(x_nchw, (0, 2, 3, 1)).astype(f32)
    x = jnp.pad(x, ((0, 0), (0, 0), (0, 0), (0, Cip - Cin)))

    dco = Cp - Cout
    w1p = jnp.pad(w1, ((0, Cip - Cin), (0, dco))).astype(bf16)
    b1p = jnp.pad(b1, ((0, 0), (0, dco))).astype(f32)
    wdp = jnp.pad(wd, ((0, 0), (0, dco), (0, dco))).astype(bf16)
    wwp = jnp.pad(ww, ((0, 0), (0, dco), (0, dco))).astype(bf16)
    w3p = jnp.pad(w3, ((0, 0), (0, 0), (0, dco), (0, dco))).astype(bf16)
    b3p = jnp.pad(b3, ((0, 0), (0, dco))).astype(f32)

    kernel = _make_sepconv_kernel(TH, W, nh, Cip, Cp)
    R = TH + 2 * HALO

    flops = 2 * N * H * W * Cp * (Cip + 15 * Cp)
    bytes_accessed = 4 * (x.size + 2 * N * H * W * Cp) + 2 * (
        w1p.size + wdp.size + wwp.size + w3p.size)
    cparams = pltpu.CompilerParams(
        dimension_semantics=("parallel", "parallel"),   # batch x row-tile (megacore)
        vmem_limit_bytes=32 * 1024 * 1024)

    y, s1, s2 = pl.pallas_call(
        kernel,
        grid=(N, nh),
        in_specs=[
            # input passed 3x (previous / current / next row tile, clamped) to
            # give the kernel a 2-row vertical halo without overlapping blocks.
            pl.BlockSpec((1, TH, W, Cip), lambda n, h: (n, jnp.maximum(h - 1, 0), 0, 0)),
            pl.BlockSpec((1, TH, W, Cip), lambda n, h: (n, h, 0, 0)),
            pl.BlockSpec((1, TH, W, Cip), lambda n, h: (n, jnp.minimum(h + 1, nh - 1), 0, 0)),
            pl.BlockSpec((Cip, Cp), lambda n, h: (0, 0)),
            pl.BlockSpec((1, Cp), lambda n, h: (0, 0)),
            pl.BlockSpec((3, Cp, Cp), lambda n, h: (0, 0, 0)),
            pl.BlockSpec((3, Cp, Cp), lambda n, h: (0, 0, 0)),
            pl.BlockSpec((3, 3, Cp, Cp), lambda n, h: (0, 0, 0, 0)),
            pl.BlockSpec((1, Cp), lambda n, h: (0, 0)),
        ],
        out_specs=[
            pl.BlockSpec((1, TH, W, Cp), lambda n, h: (n, h, 0, 0)),
            pl.BlockSpec((1, 1, 1, Cp), lambda n, h: (n, h, 0, 0)),
            pl.BlockSpec((1, 1, 1, Cp), lambda n, h: (n, h, 0, 0)),
        ],
        out_shape=[
            jax.ShapeDtypeStruct((N, H, W, Cp), f32),    # pre-BN activation
            jax.ShapeDtypeStruct((N, nh, 1, Cp), f32),   # per-tile channel sum
            jax.ShapeDtypeStruct((N, nh, 1, Cp), f32),   # per-tile channel sum-of-squares
        ],
        scratch_shapes=[pltpu.VMEM((R, W + 2, Cp), f32)],   # W-padded staging slab
        compiler_params=cparams,
        cost_estimate=pl.CostEstimate(flops=int(flops), transcendentals=0,
                                      bytes_accessed=int(bytes_accessed)),
    )(x, x, x, w1p, b1p, wdp, wwp, w3p, b3p)

    # ---- BatchNorm2d(eps=1e-3), training-mode batch statistics ----
    # tiny O(C) reduction of the per-tile partial sums (XLA), then a second
    # lane-dense Pallas pass applies the affine normalization.
    cnt = jnp.float32(N * H * W)
    mean = jnp.sum(s1, axis=(0, 1, 2)) / cnt
    var = jnp.maximum(jnp.sum(s2, axis=(0, 1, 2)) / cnt - mean * mean, 0.0)
    inv = jax.lax.rsqrt(var + 0.001)
    gpad = jnp.pad(gamma.reshape(-1), (0, dco)).astype(f32)
    bpad = jnp.pad(beta.reshape(-1), (0, dco)).astype(f32)
    scale = (gpad * inv).reshape(1, Cp)
    shift = (bpad - mean * gpad * inv).reshape(1, Cp)

    out = pl.pallas_call(
        _bn_apply_kernel,
        grid=(N, nh),
        in_specs=[
            pl.BlockSpec((1, TH, W, Cp), lambda n, h: (n, h, 0, 0)),
            pl.BlockSpec((1, Cp), lambda n, h: (0, 0)),
            pl.BlockSpec((1, Cp), lambda n, h: (0, 0)),
        ],
        out_specs=pl.BlockSpec((1, TH, W, Cp), lambda n, h: (n, h, 0, 0)),
        out_shape=jax.ShapeDtypeStruct((N, H, W, Cp), f32),
        compiler_params=cparams,
    )(y, scale, shift)

    # drop channel padding, back to the PyTorch NCHW convention (glue only)
    return jnp.transpose(out[..., :Cout], (0, 3, 1, 2))


def reference(x_nchw, params, mxu_dtype=jnp.float32):
    """Pure-JAX reference. mxu_dtype=bf16 mirrors the kernel's MXU operand policy."""
    w1, b1, wd, ww, w3, b3, gamma, beta = params
    C = w1.shape[1]
    dn = ('NHWC', 'HWIO', 'NHWC')
    f32 = jnp.float32

    def conv(y, w, pad):
        return jax.lax.conv_general_dilated(
            y.astype(mxu_dtype), w.astype(mxu_dtype), (1, 1), pad,
            dimension_numbers=dn, preferred_element_type=f32)

    x = jnp.transpose(x_nchw, (0, 2, 3, 1)).astype(f32)
    y = jnp.maximum(x, 0.0)
    y = conv(y, w1.reshape(1, 1, *w1.shape), ((0, 0), (0, 0))) + b1.reshape(1, 1, 1, C)
    y = conv(y, wd[None], ((0, 0), (1, 1)))         # (1,3)
    y = conv(y, ww[:, None], ((1, 1), (0, 0)))      # (3,1)
    y = conv(y, w3, ((1, 1), (1, 1))) + b3.reshape(1, 1, 1, C)
    mean = jnp.mean(y, axis=(0, 1, 2), keepdims=True)
    var = jnp.mean((y - mean) ** 2, axis=(0, 1, 2), keepdims=True)
    y = (y - mean) * jax.lax.rsqrt(var + 0.001)
    y = y * gamma.reshape(1, 1, 1, C) + beta.reshape(1, 1, 1, C)
    return jnp.transpose(y, (0, 3, 1, 2))


if __name__ == "__main__":
    Cin, Cout, N, H, W = 4, 8, 2, 16, 16
    key = jax.random.PRNGKey(0)
    ks = jax.random.split(key, 9)
    # Deterministic synthetic parameters (shapes implied by nn.Conv2d / BatchNorm2d).
    w1 = 0.30 * jax.random.normal(ks[0], (Cin, Cout), jnp.float32)         # conv_1x1.weight -> (Cin,Cout)
    b1 = 0.10 * jax.random.normal(ks[1], (1, Cout), jnp.float32)           # conv_1x1.bias
    wd = 0.20 * jax.random.normal(ks[2], (3, Cout, Cout), jnp.float32)     # conv_d.weight   -> (kw,Ci,Co)
    ww = 0.20 * jax.random.normal(ks[3], (3, Cout, Cout), jnp.float32)     # conv_w.weight   -> (kh,Ci,Co)
    w3 = 0.15 * jax.random.normal(ks[4], (3, 3, Cout, Cout), jnp.float32)  # conv_3x3.weight -> (kh,kw,Ci,Co)
    b3 = 0.10 * jax.random.normal(ks[5], (1, Cout), jnp.float32)           # conv_3x3.bias
    gamma = 1.0 + 0.1 * jax.random.normal(ks[6], (1, Cout), jnp.float32)   # bn.weight
    beta = 0.1 * jax.random.normal(ks[7], (1, Cout), jnp.float32)          # bn.bias
    params = (w1, b1, wd, ww, w3, b3, gamma, beta)

    x = jax.random.normal(ks[8], (N, Cin, H, W), jnp.float32)              # NCHW input

    out = jax.block_until_ready(seperable_conv2d(x, params))
    ref_bf = jax.block_until_ready(reference(x, params, jnp.bfloat16))
    ref_f32 = jax.block_until_ready(reference(x, params, jnp.float32))

    assert out.shape == (N, Cout, H, W), out.shape
    err_bf = float(jnp.max(jnp.abs(out - ref_bf)))
    err_f32 = float(jnp.max(jnp.abs(out - ref_f32)))
    # tight check vs a reference using the same bf16 MXU-operand policy as the kernel
    assert jnp.allclose(out, ref_bf, atol=1e-2, rtol=1e-2), err_bf
    # loose sanity check vs pure-f32 module semantics (slack = bf16 operand rounding)
    assert jnp.allclose(out, ref_f32, atol=2e-1, rtol=1e-1), err_f32
    print("KERNEL_OK")
</pallas_src>

<mosaic_0001>
module attributes {stable_mosaic.version = 11 : i64} {
  func.func @kernel(%arg0: i32, %arg1: i32, %arg2: memref<1x8x16x128xf32, #tpu.memory_space<vmem>>, %arg3: memref<1x8x16x128xf32, #tpu.memory_space<vmem>>, %arg4: memref<1x8x16x128xf32, #tpu.memory_space<vmem>>, %arg5: memref<128x128xbf16, #tpu.memory_space<vmem>>, %arg6: memref<1x128xf32, #tpu.memory_space<vmem>>, %arg7: memref<3x128x128xbf16, #tpu.memory_space<vmem>>, %arg8: memref<3x128x128xbf16, #tpu.memory_space<vmem>>, %arg9: memref<3x3x128x128xbf16, #tpu.memory_space<vmem>>, %arg10: memref<1x128xf32, #tpu.memory_space<vmem>>, %arg11: memref<1x8x16x128xf32, #tpu.memory_space<vmem>>, %arg12: memref<1x1x1x128xf32, #tpu.memory_space<vmem>>, %arg13: memref<1x1x1x128xf32, #tpu.memory_space<vmem>>, %arg14: memref<12x18x128xf32, #tpu.memory_space<vmem>>) attributes {dimension_semantics = [#tpu.dimension_semantics<parallel>, #tpu.dimension_semantics<parallel>], iteration_bounds = array<i64: 2, 2>, scalar_prefetch = 0 : i64, scratch_operands = 1 : i64, tpu.core_type = #tpu.core_type<tc>, window_params = [{transform_indices = @transform_0, window_bounds = array<i64: 1, 8, 16, 128>}, {transform_indices = @transform_1, window_bounds = array<i64: 1, 8, 16, 128>}, {transform_indices = @transform_2, window_bounds = array<i64: 1, 8, 16, 128>}, {pipeline_mode = #tpu.pipeline_mode<synchronous>, transform_indices = @transform_3, window_bounds = array<i64: 128, 128>}, {pipeline_mode = #tpu.pipeline_mode<synchronous>, transform_indices = @transform_4, window_bounds = array<i64: 1, 128>}, {pipeline_mode = #tpu.pipeline_mode<synchronous>, transform_indices = @transform_5, window_bounds = array<i64: 3, 128, 128>}, {pipeline_mode = #tpu.pipeline_mode<synchronous>, transform_indices = @transform_6, window_bounds = array<i64: 3, 128, 128>}, {pipeline_mode = #tpu.pipeline_mode<synchronous>, transform_indices = @transform_7, window_bounds = array<i64: 3, 3, 128, 128>}, {pipeline_mode = #tpu.pipeline_mode<synchronous>, transform_indices = @transform_8, window_bounds = array<i64: 1, 128>}, {transform_indices = @transform_9, window_bounds = array<i64: 1, 8, 16, 128>}, {transform_indices = @transform_10, window_bounds = array<i64: 1, 1, 1, 128>}, {transform_indices = @transform_11, window_bounds = array<i64: 1, 1, 1, 128>}]} {
    %c0_i32 = arith.constant 0 : i32
    %0 = arith.cmpi sgt, %arg1, %c0_i32 : i32
    %cst = arith.constant 1.000000e+00 : f32
    %cst_0 = arith.constant 0.000000e+00 : f32
    %1 = arith.select %0, %cst, %cst_0 : f32
    %c1_i32 = arith.constant 1 : i32
    %2 = arith.cmpi slt, %arg1, %c1_i32 : i32
    %cst_1 = arith.constant 1.000000e+00 : f32
    %cst_2 = arith.constant 0.000000e+00 : f32
    %3 = arith.select %2, %cst_1, %cst_2 : f32
    %cst_3 = arith.constant 0.000000e+00 : f32
    %4 = vector.broadcast %cst_3 : f32 to vector<12x1x128xf32>
    %c0 = arith.constant 0 : index
    %c0_4 = arith.constant 0 : index
    %c0_5 = arith.constant 0 : index
    %5 = vector.load %arg14[%c0, %c0_4, %c0_5] : memref<12x18x128xf32, #tpu.memory_space<vmem>>, vector<12x1x128xf32>
    tpu.vector_store %arg14[%c0, %c0_4, %c0_5], %4 {strides = array<i32>} : memref<12x18x128xf32, #tpu.memory_space<vmem>>, vector<12x1x128xf32>,
    %c0_6 = arith.constant 0 : index
    %c17 = arith.constant 17 : index
    %c0_7 = arith.constant 0 : index
    %6 = vector.load %arg14[%c0_6, %c17, %c0_7] : memref<12x18x128xf32, #tpu.memory_space<vmem>>, vector<12x1x128xf32>
    tpu.vector_store %arg14[%c0_6, %c17, %c0_7], %4 {strides = array<i32>} : memref<12x18x128xf32, #tpu.memory_space<vmem>>, vector<12x1x128xf32>,
    %c0_8 = arith.constant 0 : index
    %c6 = arith.constant 6 : index
    %c0_9 = arith.constant 0 : index
    %c0_10 = arith.constant 0 : index
    %7 = vector.load %arg2[%c0_8, %c6, %c0_9, %c0_10] : memref<1x8x16x128xf32, #tpu.memory_space<vmem>>, vector<1x2x16x128xf32>
    %8 = vector.shape_cast %7 : vector<1x2x16x128xf32> to vector<2x16x128xf32>
    %9 = vector.shape_cast %8 : vector<2x16x128xf32> to vector<32x128xf32>
    %c0_11 = arith.constant 0 : index
    %c0_12 = arith.constant 0 : index
    %c0_13 = arith.constant 0 : index
    %c0_14 = arith.constant 0 : index
    %10 = vector.load %arg3[%c0_11, %c0_12, %c0_13, %c0_14] : memref<1x8x16x128xf32, #tpu.memory_space<vmem>>, vector<1x8x16x128xf32>
    %11 = vector.shape_cast %10 : vector<1x8x16x128xf32> to vector<8x16x128xf32>
    %12 = vector.shape_cast %11 : vector<8x16x128xf32> to vector<128x128xf32>
    %c0_15 = arith.constant 0 : index
    %c0_16 = arith.constant 0 : index
    %c0_17 = arith.constant 0 : index
    %c0_18 = arith.constant 0 : index
    %13 = vector.load %arg4[%c0_15, %c0_16, %c0_17, %c0_18] : memref<1x8x16x128xf32, #tpu.memory_space<vmem>>, vector<1x2x16x128xf32>
    %14 = vector.shape_cast %13 : vector<1x2x16x128xf32> to vector<2x16x128xf32>
    %15 = vector.shape_cast %14 : vector<2x16x128xf32> to vector<32x128xf32>
    %16 = tpu.concatenate %9, %12, %15 in 0 : vector<32x128xf32>, vector<128x128xf32>, vector<32x128xf32> -> vector<192x128xf32>
    %cst_19 = arith.constant 0.000000e+00 : f32
    %17 = vector.broadcast %cst_19 : f32 to vector<192x128xf32>
    %18 = arith.maximumf %16, %17 : vector<192x128xf32>
    %c0_20 = arith.constant 0 : index
    %c0_21 = arith.constant 0 : index
    %19 = vector.load %arg5[%c0_20, %c0_21] : memref<128x128xbf16, #tpu.memory_space<vmem>>, vector<128x128xbf16>
    %20 = arith.truncf %18 : vector<192x128xf32> to vector<192x128xbf16>
    %cst_22 = arith.constant dense<0.000000e+00> : vector<192x128xf32>
    %21 = tpu.matmul %20, %19, %cst_22 {dimension_numbers = #tpu.dot_dimension_numbers<[1], [0], [0], [1], [0, 0, 1, 1], [], []>} : vector<192x128xbf16>, vector<128x128xbf16>, vector<192x128xf32> -> vector<192x128xf32>
    %c0_23 = arith.constant 0 : index
    %c0_24 = arith.constant 0 : index
    %22 = vector.load %arg6[%c0_23, %c0_24] : memref<1x128xf32, #tpu.memory_space<vmem>>, vector<1x128xf32>
    %23 = vector.broadcast %22 : vector<1x128xf32> to vector<192x128xf32>
    %24 = arith.addf %21, %23 : vector<192x128xf32>
    %25 = vector.extract_strided_slice %24 {offsets = [0, 0], sizes = [32, 128], strides = [1, 1]} : vector<192x128xf32> to vector<32x128xf32>
    %26 = vector.broadcast %1 : f32 to vector<32x128xf32>
    %27 = arith.mulf %25, %26 : vector<32x128xf32>
    %28 = vector.extract_strided_slice %24 {offsets = [32, 0], sizes = [128, 128], strides = [1, 1]} : vector<192x128xf32> to vector<128x128xf32>
    %29 = vector.extract_strided_slice %24 {offsets = [160, 0], sizes = [32, 128], strides = [1, 1]} : vector<192x128xf32> to vector<32x128xf32>
    %30 = vector.broadcast %3 : f32 to vector<32x128xf32>
    %31 = arith.mulf %29, %30 : vector<32x128xf32>
    %32 = tpu.concatenate %27, %28, %31 in 0 : vector<32x128xf32>, vector<128x128xf32>, vector<32x128xf32> -> vector<192x128xf32>
    %33 = vector.shape_cast %32 : vector<192x128xf32> to vector<12x16x128xf32>
    %c0_25 = arith.constant 0 : index
    %c1 = arith.constant 1 : index
    %c0_26 = arith.constant 0 : index
    %34 = vector.load %arg14[%c0_25, %c1, %c0_26] : memref<12x18x128xf32, #tpu.memory_space<vmem>>, vector<12x16x128xf32>
    tpu.vector_store %arg14[%c0_25, %c1, %c0_26], %33 {strides = array<i32>} : memref<12x18x128xf32, #tpu.memory_space<vmem>>, vector<12x16x128xf32>,
    %c0_27 = arith.constant 0 : index
    %c0_28 = arith.constant 0 : index
    %c0_29 = arith.constant 0 : index
    %35 = vector.load %arg14[%c0_27, %c0_28, %c0_29] : memref<12x18x128xf32, #tpu.memory_space<vmem>>, vector<12x16x128xf32>
    %36 = vector.shape_cast %35 : vector<12x16x128xf32> to vector<192x128xf32>
    %c0_30 = arith.constant 0 : index
    %c2 = arith.constant 2 : index
    %c0_31 = arith.constant 0 : index
    %37 = vector.load %arg14[%c0_30, %c2, %c0_31] : memref<12x18x128xf32, #tpu.memory_space<vmem>>, vector<12x16x128xf32>
    %38 = vector.shape_cast %37 : vector<12x16x128xf32> to vector<192x128xf32>
    %c0_32 = arith.constant 0 : index
    %c0_33 = arith.constant 0 : index
    %c0_34 = arith.constant 0 : index
    %39 = vector.load %arg7[%c0_32, %c0_33, %c0_34] : memref<3x128x128xbf16, #tpu.memory_space<vmem>>, vector<1x128x128xbf16>
    %40 = vector.shape_cast %39 : vector<1x128x128xbf16> to vector<128x128xbf16>
    %41 = arith.truncf %36 : vector<192x128xf32> to vector<192x128xbf16>
    %cst_35 = arith.constant dense<0.000000e+00> : vector<192x128xf32>
    %42 = tpu.matmul %41, %40, %cst_35 {dimension_numbers = #tpu.dot_dimension_numbers<[1], [0], [0], [1], [0, 0, 1, 1], [], []>} : vector<192x128xbf16>, vector<128x128xbf16>, vector<192x128xf32> -> vector<192x128xf32>
    %c1_36 = arith.constant 1 : index
    %c0_37 = arith.constant 0 : index
    %c0_38 = arith.constant 0 : index
    %43 = vector.load %arg7[%c1_36, %c0_37, %c0_38] : memref<3x128x128xbf16, #tpu.memory_space<vmem>>, vector<1x128x128xbf16>
    %44 = vector.shape_cast %43 : vector<1x128x128xbf16> to vector<128x128xbf16>
    %45 = arith.truncf %32 : vector<192x128xf32> to vector<192x128xbf16>
    %cst_39 = arith.constant dense<0.000000e+00> : vector<192x128xf32>
    %46 = tpu.matmul %45, %44, %cst_39 {dimension_numbers = #tpu.dot_dimension_numbers<[1], [0], [0], [1], [0, 0, 1, 1], [], []>} : vector<192x128xbf16>, vector<128x128xbf16>, vector<192x128xf32> -> vector<192x128xf32>
    %47 = arith.addf %42, %46 : vector<192x128xf32>
    %c2_40 = arith.constant 2 : index
    %c0_41 = arith.constant 0 : index
    %c0_42 = arith.constant 0 : index
    %48 = vector.load %arg7[%c2_40, %c0_41, %c0_42] : memref<3x128x128xbf16, #tpu.memory_space<vmem>>, vector<1x128x128xbf16>
    %49 = vector.shape_cast %48 : vector<1x128x128xbf16> to vector<128x128xbf16>
    %50 = arith.truncf %38 : vector<192x128xf32> to vector<192x128xbf16>
    %cst_43 = arith.constant dense<0.000000e+00> : vector<192x128xf32>
    %51 = tpu.matmul %50, %49, %cst_43 {dimension_numbers = #tpu.dot_dimension_numbers<[1], [0], [0], [1], [0, 0, 1, 1], [], []>} : vector<192x128xbf16>, vector<128x128xbf16>, vector<192x128xf32> -> vector<192x128xf32>
    %52 = arith.addf %47, %51 : vector<192x128xf32>
    %53 = vector.extract_strided_slice %52 {offsets = [0, 0], sizes = [160, 128], strides = [1, 1]} : vector<192x128xf32> to vector<160x128xf32>
    %c0_44 = arith.constant 0 : index
    %c0_45 = arith.constant 0 : index
    %c0_46 = arith.constant 0 : index
    %54 = vector.load %arg8[%c0_44, %c0_45, %c0_46] : memref<3x128x128xbf16, #tpu.memory_space<vmem>>, vector<1x128x128xbf16>
    %55 = vector.shape_cast %54 : vector<1x128x128xbf16> to vector<128x128xbf16>
    %56 = arith.truncf %53 : vector<160x128xf32> to vector<160x128xbf16>
    %cst_47 = arith.constant dense<0.000000e+00> : vector<160x128xf32>
    %57 = tpu.matmul %56, %55, %cst_47 {dimension_numbers = #tpu.dot_dimension_numbers<[1], [0], [0], [1], [0, 0, 1, 1], [], []>} : vector<160x128xbf16>, vector<128x128xbf16>, vector<160x128xf32> -> vector<160x128xf32>
    %58 = vector.extract_strided_slice %52 {offsets = [16, 0], sizes = [160, 128], strides = [1, 1]} : vector<192x128xf32> to vector<160x128xf32>
    %c1_48 = arith.constant 1 : index
    %c0_49 = arith.constant 0 : index
    %c0_50 = arith.constant 0 : index
    %59 = vector.load %arg8[%c1_48, %c0_49, %c0_50] : memref<3x128x128xbf16, #tpu.memory_space<vmem>>, vector<1x128x128xbf16>
    %60 = vector.shape_cast %59 : vector<1x128x128xbf16> to vector<128x128xbf16>
    %61 = arith.truncf %58 : vector<160x128xf32> to vector<160x128xbf16>
    %cst_51 = arith.constant dense<0.000000e+00> : vector<160x128xf32>
    %62 = tpu.matmul %61, %60, %cst_51 {dimension_numbers = #tpu.dot_dimension_numbers<[1], [0], [0], [1], [0, 0, 1, 1], [], []>} : vector<160x128xbf16>, vector<128x128xbf16>, vector<160x128xf32> -> vector<160x128xf32>
    %63 = arith.addf %57, %62 : vector<160x128xf32>
    %64 = vector.extract_strided_slice %52 {offsets = [32, 0], sizes = [160, 128], strides = [1, 1]} : vector<192x128xf32> to vector<160x128xf32>
    %c2_52 = arith.constant 2 : index
    %c0_53 = arith.constant 0 : index
    %c0_54 = arith.constant 0 : index
    %65 = vector.load %arg8[%c2_52, %c0_53, %c0_54] : memref<3x128x128xbf16, #tpu.memory_space<vmem>>, vector<1x128x128xbf16>
    %66 = vector.shape_cast %65 : vector<1x128x128xbf16> to vector<128x128xbf16>
    %67 = arith.truncf %64 : vector<160x128xf32> to vector<160x128xbf16>
    %cst_55 = arith.constant dense<0.000000e+00> : vector<160x128xf32>
    %68 = tpu.matmul %67, %66, %cst_55 {dimension_numbers = #tpu.dot_dimension_numbers<[1], [0], [0], [1], [0, 0, 1, 1], [], []>} : vector<160x128xbf16>, vector<128x128xbf16>, vector<160x128xf32> -> vector<160x128xf32>
    %69 = arith.addf %63, %68 : vector<160x128xf32>
    %70 = vector.extract_strided_slice %69 {offsets = [0, 0], sizes = [16, 128], strides = [1, 1]} : vector<160x128xf32> to vector<16x128xf32>
    %71 = vector.broadcast %1 : f32 to vector<16x128xf32>
    %72 = arith.mulf %70, %71 : vector<16x128xf32>
    %73 = vector.extract_strided_slice %69 {offsets = [16, 0], sizes = [128, 128], strides = [1, 1]} : vector<160x128xf32> to vector<128x128xf32>
    %74 = vector.extract_strided_slice %69 {offsets = [144, 0], sizes = [16, 128], strides = [1, 1]} : vector<160x128xf32> to vector<16x128xf32>
    %75 = vector.broadcast %3 : f32 to vector<16x128xf32>
    %76 = arith.mulf %74, %75 : vector<16x128xf32>
    %77 = tpu.concatenate %72, %73, %76 in 0 : vector<16x128xf32>, vector<128x128xf32>, vector<16x128xf32> -> vector<160x128xf32>
    %78 = vector.shape_cast %77 : vector<160x128xf32> to vector<10x16x128xf32>
    %c0_56 = arith.constant 0 : index
    %c1_57 = arith.constant 1 : index
    %c0_58 = arith.constant 0 : index
    %79 = vector.load %arg14[%c0_56, %c1_57, %c0_58] : memref<12x18x128xf32, #tpu.memory_space<vmem>>, vector<10x16x128xf32>
    tpu.vector_store %arg14[%c0_56, %c1_57, %c0_58], %78 {strides = array<i32>} : memref<12x18x128xf32, #tpu.memory_space<vmem>>, vector<10x16x128xf32>,
    %c0_59 = arith.constant 0 : index
    %c0_60 = arith.constant 0 : index
    %c0_61 = arith.constant 0 : index
    %80 = vector.load %arg14[%c0_59, %c0_60, %c0_61] : memref<12x18x128xf32, #tpu.memory_space<vmem>>, vector<10x16x128xf32>
    %81 = vector.shape_cast %80 : vector<10x16x128xf32> to vector<160x128xf32>
    %c0_62 = arith.constant 0 : index
    %c2_63 = arith.constant 2 : index
    %c0_64 = arith.constant 0 : index
    %82 = vector.load %arg14[%c0_62, %c2_63, %c0_64] : memref<12x18x128xf32, #tpu.memory_space<vmem>>, vector<10x16x128xf32>
    %83 = vector.shape_cast %82 : vector<10x16x128xf32> to vector<160x128xf32>
    %cst_65 = arith.constant 0.000000e+00 : f32
    %84 = vector.broadcast %cst_65 : f32 to vector<128x128xf32>
    %85 = vector.extract_strided_slice %81 {offsets = [0, 0], sizes = [128, 128], strides = [1, 1]} : vector<160x128xf32> to vector<128x128xf32>
    %c0_66 = arith.constant 0 : index
    %c0_67 = arith.constant 0 : index
    %c0_68 = arith.constant 0 : index
    %c0_69 = arith.constant 0 : index
    %86 = vector.load %arg9[%c0_66, %c0_67, %c0_68, %c0_69] : memref<3x3x128x128xbf16, #tpu.memory_space<vmem>>, vector<1x1x128x128xbf16>
    %87 = vector.shape_cast %86 : vector<1x1x128x128xbf16> to vector<128x128xbf16>
    %88 = arith.truncf %85 : vector<128x128xf32> to vector<128x128xbf16>
    %cst_70 = arith.constant dense<0.000000e+00> : vector<128x128xf32>
    %89 = tpu.matmul %88, %87, %cst_70 {dimension_numbers = #tpu.dot_dimension_numbers<[1], [0], [0], [1], [0, 0, 1, 1], [], []>} : vector<128x128xbf16>, vector<128x128xbf16>, vector<128x128xf32> -> vector<128x128xf32>
    %90 = arith.addf %84, %89 : vector<128x128xf32>
    %91 = vector.extract_strided_slice %77 {offsets = [0, 0], sizes = [128, 128], strides = [1, 1]} : vector<160x128xf32> to vector<128x128xf32>
    %c0_71 = arith.constant 0 : index
    %c1_72 = arith.constant 1 : index
    %c0_73 = arith.constant 0 : index
    %c0_74 = arith.constant 0 : index
    %92 = vector.load %arg9[%c0_71, %c1_72, %c0_73, %c0_74] : memref<3x3x128x128xbf16, #tpu.memory_space<vmem>>, vector<1x1x128x128xbf16>
    %93 = vector.shape_cast %92 : vector<1x1x128x128xbf16> to vector<128x128xbf16>
    %94 = arith.truncf %91 : vector<128x128xf32> to vector<128x128xbf16>
    %cst_75 = arith.constant dense<0.000000e+00> : vector<128x128xf32>
    %95 = tpu.matmul %94, %93, %cst_75 {dimension_numbers = #tpu.dot_dimension_numbers<[1], [0], [0], [1], [0, 0, 1, 1], [], []>} : vector<128x128xbf16>, vector<128x128xbf16>, vector<128x128xf32> -> vector<128x128xf32>
    %96 = arith.addf %90, %95 : vector<128x128xf32>
    %97 = vector.extract_strided_slice %83 {offsets = [0, 0], sizes = [128, 128], strides = [1, 1]} : vector<160x128xf32> to vector<128x128xf32>
    %c0_76 = arith.constant 0 : index
    %c2_77 = arith.constant 2 : index
    %c0_78 = arith.constant 0 : index
    %c0_79 = arith.constant 0 : index
    %98 = vector.load %arg9[%c0_76, %c2_77, %c0_78, %c0_79] : memref<3x3x128x128xbf16, #tpu.memory_space<vmem>>, vector<1x1x128x128xbf16>
    %99 = vector.shape_cast %98 : vector<1x1x128x128xbf16> to vector<128x128xbf16>
    %100 = arith.truncf %97 : vector<128x128xf32> to vector<128x128xbf16>
    %cst_80 = arith.constant dense<0.000000e+00> : vector<128x128xf32>
    %101 = tpu.matmul %100, %99, %cst_80 {dimension_numbers = #tpu.dot_dimension_numbers<[1], [0], [0], [1], [0, 0, 1, 1], [], []>} : vector<128x128xbf16>, vector<128x128xbf16>, vector<128x128xf32> -> vector<128x128xf32>
    %102 = arith.addf %96, %101 : vector<128x128xf32>
    %103 = vector.extract_strided_slice %81 {offsets = [16, 0], sizes = [128, 128], strides = [1, 1]} : vector<160x128xf32> to vector<128x128xf32>
    %c1_81 = arith.constant 1 : index
    %c0_82 = arith.constant 0 : index
    %c0_83 = arith.constant 0 : index
    %c0_84 = arith.constant 0 : index
    %104 = vector.load %arg9[%c1_81, %c0_82, %c0_83, %c0_84] : memref<3x3x128x128xbf16, #tpu.memory_space<vmem>>, vector<1x1x128x128xbf16>
    %105 = vector.shape_cast %104 : vector<1x1x128x128xbf16> to vector<128x128xbf16>
    %106 = arith.truncf %103 : vector<128x128xf32> to vector<128x128xbf16>
    %cst_85 = arith.constant dense<0.000000e+00> : vector<128x128xf32>
    %107 = tpu.matmul %106, %105, %cst_85 {dimension_numbers = #tpu.dot_dimension_numbers<[1], [0], [0], [1], [0, 0, 1, 1], [], []>} : vector<128x128xbf16>, vector<128x128xbf16>, vector<128x128xf32> -> vector<128x128xf32>
    %108 = arith.addf %102, %107 : vector<128x128xf32>
    %109 = vector.extract_strided_slice %77 {offsets = [16, 0], sizes = [128, 128], strides = [1, 1]} : vector<160x128xf32> to vector<128x128xf32>
    %c1_86 = arith.constant 1 : index
    %c1_87 = arith.constant 1 : index
    %c0_88 = arith.constant 0 : index
    %c0_89 = arith.constant 0 : index
    %110 = vector.load %arg9[%c1_86, %c1_87, %c0_88, %c0_89] : memref<3x3x128x128xbf16, #tpu.memory_space<vmem>>, vector<1x1x128x128xbf16>
    %111 = vector.shape_cast %110 : vector<1x1x128x128xbf16> to vector<128x128xbf16>
    %112 = arith.truncf %109 : vector<128x128xf32> to vector<128x128xbf16>
    %cst_90 = arith.constant dense<0.000000e+00> : vector<128x128xf32>
    %113 = tpu.matmul %112, %111, %cst_90 {dimension_numbers = #tpu.dot_dimension_numbers<[1], [0], [0], [1], [0, 0, 1, 1], [], []>} : vector<128x128xbf16>, vector<128x128xbf16>, vector<128x128xf32> -> vector<128x128xf32>
    %114 = arith.addf %108, %113 : vector<128x128xf32>
    %115 = vector.extract_strided_slice %83 {offsets = [16, 0], sizes = [128, 128], strides = [1, 1]} : vector<160x128xf32> to vector<128x128xf32>
    %c1_91 = arith.constant 1 : index
    %c2_92 = arith.constant 2 : index
    %c0_93 = arith.constant 0 : index
    %c0_94 = arith.constant 0 : index
    %116 = vector.load %arg9[%c1_91, %c2_92, %c0_93, %c0_94] : memref<3x3x128x128xbf16, #tpu.memory_space<vmem>>, vector<1x1x128x128xbf16>
    %117 = vector.shape_cast %116 : vector<1x1x128x128xbf16> to vector<128x128xbf16>
    %118 = arith.truncf %115 : vector<128x128xf32> to vector<128x128xbf16>
    %cst_95 = arith.constant dense<0.000000e+00> : vector<128x128xf32>
    %119 = tpu.matmul %118, %117, %cst_95 {dimension_numbers = #tpu.dot_dimension_numbers<[1], [0], [0], [1], [0, 0, 1, 1], [], []>} : vector<128x128xbf16>, vector<128x128xbf16>, vector<128x128xf32> -> vector<128x128xf32>
    %120 = arith.addf %114, %119 : vector<128x128xf32>
    %121 = vector.extract_strided_slice %81 {offsets = [32, 0], sizes = [128, 128], strides = [1, 1]} : vector<160x128xf32> to vector<128x128xf32>
    %c2_96 = arith.constant 2 : index
    %c0_97 = arith.constant 0 : index
    %c0_98 = arith.constant 0 : index
    %c0_99 = arith.constant 0 : index
    %122 = vector.load %arg9[%c2_96, %c0_97, %c0_98, %c0_99] : memref<3x3x128x128xbf16, #tpu.memory_space<vmem>>, vector<1x1x128x128xbf16>
    %123 = vector.shape_cast %122 : vector<1x1x128x128xbf16> to vector<128x128xbf16>
    %124 = arith.truncf %121 : vector<128x128xf32> to vector<128x128xbf16>
    %cst_100 = arith.constant dense<0.000000e+00> : vector<128x128xf32>
    %125 = tpu.matmul %124, %123, %cst_100 {dimension_numbers = #tpu.dot_dimension_numbers<[1], [0], [0], [1], [0, 0, 1, 1], [], []>} : vector<128x128xbf16>, vector<128x128xbf16>, vector<128x128xf32> -> vector<128x128xf32>
    %126 = arith.addf %120, %125 : vector<128x128xf32>
    %127 = vector.extract_strided_slice %77 {offsets = [32, 0], sizes = [128, 128], strides = [1, 1]} : vector<160x128xf32> to vector<128x128xf32>
    %c2_101 = arith.constant 2 : index
    %c1_102 = arith.constant 1 : index
    %c0_103 = arith.constant 0 : index
    %c0_104 = arith.constant 0 : index
    %128 = vector.load %arg9[%c2_101, %c1_102, %c0_103, %c0_104] : memref<3x3x128x128xbf16, #tpu.memory_space<vmem>>, vector<1x1x128x128xbf16>
    %129 = vector.shape_cast %128 : vector<1x1x128x128xbf16> to vector<128x128xbf16>
    %130 = arith.truncf %127 : vector<128x128xf32> to vector<128x128xbf16>
    %cst_105 = arith.constant dense<0.000000e+00> : vector<128x128xf32>
    %131 = tpu.matmul %130, %129, %cst_105 {dimension_numbers = #tpu.dot_dimension_numbers<[1], [0], [0], [1], [0, 0, 1, 1], [], []>} : vector<128x128xbf16>, vector<128x128xbf16>, vector<128x128xf32> -> vector<128x128xf32>
    %132 = arith.addf %126, %131 : vector<128x128xf32>
    %133 = vector.extract_strided_slice %83 {offsets = [32, 0], sizes = [128, 128], strides = [1, 1]} : vector<160x128xf32> to vector<128x128xf32>
    %c2_106 = arith.constant 2 : index
    %c2_107 = arith.constant 2 : index
    %c0_108 = arith.constant 0 : index
    %c0_109 = arith.constant 0 : index
    %134 = vector.load %arg9[%c2_106, %c2_107, %c0_108, %c0_109] : memref<3x3x128x128xbf16, #tpu.memory_space<vmem>>, vector<1x1x128x128xbf16>
    %135 = vector.shape_cast %134 : vector<1x1x128x128xbf16> to vector<128x128xbf16>
    %136 = arith.truncf %133 : vector<128x128xf32> to vector<128x128xbf16>
    %cst_110 = arith.constant dense<0.000000e+00> : vector<128x128xf32>
    %137 = tpu.matmul %136, %135, %cst_110 {dimension_numbers = #tpu.dot_dimension_numbers<[1], [0], [0], [1], [0, 0, 1, 1], [], []>} : vector<128x128xbf16>, vector<128x128xbf16>, vector<128x128xf32> -> vector<128x128xf32>
    %138 = arith.addf %132, %137 : vector<128x128xf32>
    %c0_111 = arith.constant 0 : index
    %c0_112 = arith.constant 0 : index
    %139 = vector.load %arg10[%c0_111, %c0_112] : memref<1x128xf32, #tpu.memory_space<vmem>>, vector<1x128xf32>
    %140 = vector.broadcast %139 : vector<1x128xf32> to vector<128x128xf32>
    %141 = arith.addf %138, %140 : vector<128x128xf32>
    %142 = vector.shape_cast %141 : vector<128x128xf32> to vector<1x8x16x128xf32>
    %c0_113 = arith.constant 0 : index
    %c0_114 = arith.constant 0 : index
    %c0_115 = arith.constant 0 : index
    %c0_116 = arith.constant 0 : index
    %143 = vector.load %arg11[%c0_113, %c0_114, %c0_115, %c0_116] : memref<1x8x16x128xf32, #tpu.memory_space<vmem>>, vector<1x8x16x128xf32>
    tpu.vector_store %arg11[%c0_113, %c0_114, %c0_115, %c0_116], %142 {strides = array<i32>} : memref<1x8x16x128xf32, #tpu.memory_space<vmem>>, vector<1x8x16x128xf32>,
    %cst_117 = arith.constant dense<0.000000e+00> : vector<128xf32>
    %144 = vector.multi_reduction <add>, %141, %cst_117 [0] : vector<128x128xf32> to vector<128xf32>
    %145 = vector.shape_cast %144 : vector<128xf32> to vector<1x128xf32>
    %146 = vector.shape_cast %145 : vector<1x128xf32> to vector<1x1x1x128xf32>
    %c0_118 = arith.constant 0 : index
    %c0_119 = arith.constant 0 : index
    %c0_120 = arith.constant 0 : index
    %c0_121 = arith.constant 0 : index
    %147 = vector.load %arg12[%c0_118, %c0_119, %c0_120, %c0_121] : memref<1x1x1x128xf32, #tpu.memory_space<vmem>>, vector<1x1x1x128xf32>
    tpu.vector_store %arg12[%c0_118, %c0_119, %c0_120, %c0_121], %146 {strides = array<i32>} : memref<1x1x1x128xf32, #tpu.memory_space<vmem>>, vector<1x1x1x128xf32>,
    %148 = arith.mulf %141, %141 : vector<128x128xf32>
    %cst_122 = arith.constant dense<0.000000e+00> : vector<128xf32>
    %149 = vector.multi_reduction <add>, %148, %cst_122 [0] : vector<128x128xf32> to vector<128xf32>
    %150 = vector.shape_cast %149 : vector<128xf32> to vector<1x128xf32>
    %151 = vector.shape_cast %150 : vector<1x128xf32> to vector<1x1x1x128xf32>
    %c0_123 = arith.constant 0 : index
    %c0_124 = arith.constant 0 : index
    %c0_125 = arith.constant 0 : index
    %c0_126 = arith.constant 0 : index
    %152 = vector.load %arg13[%c0_123, %c0_124, %c0_125, %c0_126] : memref<1x1x1x128xf32, #tpu.memory_space<vmem>>, vector<1x1x1x128xf32>
    tpu.vector_store %arg13[%c0_123, %c0_124, %c0_125, %c0_126], %151 {strides = array<i32>} : memref<1x1x1x128xf32, #tpu.memory_space<vmem>>, vector<1x1x1x128xf32>,
    return
  }
  func.func @transform_0(%arg0: i32, %arg1: i32) -> (i32, i32, i32, i32) {
    %c1_i32 = arith.constant 1 : i32
    %0 = arith.subi %arg1, %c1_i32 : i32
    %c0_i32 = arith.constant 0 : i32
    %1 = arith.maxsi %0, %c0_i32 : i32
    %c0_i32_0 = arith.constant 0 : i32
    %c0_i32_1 = arith.constant 0 : i32
    %c0_i32_2 = arith.constant 0 : i32
    return %arg0, %1, %c0_i32_0, %c0_i32_1 : i32, i32, i32, i32
  }
  func.func @transform_1(%arg0: i32, %arg1: i32) -> (i32, i32, i32, i32) {
    %c0_i32 = arith.constant 0 : i32
    %c0_i32_0 = arith.constant 0 : i32
    %c0_i32_1 = arith.constant 0 : i32
    return %arg0, %arg1, %c0_i32, %c0_i32_0 : i32, i32, i32, i32
  }
  func.func @transform_2(%arg0: i32, %arg1: i32) -> (i32, i32, i32, i32) {
    %c1_i32 = arith.constant 1 : i32
    %0 = arith.addi %arg1, %c1_i32 : i32
    %c1_i32_0 = arith.constant 1 : i32
    %1 = arith.minsi %0, %c1_i32_0 : i32
    %c0_i32 = arith.constant 0 : i32
    %c0_i32_1 = arith.constant 0 : i32
    %c0_i32_2 = arith.constant 0 : i32
    return %arg0, %1, %c0_i32, %c0_i32_1 : i32, i32, i32, i32
  }
  func.func @transform_3(%arg0: i32, %arg1: i32) -> (i32, i32) {
    %c0_i32 = arith.constant 0 : i32
    %c0_i32_0 = arith.constant 0 : i32
    %c0_i32_1 = arith.constant 0 : i32
    return %c0_i32, %c0_i32_0 : i32, i32
  }
  func.func @transform_4(%arg0: i32, %arg1: i32) -> (i32, i32) {
    %c0_i32 = arith.constant 0 : i32
    %c0_i32_0 = arith.constant 0 : i32
    %c0_i32_1 = arith.constant 0 : i32
    return %c0_i32, %c0_i32_0 : i32, i32
  }
  func.func @transform_5(%arg0: i32, %arg1: i32) -> (i32, i32, i32) {
    %c0_i32 = arith.constant 0 : i32
    %c0_i32_0 = arith.constant 0 : i32
    %c0_i32_1 = arith.constant 0 : i32
    %c0_i32_2 = arith.constant 0 : i32
    return %c0_i32, %c0_i32_0, %c0_i32_1 : i32, i32, i32
  }
  func.func @transform_6(%arg0: i32, %arg1: i32) -> (i32, i32, i32) {
    %c0_i32 = arith.constant 0 : i32
    %c0_i32_0 = arith.constant 0 : i32
    %c0_i32_1 = arith.constant 0 : i32
    %c0_i32_2 = arith.constant 0 : i32
    return %c0_i32, %c0_i32_0, %c0_i32_1 : i32, i32, i32
  }
  func.func @transform_7(%arg0: i32, %arg1: i32) -> (i32, i32, i32, i32) {
    %c0_i32 = arith.constant 0 : i32
    %c0_i32_0 = arith.constant 0 : i32
    %c0_i32_1 = arith.constant 0 : i32
    %c0_i32_2 = arith.constant 0 : i32
    %c0_i32_3 = arith.constant 0 : i32
    return %c0_i32, %c0_i32_0, %c0_i32_1, %c0_i32_2 : i32, i32, i32, i32
  }
  func.func @transform_8(%arg0: i32, %arg1: i32) -> (i32, i32) {
    %c0_i32 = arith.constant 0 : i32
    %c0_i32_0 = arith.constant 0 : i32
    %c0_i32_1 = arith.constant 0 : i32
    return %c0_i32, %c0_i32_0 : i32, i32
  }
  func.func @transform_9(%arg0: i32, %arg1: i32) -> (i32, i32, i32, i32) {
    %c0_i32 = arith.constant 0 : i32
    %c0_i32_0 = arith.constant 0 : i32
    %c0_i32_1 = arith.constant 0 : i32
    return %arg0, %arg1, %c0_i32, %c0_i32_0 : i32, i32, i32, i32
  }
  func.func @transform_10(%arg0: i32, %arg1: i32) -> (i32, i32, i32, i32) {
    %c0_i32 = arith.constant 0 : i32
    %c0_i32_0 = arith.constant 0 : i32
    %c0_i32_1 = arith.constant 0 : i32
    return %arg0, %arg1, %c0_i32, %c0_i32_0 : i32, i32, i32, i32
  }
  func.func @transform_11(%arg0: i32, %arg1: i32) -> (i32, i32, i32, i32) {
    %c0_i32 = arith.constant 0 : i32
    %c0_i32_0 = arith.constant 0 : i32
    %c0_i32_1 = arith.constant 0 : i32
    return %arg0, %arg1, %c0_i32, %c0_i32_0 : i32, i32, i32, i32
  }
}

module attributes {stable_mosaic.version = 11 : i64} {
  func.func @_bn_apply_kernel(%arg0: i32, %arg1: i32, %arg2: memref<1x8x16x128xf32, #tpu.memory_space<vmem>>, %arg3: memref<1x128xf32, #tpu.memory_space<vmem>>, %arg4: memref<1x128xf32, #tpu.memory_space<vmem>>, %arg5: memref<1x8x16x128xf32, #tpu.memory_space<vmem>>) attributes {dimension_semantics = [#tpu.dimension_semantics<parallel>, #tpu.dimension_semantics<parallel>], iteration_bounds = array<i64: 2, 2>, scalar_prefetch = 0 : i64, scratch_operands = 0 : i64, tpu.core_type = #tpu.core_type<tc>, window_params = [{transform_indices = @transform_0, window_bounds = array<i64: 1, 8, 16, 128>}, {pipeline_mode = #tpu.pipeline_mode<synchronous>, transform_indices = @transform_1, window_bounds = array<i64: 1, 128>}, {pipeline_mode = #tpu.pipeline_mode<synchronous>, transform_indices = @transform_2, window_bounds = array<i64: 1, 128>}, {transform_indices = @transform_3, window_bounds = array<i64: 1, 8, 16, 128>}]} {
    %c0 = arith.constant 0 : index
    %c0_0 = arith.constant 0 : index
    %c0_1 = arith.constant 0 : index
    %c0_2 = arith.constant 0 : index
    %0 = vector.load %arg2[%c0, %c0_0, %c0_1, %c0_2] : memref<1x8x16x128xf32, #tpu.memory_space<vmem>>, vector<1x8x16x128xf32>
    %c0_3 = arith.constant 0 : index
    %c0_4 = arith.constant 0 : index
    %1 = vector.load %arg3[%c0_3, %c0_4] : memref<1x128xf32, #tpu.memory_space<vmem>>, vector<1x128xf32>
    %2 = vector.shape_cast %1 : vector<1x128xf32> to vector<1x1x1x128xf32>
    %3 = vector.broadcast %2 : vector<1x1x1x128xf32> to vector<1x8x16x128xf32>
    %4 = arith.mulf %0, %3 : vector<1x8x16x128xf32>
    %c0_5 = arith.constant 0 : index
    %c0_6 = arith.constant 0 : index
    %5 = vector.load %arg4[%c0_5, %c0_6] : memref<1x128xf32, #tpu.memory_space<vmem>>, vector<1x128xf32>
    %6 = vector.shape_cast %5 : vector<1x128xf32> to vector<1x1x1x128xf32>
    %7 = vector.broadcast %6 : vector<1x1x1x128xf32> to vector<1x8x16x128xf32>
    %8 = arith.addf %4, %7 : vector<1x8x16x128xf32>
    %c0_7 = arith.constant 0 : index
    %c0_8 = arith.constant 0 : index
    %c0_9 = arith.constant 0 : index
    %c0_10 = arith.constant 0 : index
    %9 = vector.load %arg5[%c0_7, %c0_8, %c0_9, %c0_10] : memref<1x8x16x128xf32, #tpu.memory_space<vmem>>, vector<1x8x16x128xf32>
    tpu.vector_store %arg5[%c0_7, %c0_8, %c0_9, %c0_10], %8 {strides = array<i32>} : memref<1x8x16x128xf32, #tpu.memory_space<vmem>>, vector<1x8x16x128xf32>,
    return
  }
  func.func @transform_0(%arg0: i32, %arg1: i32) -> (i32, i32, i32, i32) {
    %c0_i32 = arith.constant 0 : i32
    %c0_i32_0 = arith.constant 0 : i32
    %c0_i32_1 = arith.constant 0 : i32
    return %arg0, %arg1, %c0_i32, %c0_i32_0 : i32, i32, i32, i32
  }
  func.func @transform_1(%arg0: i32, %arg1: i32) -> (i32, i32) {
    %c0_i32 = arith.constant 0 : i32
    %c0_i32_0 = arith.constant 0 : i32
    %c0_i32_1 = arith.constant 0 : i32
    return %c0_i32, %c0_i32_0 : i32, i32
  }
  func.func @transform_2(%arg0: i32, %arg1: i32) -> (i32, i32) {
    %c0_i32 = arith.constant 0 : i32
    %c0_i32_0 = arith.constant 0 : i32
    %c0_i32_1 = arith.constant 0 : i32
    return %c0_i32, %c0_i32_0 : i32, i32
  }
  func.func @transform_3(%arg0: i32, %arg1: i32) -> (i32, i32, i32, i32) {
    %c0_i32 = arith.constant 0 : i32
    %c0_i32_0 = arith.constant 0 : i32
    %c0_i32_1 = arith.constant 0 : i32
    return %arg0, %arg1, %c0_i32, %c0_i32_0 : i32, i32, i32, i32
  }
}

</mosaic_0001>

<bundles_post_ra>
// kernel: seperable_conv2d.3
= control target key start
LH: loop header
LB: loop body
LE: loop exit
PB: predicated region body
PF: predicated region fallthrough
CT: control target
= control target key end

     0   :  { %s503_s12 = smov 0   ;;  %s505_s13 = smov 0   ;;  %s596_s0 = inlined_call_operand.vmem [shape: f32[2,16,16,128], index: 0, kind: input, shape index: {}]   ;;  %s597_s1 = inlined_call_operand.vmem [shape: f32[1,128], index: 1, kind: input, shape index: {}]   ;;  %s598_s2 = inlined_call_operand.vmem [shape: f32[1,128], index: 2, kind: input, shape index: {}]   ;;  %s599_s3 = inlined_call_operand.vmem [shape: f32[2,16,16,128], index: 3, kind: output, shape index: {}]  }
   0x1   :  { %s507_s14 = smov 0   ;;  %s509_s15 = smov 0  }
   0x2   :  { %s511_s16 = smov 0  }
   0x3 LB: > { %s22_s17 = sadd.s32 1, %s473_s14  ;;  %s25_s18 = sadd.s32 1, %s477_s15  ;;  %s481_s16 = sphi %s511_s16, %s13_s16   ;;  %s477_s15 = sphi %s509_s15, %s603_s15   ;;  %s473_s14 = sphi %s507_s14, %s602_s14   ;;  %s469_s13 = sphi %s505_s13, %s601_s13   ;;  %s465_s12 = sphi %s503_s12, %s600_s12  }
   0x4   : > { %p23_p0 = scmp.ge.s32.totalorder %s22_s17, 2  ;;  %p390_p1 = scmp.ge.s32.totalorder %s481_s16, 1 }
   0x5   : > { %p159_p2 = scmp.lt.s32.totalorder %s481_s16, 5 }
   0x6   : > { %s605_s17 = smov (%p23_p0, %s22_s17), 0  ;;  %s607_s18 = smov (!%p23_p0, %s25_s18), %s477_s15 }
   0x7   : > { %p160_p3 = pnand %p390_p1, %p159_p2  ;;  %p27_p4 = scmp.ge.s32.totalorder %s607_s18, 2 }
   0x8   : > { %s391_s19 = sshll.u32 (!%p160_p3), %s465_s12, 3  ;;  %p194_p5 = scmp.lt.s32.totalorder (!%p160_p3), %s469_s13, 1 }
   0x9   : > { %s609_s18 = smov (%p27_p4, %s607_s18), 0  ;;  %163 = sbr.rel (%p160_p3) target bundleno = 40 (0x28), region = 32 }
   0xa   : > { %p196_p6 = scmp.lt.s32.totalorder (!%p160_p3), %s391_s19, 15 }
   0xe   : > { %s611_s13 = smov (!%p194_p5, %s469_s13), 1  ;;  %s613_s19 = smov (!%p196_p6, %s391_s19), 15  ;;  %v441_v0 = vld [vmem:[%s597_s1] ss:$0 sm:$0xff] }
   0xf   : > { %s393_s20 = sshll.u32 %s611_s13, 5  ;;  %s392_s21 = sshll.u32 %s613_s19, 1  ;;  %v442_v1 = vld [vmem:[%s598_s2] ss:$0 sm:$0xff] }
  0x10   : > { %s200_s22 = sadd.s32 %s393_s20, %s392_s21 }
  0x11   : > { %s394_s25 = sshll.u32 %s200_s22, 3 }
  0x12   : > { %s539_s28 = scalar_lea.vmem %s596_s0, %s394_s25  ;;  %s553_s6 = scalar_lea.vmem %s599_s3, %s394_s25 }
  0x13   : > { %v215_v2 = vld [vmem:[%s539_s28] sm:$0xff]  ;;  %v216_v3 = vld [vmem:[%s539_s28 + $0x8] sm:$0xff]  ;;  %v217_v4 = vld [vmem:[%s539_s28 + $0x10] sm:$0xff] }
  0x14   : > { %v235_v5 = vmul.f32 %v441_v0, %v215_v2  ;;  %v236_v6 = vmul.f32 %v441_v0, %v216_v3  ;;  %v237_v7 = vmul.f32 %v441_v0, %v217_v4  ;;  %v218_v8 = vld [vmem:[%s539_s28 + $0x18] sm:$0xff]  ;;  %v219_v9 = vld [vmem:[%s539_s28 + $0x20] sm:$0xff]  ;;  %v220_v10 = vld [vmem:[%s539_s28 + $0x28] sm:$0xff] }
  0x15   : > { %v238_v11 = vmul.f32 %v441_v0, %v218_v8  ;;  %v239_v12 = vmul.f32 %v441_v0, %v219_v9  ;;  %v240_v13 = vmul.f32 %v441_v0, %v220_v10  ;;  %v221_v14 = vld [vmem:[%s539_s28 + $0x30] sm:$0xff]  ;;  %v222_v15 = vld [vmem:[%s539_s28 + $0x38] sm:$0xff]  ;;  %v223_v16 = vld [vmem:[%s539_s28 + $0x40] sm:$0xff] }
  0x16   : > { %v255_v17 = vadd.f32 %v442_v1, %v235_v5  ;;  %v256_v18 = vadd.f32 %v442_v1, %v236_v6  ;;  %v257_v19 = vadd.f32 %v442_v1, %v237_v7  ;;  %v241_v20 = vmul.f32 %v441_v0, %v221_v14  ;;  %v224_v21 = vld [vmem:[%s539_s28 + $0x48] sm:$0xff]  ;;  %v225_v24 = vld [vmem:[%s539_s28 + $0x50] sm:$0xff]  ;;  %v226_v27 = vld [vmem:[%s539_s28 + $0x58] sm:$0xff] }
  0x17   : > { %v258_v22 = vadd.f32 %v442_v1, %v238_v11  ;;  %v242_v23 = vmul.f32 %v441_v0, %v222_v15  ;;  %v259_v25 = vadd.f32 %v442_v1, %v239_v12  ;;  %v243_v26 = vmul.f32 %v441_v0, %v223_v16  ;;  %v227_v30 = vld [vmem:[%s539_s28 + $0x60] sm:$0xff]  ;;  %v228_v33 = vld [vmem:[%s539_s28 + $0x68] sm:$0xff]  ;;  %v229_v36 = vld [vmem:[%s539_s28 + $0x70] sm:$0xff] }
  0x18   : > { %271 = vst [vmem:[%s553_s6] sm:$0xff] %v255_v17  ;;  %v260_v28 = vadd.f32 %v442_v1, %v240_v13  ;;  %v244_v29 = vmul.f32 %v441_v0, %v224_v21  ;;  %v261_v31 = vadd.f32 %v442_v1, %v241_v20  ;;  %v245_v32 = vmul.f32 %v441_v0, %v225_v24  ;;  %v230_v39 = vld [vmem:[%s539_s28 + $0x78] sm:$0xff] }
  0x19   : > { %272 = vst [vmem:[%s553_s6 + $0x8] sm:$0xff] %v256_v18  ;;  %v262_v34 = vadd.f32 %v442_v1, %v242_v23  ;;  %v246_v35 = vmul.f32 %v441_v0, %v226_v27  ;;  %v263_v37 = vadd.f32 %v442_v1, %v243_v26  ;;  %v247_v38 = vmul.f32 %v441_v0, %v227_v30 }
  0x1a   : > { %273 = vst [vmem:[%s553_s6 + $0x10] sm:$0xff] %v257_v19  ;;  %v264_v40 = vadd.f32 %v442_v1, %v244_v29  ;;  %v248_v41 = vmul.f32 %v441_v0, %v228_v33  ;;  %v265_v42 = vadd.f32 %v442_v1, %v245_v32  ;;  %v249_v43 = vmul.f32 %v441_v0, %v229_v36 }
  0x1b   : > { %274 = vst [vmem:[%s553_s6 + $0x18] sm:$0xff] %v258_v22  ;;  %v266_v44 = vadd.f32 %v442_v1, %v246_v35  ;;  %v250_v45 = vmul.f32 %v441_v0, %v230_v39  ;;  %v267_v46 = vadd.f32 %v442_v1, %v247_v38 }
  0x1c   : > { %275 = vst [vmem:[%s553_s6 + $0x20] sm:$0xff] %v259_v25  ;;  %v268_v47 = vadd.f32 %v442_v1, %v248_v41  ;;  %v269_v48 = vadd.f32 %v442_v1, %v249_v43 }
  0x1d   : > { %276 = vst [vmem:[%s553_s6 + $0x28] sm:$0xff] %v260_v28  ;;  %v270_v49 = vadd.f32 %v442_v1, %v250_v45 }
  0x1e   : > { %277 = vst [vmem:[%s553_s6 + $0x30] sm:$0xff] %v261_v31 }
  0x1f   : > { %278 = vst [vmem:[%s553_s6 + $0x38] sm:$0xff] %v262_v34 }
  0x20   : > { %279 = vst [vmem:[%s553_s6 + $0x40] sm:$0xff] %v263_v37 }
  0x21   : > { %280 = vst [vmem:[%s553_s6 + $0x48] sm:$0xff] %v264_v40 }
  0x22   : > { %281 = vst [vmem:[%s553_s6 + $0x50] sm:$0xff] %v265_v42 }
  0x23   : > { %282 = vst [vmem:[%s553_s6 + $0x58] sm:$0xff] %v266_v44 }
  0x24   : > { %283 = vst [vmem:[%s553_s6 + $0x60] sm:$0xff] %v267_v46 }
  0x25   : > { %284 = vst [vmem:[%s553_s6 + $0x68] sm:$0xff] %v268_v47 }
  0x26   : > { %285 = vst [vmem:[%s553_s6 + $0x70] sm:$0xff] %v269_v48 }
  0x27   : > { %286 = vst [vmem:[%s553_s6 + $0x78] sm:$0xff] %v270_v49 }
  0x28 PF: > { %s13_s16 = sadd.s32 1, %s481_s16   ;;  %s600_s12 = smov %s473_s14 }
  0x29   : > { %p10_p7 = scmp.ge.s32.totalorder %s13_s16, 6   ;;  %s601_s13 = smov %s477_s15 }
  0x2a   : > { %s602_s14 = smov %s605_s17  ;;  %s603_s15 = smov %s609_s18 }
  0x2b   :  { %12 = sbr.rel (!%p10_p7) target bundleno = 3 (0x3), region = 62 }

// kernel: seperable_conv2d.2
= control target key start
LH: loop header
LB: loop body
LE: loop exit
PB: predicated region body
PF: predicated region fallthrough
CT: control target
= control target key end

     0   :  { %s4318_s17 = smov 0   ;;  %s4320_s18 = smov 0   ;;  %s5320_s0 = inlined_call_operand.vmem [shape: f32[2,16,16,128], index: 0, kind: input, shape index: {}, may-alias: {0,1,2}]   ;;  %s5321_s1 = inlined_call_operand.vmem [shape: f32[2,16,16,128], index: 1, kind: input, shape index: {}, may-alias: {0,1,2}]   ;;  %s5322_s2 = inlined_call_operand.vmem [shape: f32[2,16,16,128], index: 2, kind: input, shape index: {}, may-alias: {0,1,2}]   ;;  %s5323_s3 = inlined_call_operand.vmem [shape: bf16[128,128], index: 3, kind: input, shape index: {}]   ;;  %s5324_s4 = inlined_call_operand.vmem [shape: f32[1,128], index: 4, kind: input, shape index: {}]   ;;  %s5325_s5 = inlined_call_operand.vmem [shape: bf16[3,128,128], index: 5, kind: input, shape index: {}]   ;;  %s5326_s6 = inlined_call_operand.vmem [shape: bf16[3,128,128], index: 6, kind: input, shape index: {}]   ;;  %s5327_s7 = inlined_call_operand.vmem [shape: bf16[3,3,128,128], index: 7, kind: input, shape index: {}]   ;;  %s5328_s8 = inlined_call_operand.vmem [shape: f32[1,128], index: 8, kind: input, shape index: {}]   ;;  %s5329_s9 = inlined_call_operand.vmem [shape: f32[2,16,16,128], index: 9, kind: output, shape index: {0}]   ;;  %s5330_s10 = inlined_call_operand.vmem [shape: f32[2,2,1,128], index: 10, kind: output, shape index: {1}]   ;;  %s5331_s11 = inlined_call_operand.vmem [shape: f32[2,2,1,128], index: 11, kind: output, shape index: {2}]  }
   0x1   :  { %s4322_s19 = smov 0   ;;  %s4324_s20 = smov 0  }
   0x2   :  { %s4326_s21 = smov 0  }
   0x3 LB: > { %s31_s22 = sadd.s32 1, %s4247_s19  ;;  %s34_s23 = sadd.s32 1, %s4251_s20  ;;  %s4255_s21 = sphi %s4326_s21, %s22_s21   ;;  %s4251_s20 = sphi %s4324_s20, %s5409_s20   ;;  %s4247_s19 = sphi %s4322_s19, %s5408_s19   ;;  %s4243_s18 = sphi %s4320_s18, %s5407_s18   ;;  %s4239_s17 = sphi %s4318_s17, %s5406_s17  }
   0x4   : > { %p32_p0 = scmp.ge.s32.totalorder %s31_s22, 2  ;;  %p3316_p1 = scmp.ge.s32.totalorder %s4255_s21, 1 }
   0x5   : > { %p428_p2 = scmp.lt.s32.totalorder %s4255_s21, 5 }
   0x6   : > { %s5411_s22 = smov (%p32_p0, %s31_s22), 0  ;;  %s5413_s23 = smov (!%p32_p0, %s34_s23), %s4251_s20 }
   0x7   : > { %p429_p3 = pnand %p3316_p1, %p428_p2  ;;  %p36_p4 = scmp.ge.s32.totalorder %s5413_s23, 2 }
   0x9   : > { %s5415_s23 = smov (%p36_p4, %s5413_s23), 0  ;;  %432 = sbr.rel (%p429_p3) target bundleno = 1067 (0x42b), region = 56 }
   0xa   : > { %5333 = sst [smem:[#allocation3_spill]] %s5415_s23 }
   0xe   : > { %v4053_v0 = vld [vmem:[%s5323_s3 + $0x38] sm:$0xff]  ;;  %s3317_s26 = sadd.s32 4294967295, %s4239_s17  ;;  %p522_p5 = scmp.lt.s32.totalorder %s4243_s18, 1  ;;  %v4052_v1 = vld [vmem:[%s5323_s3 + $0x30] sm:$0xff]  ;;  %v4051_v2 = vld [vmem:[%s5323_s3 + $0x28] sm:$0xff]  ;;  %v4257_v57 = vmov 0.0  }
   0xf   : > { %p519_p6 = scmp.gt.s32.totalorder %s3317_s26, 0  ;;  %745 = vmatpush.bf16.msra.mxu0 %v4053_v0  ;;  %v4050_v3 = vld [vmem:[%s5323_s3 + $0x20] sm:$0xff]  ;;  %v4049_v4 = vld [vmem:[%s5323_s3 + $0x18] sm:$0xff]  ;;  %v4048_v5 = vld [vmem:[%s5323_s3 + $0x10] sm:$0xff]  ;;  %s3322_s25 = sshll.u32 %s4239_s17, 3 }
  0x10   : > { %s5419_s18 = smov (!%p522_p5, %s4243_s18), 1  ;;  %v4047_v6 = vld [vmem:[%s5323_s3 + $0x8] sm:$0xff]  ;;  %v4046_v11 = vld [vmem:[%s5323_s3] sm:$0xff]  ;;  %p538_p8 = scmp.lt.s32.totalorder %s3322_s25, 15  ;;  %v4069_v33 = vld [vmem:[%s5325_s5 + $0x78] sm:$0xff] }
  0x11   : > { %s5417_s26 = smov (!%p519_p6, %s3317_s26), 0  ;;  %s4366_s16 = sshll.u32 %s5419_s18, 5  ;;  %1001 = vmatpush.bf16.msra.mxu1 %v4069_v33  ;;  %v4068_v39 = vld [vmem:[%s5325_s5 + $0x70] sm:$0xff]  ;;  %v4061_v40 = vld [vmem:[%s5325_s5 + $0x38] sm:$0xff]  ;;  %v4067_v42 = vld [vmem:[%s5325_s5 + $0x68] sm:$0xff] }
  0x12   : > { %s3318_s29 = sshll.u32 %s5417_s26, 3  ;;  %s5423_s25 = smov (!%p538_p8, %s3322_s25), 15  ;;  %v4077_v41 = vld [vmem:[%s5325_s5 + $0xb8] sm:$0xff]  ;;  %1118 = vmatpush.bf16.msra.mxu2 %v4061_v40  ;;  %v4060_v43 = vld [vmem:[%s5325_s5 + $0x30] sm:$0xff]  ;;  %v4066_v47 = vld [vmem:[%s5325_s5 + $0x60] sm:$0xff] }
  0x13   : > { %746 = vmatpush.bf16.msra.mxu0 %v4052_v1  ;;  %p524_p7 = scmp.lt.s32.totalorder %s3318_s29, 15  ;;  %s3323_s23 = sshll.u32 %s5423_s25, 1  ;;  %1264 = vmatpush.bf16.msra.mxu3 %v4077_v41  ;;  %v4076_v44 = vld [vmem:[%s5325_s5 + $0xb0] sm:$0xff]  ;;  %v4065_v50 = vld [vmem:[%s5325_s5 + $0x58] sm:$0xff]  ;;  %v4059_v51 = vld [vmem:[%s5325_s5 + $0x28] sm:$0xff] }
  0x14   : > { %s4386_s26 = sadd.s32 %s3323_s23, %s4366_s16  ;;  %v4075_v52 = vld [vmem:[%s5325_s5 + $0xa8] sm:$0xff]  ;;  %v4064_v54 = vld [vmem:[%s5325_s5 + $0x50] sm:$0xff]  ;;  %v4058_v55 = vld [vmem:[%s5325_s5 + $0x20] sm:$0xff]  ;;  %592 = vst [vmem:[#allocation2] sm:$0x1] %v4257_v57  ;;  %p588_p9 = scmp.gt.s32.totalorder %s4239_s17, 0 }
  0x15   : > { %s5421_s29 = smov (!%p524_p7, %s3318_s29), 15  ;;  %1002 = vmatpush.bf16.msra.mxu1 %v4068_v39  ;;  %v4074_v56 = vld [vmem:[%s5325_s5 + $0xa0] sm:$0xff]  ;;  %v4063_v58 = vld [vmem:[%s5325_s5 + $0x48] sm:$0xff]  ;;  %v4057_v59 = vld [vmem:[%s5325_s5 + $0x18] sm:$0xff]  ;;  %593 = vst [vmem:[#allocation2 + $0x18] sm:$0x1] %v4257_v57 }
  0x16   : > { %s3319_s15 = sshll.u32 %s5421_s29, 1  ;;  %1119 = vmatpush.bf16.msra.mxu2 %v4060_v43  ;;  %v4073_v60 = vld [vmem:[%s5325_s5 + $0x98] sm:$0xff]  ;;  %594 = vst [vmem:[#allocation2 + $0x30] sm:$0x1] %v4257_v57  ;;  %v4062_v63 = vld [vmem:[%s5325_s5 + $0x40] sm:$0xff]  ;;  %v4056_v0 = vld [vmem:[%s5325_s5 + $0x10] sm:$0xff] }
  0x17   : > { %747 = vmatpush.bf16.msra.mxu0 %v4051_v2  ;;  %s528_s24 = sadd.s32 %s4366_s16, %s3319_s15  ;;  %1265 = vmatpush.bf16.msra.mxu3 %v4076_v44  ;;  %595 = vst [vmem:[#allocation2 + $0x48] sm:$0x1] %v4257_v57  ;;  %v4072_v1 = vld [vmem:[%s5325_s5 + $0x90] sm:$0xff]  ;;  %p576_p12 = scmp.lt.s32.totalorder %s4239_s17, 1 }
  0x18   : > { %s3321_s27 = sshll.u32 %s528_s24, 3  ;;  %596 = vst [vmem:[#allocation2 + $0x60] sm:$0x1] %v4257_v57  ;;  %s5369_s15 = sshll.u32 %s4386_s26, 3 }
  0x19   : > { %s530_s29 = scalar_lea.vmem %s5320_s0, %s3321_s27  ;;  %s5332_s27 = sshll.u32 %s4386_s26, 3  ;;  %1003 = vmatpush.bf16.msra.mxu1 %v4067_v42  ;;  %597 = vst [vmem:[#allocation2 + $0x78] sm:$0x1] %v4257_v57 }
  0x1a   : > { %v3336_v7 = vld [vmem:[%s530_s29 + $0x60] sm:$0xff]  ;;  %v3337_v8 = vld [vmem:[%s530_s29 + $0x68] sm:$0xff]  ;;  %v3338_v13 = vld [vmem:[%s530_s29 + $0x70] sm:$0xff]  ;;  %s4394_s12 = scalar_lea.vmem %s5321_s1, %s5332_s27  ;;  %1120 = vmatpush.bf16.msra.mxu2 %v4059_v51  ;;  %598 = vst [vmem:[#allocation2 + $0x90] sm:$0x1] %v4257_v57  ;;  %s546_s27 = sadd.s32 1, %s4239_s17 }
  0x1b   : > { %748 = vmatpush.bf16.msra.mxu0 %v4050_v3  ;;  %v641_v9 = vmax.f32 %v3336_v7, 0.0  ;;  %v642_v10 = vmax.f32 %v3337_v8, 0.0  ;;  %v3339_v14 = vld [vmem:[%s530_s29 + $0x78] sm:$0xff]  ;;  %v643_v15 = vmax.f32 %v3338_v13, 0.0  ;;  %v621_v18 = vld [vmem:[%s4394_s12] sm:$0xff]  ;;  %v622_v19 = vld [vmem:[%s4394_s12 + $0x8] sm:$0xff]  ;;  %1266 = vmatpush.bf16.msra.mxu3 %v4075_v52  ;;  %s5196_s23 = scalar_lea.vmem %s5329_s9, %s5369_s15 }
  0x1c   : > { %v644_v16 = vmax.f32 %v3339_v14, 0.0  ;;  %v645_v20 = vmax.f32 %v621_v18, 0.0  ;;  %v646_v21 = vmax.f32 %v622_v19, 0.0  ;;  %v623_v23 = vld [vmem:[%s4394_s12 + $0x10] sm:$0xff]  ;;  %v624_v24 = vld [vmem:[%s4394_s12 + $0x18] sm:$0xff]  ;;  %v625_v28 = vld [vmem:[%s4394_s12 + $0x20] sm:$0xff] }
  0x1d   : > { %v681_v12 = vpack.c.bf16 %v642_v10, %v641_v9  ;;  %v647_v25 = vmax.f32 %v623_v23, 0.0  ;;  %v648_v26 = vmax.f32 %v624_v24, 0.0  ;;  %v626_v29 = vld [vmem:[%s4394_s12 + $0x28] sm:$0xff]  ;;  %v649_v30 = vmax.f32 %v625_v28, 0.0  ;;  %v627_v34 = vld [vmem:[%s4394_s12 + $0x30] sm:$0xff]  ;;  %v628_v35 = vld [vmem:[%s4394_s12 + $0x38] sm:$0xff]  ;;  %1004 = vmatpush.bf16.msra.mxu1 %v4066_v47 }
  0x1e   : > { %v682_v17 = vpack.c.bf16 %v644_v16, %v643_v15  ;;  %v683_v22 = vpack.c.bf16 %v646_v21, %v645_v20  ;;  %v650_v31 = vmax.f32 %v626_v29, 0.0  ;;  %v651_v36 = vmax.f32 %v627_v34, 0.0  ;;  %v629_v45 = vld [vmem:[%s4394_s12 + $0x40] sm:$0xff]  ;;  %v630_v46 = vld [vmem:[%s4394_s12 + $0x48] sm:$0xff]  ;;  %1121 = vmatpush.bf16.msra.mxu2 %v4058_v55  ;;  %v631_v61 = vld [vmem:[%s4394_s12 + $0x50] sm:$0xff]  ;;  %p547_p10 = scmp.lt.s32.totalorder %s546_s27, 1 }
  0x1f   : > { %749 = vmatpush.bf16.msra.mxu0 %v4049_v4  ;;  %v684_v27 = vpack.c.bf16 %v648_v26, %v647_v25  ;;  %v652_v37 = vmax.f32 %v628_v35, 0.0  ;;  %v653_v48 = vmax.f32 %v629_v45, 0.0  ;;  %v654_v49 = vmax.f32 %v630_v46, 0.0  ;;  %1267 = vmatpush.bf16.msra.mxu3 %v4074_v56  ;;  %v632_v62 = vld [vmem:[%s4394_s12 + $0x58] sm:$0xff]  ;;  %599 = vst [vmem:[#allocation2 + $0xa8] sm:$0x1] %v4257_v57 }
  0x20   : > { %v685_v32 = vpack.c.bf16 %v650_v31, %v649_v30  ;;  %v655_v2 = vmax.f32 %v631_v61, 0.0  ;;  %v656_v3 = vmax.f32 %v632_v62, 0.0  ;;  %600 = vst [vmem:[#allocation2 + $0xc0] sm:$0x1] %v4257_v57  ;;  %v4055_v4 = vld [vmem:[%s5325_s5 + $0x8] sm:$0xff]  ;;  %v4054_v7 = vld [vmem:[%s5325_s5] sm:$0xff] }
  0x21   : > { %v686_v38 = vpack.c.bf16 %v652_v37, %v651_v36  ;;  %v687_v53 = vpack.c.bf16 %v654_v49, %v653_v48  ;;  %1005 = vmatpush.bf16.msra.mxu1 %v4065_v50  ;;  %601 = vst [vmem:[#allocation2 + $0xd8] sm:$0x1] %v4257_v57  ;;  %v4070_v8 = vld [vmem:[%s5325_s5 + $0x80] sm:$0xff]  ;;  %v4101_v9 = vld [vmem:[%s5326_s6 + $0xb8] sm:$0xff]  ;;  %s589_s25 = scalar_select %p588_p9, 1.0, 0.0 }
  0x22   : > { %1122 = vmatpush.bf16.msra.mxu2 %v4057_v59  ;;  %602 = vst [vmem:[#allocation2 + $0xf0] sm:$0x1] %v4257_v57  ;;  %v633_v10 = vld [vmem:[%s4394_s12 + $0x60] sm:$0xff]  ;;  %v4085_v13 = vld [vmem:[%s5326_s6 + $0x38] sm:$0xff]  ;;  %s5425_s27 = smov (!%p547_p10, %s546_s27), 1  ;;  %v635_v23 = vld [vmem:[%s4394_s12 + $0x70] sm:$0xff] }
  0x23   : > { %750 = vmatpush.bf16.msra.mxu0 %v4048_v5  ;;  %1268 = vmatpush.bf16.msra.mxu3 %v4073_v60  ;;  %v4071_v5 = vld [vmem:[%s5325_s5 + $0x88] sm:$0xff]  ;;  %603 = vst [vmem:[#allocation2 + $0x108] sm:$0x1] %v4257_v57  ;;  %v657_v14 = vmax.f32 %v633_v10, 0.0  ;;  %v4522_v16 = vld [vmem:[%s5324_s4] ss:$0 sm:$0xff]  ;;  %v4524_v19 = vstv %s589_s25 }
  0x24   : > { %604 = vst [vmem:[#allocation2 + $0x11] sm:$0x1] %v4257_v57  ;;  %s3326_s30 = sshll.u32 %s5425_s27, 3  ;;  %v636_v24 = vld [vmem:[%s4394_s12 + $0x78] sm:$0xff]  ;;  %v4100_v31 = vld [vmem:[%s5326_s6 + $0xb0] sm:$0xff]  ;;  %v4099_v60 = vld [vmem:[%s5326_s6 + $0xa8] sm:$0xff] }
  0x25   : > { %1006 = vmatpush.bf16.msra.mxu1 %v4064_v54  ;;  %605 = vst [vmem:[#allocation2 + $0x29] sm:$0x1] %v4257_v57  ;;  %p552_p11 = scmp.lt.s32.totalorder %s3326_s30, 15  ;;  %v660_v28 = vmax.f32 %v636_v24, 0.0  ;;  %v4092_v36 = vld [vmem:[%s5326_s6 + $0x70] sm:$0xff] }
  0x26   : > { %1123 = vmatpush.bf16.msra.mxu2 %v4056_v0  ;;  %606 = vst [vmem:[#allocation2 + $0x41] sm:$0x1] %v4257_v57  ;;  %v4084_v37 = vld [vmem:[%s5326_s6 + $0x30] sm:$0xff] }
  0x27   : > { %751 = vmatpush.bf16.msra.mxu0 %v4047_v6  ;;  %1269 = vmatpush.bf16.msra.mxu3 %v4072_v1  ;;  %v688_v6 = vpack.c.bf16 %v656_v3, %v655_v2  ;;  %607 = vst [vmem:[#allocation2 + $0x59] sm:$0x1] %v4257_v57  ;;  %s5427_s30 = smov (!%p552_p11, %s3326_s30), 15  ;;  %v4091_v3 = vld [vmem:[%s5326_s6 + $0x68] sm:$0xff] }
  0x28   : > { %608 = vst [vmem:[#allocation2 + $0x71] sm:$0x1] %v4257_v57  ;;  %s3327_s13 = sshll.u32 %s5427_s30, 1 }
  0x29   : > { %1007 = vmatpush.bf16.msra.mxu1 %v4063_v58  ;;  %609 = vst [vmem:[#allocation2 + $0x89] sm:$0x1] %v4257_v57  ;;  %s556_s27 = sadd.s32 %s3327_s13, %s4366_s16  ;;  %s3334_s13 = sshll.u32 %s5419_s18, 1 }
  0x2a   : > { %1124 = vmatpush.bf16.msra.mxu2 %v4055_v4  ;;  %610 = vst [vmem:[#allocation2 + $0xa1] sm:$0x1] %v4257_v57  ;;  %v4083_v4 = vld [vmem:[%s5326_s6 + $0x28] sm:$0xff] }
  0x2b   : > { %752 = vmatpush.bf16.msra.mxu0 %v4046_v11  ;;  %1270 = vmatpush.bf16.msra.mxu3 %v4071_v5  ;;  %v634_v11 = vld [vmem:[%s4394_s12 + $0x68] sm:$0xff]  ;;  %611 = vst [vmem:[#allocation2 + $0xb9] sm:$0x1] %v4257_v57  ;;  %s3329_s12 = sshll.u32 %s556_s27, 3 }
  0x2c   : > { %612 = vst [vmem:[#allocation2 + $0xd1] sm:$0x1] %v4257_v57  ;;  %v658_v15 = vmax.f32 %v634_v11, 0.0  ;;  %s4547_s30 = scalar_lea.vmem %s5322_s2, %s3329_s12 }
  0x2d   : > { %1008 = vmatpush.bf16.msra.mxu1 %v4062_v63  ;;  %613 = vst [vmem:[#allocation2 + $0xe9] sm:$0x1] %v4257_v57  ;;  %v637_v44 = vld [vmem:[%s4547_s30] sm:$0xff]  ;;  %v638_v45 = vld [vmem:[%s4547_s30 + $0x8] sm:$0xff]  ;;  %s577_s27 = scalar_select %p576_p12, %s4239_s17, 1  ;;  %v639_v62 = vld [vmem:[%s4547_s30 + $0x10] sm:$0xff] }
  0x2e   : > { %753 = vmatmul.bf16.vlgmr.msra.gmra.mxu0 %v681_v12  ;;  %1125 = vmatpush.bf16.msra.mxu2 %v4054_v7  ;;  %v4093_v12 = vld [vmem:[%s5326_s6 + $0x78] sm:$0xff]  ;;  %614 = vst [vmem:[#allocation2 + $0x101] sm:$0x1] %v4257_v57  ;;  %v661_v48 = vmax.f32 %v637_v44, 0.0  ;;  %v662_v49 = vmax.f32 %v638_v45, 0.0  ;;  %v663_v1 = vmax.f32 %v639_v62, 0.0 }
  0x2f   : > { %1271 = vmatpush.bf16.msra.mxu3 %v4070_v8  ;;  %1449 = vmatpush.bf16.msrb.mxu0 %v4093_v12  ;;  %615 = vst [vmem:[#allocation2 + $0x119] sm:$0x1] %v4257_v57  ;;  %s4559_s29 = sadd.s32 %s3334_s13, %s577_s27  ;;  %v640_v63 = vld [vmem:[%s4547_s30 + $0x18] sm:$0xff] }
  0x30   : > { %v691_v51 = vpack.c.bf16 %v662_v49, %v661_v48  ;;  %v664_v2 = vmax.f32 %v640_v63, 0.0  ;;  %v4089_v45 = vld [vmem:[%s5326_s6 + $0x58] sm:$0xff]  ;;  %s591_s13 = scalar_select %p576_p12, 1.0, 0.0 }
  0x31   : > { %1556 = vmatpush.bf16.msrb.mxu1 %v4085_v13  ;;  %s580_s28 = scalar_lea.vmem %s5330_s10, %s4559_s29  ;;  %s587_s27 = scalar_lea.vmem %s5331_s11, %s4559_s29 }
  0x32   : > { %1681 = vmatpush.bf16.msrb.mxu2 %v4101_v9 }
  0x33   : > { %1450 = vmatpush.bf16.msrb.mxu0 %v4092_v36 }
  0x35   : > { %1557 = vmatpush.bf16.msrb.mxu1 %v4084_v37 }
  0x36   : > { %1682 = vmatpush.bf16.msrb.mxu2 %v4100_v31 }
  0x37   : > { %1451 = vmatpush.bf16.msrb.mxu0 %v4091_v3 }
  0x39   : > { %1558 = vmatpush.bf16.msrb.mxu1 %v4083_v4 }
  0x3a   : > { %1683 = vmatpush.bf16.msrb.mxu2 %v4099_v60 }
  0x3e   : > { %758 = vmatmul.bf16.gmra.mxu0 %v682_v17  ;;  %v689_v17 = vpack.c.bf16 %v658_v15, %v657_v14 }
  0x4e   : > { %763 = vmatmul.bf16.gmra.mxu0 %v683_v22 }
  0x5e   : > { %768 = vmatmul.bf16.gmra.mxu0 %v684_v27  ;;  %v659_v27 = vmax.f32 %v635_v23, 0.0 }
  0x60   : > { %v690_v30 = vpack.c.bf16 %v660_v28, %v659_v27  ;;  %v4082_v27 = vld [vmem:[%s5326_s6 + $0x20] sm:$0xff] }
  0x61   : > { %1559 = vmatpush.bf16.msrb.mxu1 %v4082_v27 }
  0x6e   : > { %773 = vmatmul.bf16.gmra.mxu0 %v685_v32 }
  0x7e   : > { %778 = vmatmul.bf16.gmra.mxu0 %v686_v38 }
  0x8e   : > { %783 = vmatmul.bf16.gmra.mxu0 %v687_v53 }
  0x9e   : > { %788 = vmatmul.bf16.gmra.mxu0 %v688_v6  ;;  %v692_v6 = vpack.c.bf16 %v664_v2, %v663_v1  ;;  %v4088_v1 = vld [vmem:[%s5326_s6 + $0x50] sm:$0xff] }
  0x9f   : > { %v4080_v2 = vld [vmem:[%s5326_s6 + $0x10] sm:$0xff] }
  0xab   : > { %v754_v18 = vpop.f32.mrf.mxu0 }
  0xac   : > { %v755_v20 = vadd.f32 %v4522_v16, %v754_v18 }
  0xae   : > { %v815_v21 = vmul.f32 %v4524_v19, %v755_v20  ;;  %793 = vmatmul.bf16.gmra.mxu0 %v689_v17  ;;  %v4098_v20 = vld [vmem:[%s5326_s6 + $0xa0] sm:$0xff] }
  0xaf   : > { %1684 = vmatpush.bf16.msrb.mxu2 %v4098_v20 }
  0xb0   : > { %824 = vst [vmem:[#allocation2 + $0x1] sm:$0xff] %v815_v21 }
  0xb3   : > { %v756_v22 = vpop.f32.mrf.mxu0 }
  0xb4   : > { %v757_v25 = vadd.f32 %v4522_v16, %v756_v22 }
  0xb6   : > { %v816_v26 = vmul.f32 %v4524_v19, %v757_v25 }
  0xb7   : > { %v848_v35 = vld [vmem:[#allocation2] sm:$0xff] }
  0xb8   : > { %825 = vst [vmem:[#allocation2 + $0x9] sm:$0xff] %v816_v26  ;;  %v941_v29 = vpack.c.bf16 %v816_v26, %v815_v21  ;;  %v4090_v26 = vld [vmem:[%s5326_s6 + $0x60] sm:$0xff] }
  0xb9   : > { %1452 = vmatpush.bf16.msrb.mxu0 %v4090_v26  ;;  %v4079_v26 = vld [vmem:[%s5326_s6 + $0x8] sm:$0xff] }
  0xba   : > { %1009 = vmatmul.bf16.vlgmr.msra.gmra.mxu1 %v941_v29 }
  0xbb   : > { %v759_v32 = vpop.f32.mrf.mxu0 }
  0xbc   : > { %v760_v33 = vadd.f32 %v4522_v16, %v759_v32 }
  0xbd   : > { %1453 = vmatpush.bf16.msrb.mxu0 %v4089_v45 }
  0xbe   : > { %v817_v34 = vmul.f32 %v4524_v19, %v760_v33  ;;  %798 = vmatmul.bf16.gmra.mxu0 %v690_v30 }
  0xbf   : > { %v849_v38 = vld [vmem:[#allocation2 + $0x8] sm:$0xff] }
  0xc0   : > { %v872_v39 = vld [vmem:[#allocation2 + $0x2] sm:$0xff]  ;;  %v873_v40 = vld [vmem:[#allocation2 + $0xa] sm:$0xff]  ;;  %826 = vst [vmem:[#allocation2 + $0x19] sm:$0xff] %v817_v34  ;;  %v912_v41 = vpack.c.bf16 %v849_v38, %v848_v35 }
  0xc1   : > { %v1204_v42 = vpack.c.bf16 %v873_v40, %v872_v39  ;;  %1454 = vmatpush.bf16.msrb.mxu0 %v4088_v1 }
  0xc2   : > { %1126 = vmatmul.bf16.vlgmr.msra.gmra.mxu2 %v912_v41 }
  0xc3   : > { %1272 = vmatmul.bf16.vlgmr.msra.gmra.mxu3 %v1204_v42  ;;  %v761_v43 = vpop.f32.mrf.mxu0  ;;  %v4097_v42 = vld [vmem:[%s5326_s6 + $0x98] sm:$0xff] }
  0xc4   : > { %v762_v46 = vadd.f32 %v4522_v16, %v761_v43  ;;  %1685 = vmatpush.bf16.msrb.mxu2 %v4097_v42 }
  0xc6   : > { %v818_v47 = vmul.f32 %v4524_v19, %v762_v46  ;;  %v4081_v46 = vld [vmem:[%s5326_s6 + $0x18] sm:$0xff] }
  0xc7   : > { %v850_v54 = vld [vmem:[#allocation2 + $0x18] sm:$0xff]  ;;  %1560 = vmatpush.bf16.msrb.mxu1 %v4081_v46  ;;  %v4645_v46 = vstv %s591_s13 }
  0xc8   : > { %827 = vst [vmem:[#allocation2 + $0x21] sm:$0xff] %v818_v47  ;;  %v942_v50 = vpack.c.bf16 %v818_v47, %v817_v34 }
  0xca   : > { %1014 = vmatmul.bf16.gmra.mxu1 %v942_v50 }
  0xcb   : > { %v764_v52 = vpop.f32.mrf.mxu0  ;;  %1561 = vmatpush.bf16.msrb.mxu1 %v4080_v2 }
  0xcc   : > { %v765_v53 = vadd.f32 %v4522_v16, %v764_v52 }
  0xce   : > { %828 = vst [vmem:[#allocation2 + $0x31] sm:$0xff] %v765_v53  ;;  %803 = vmatmul.bf16.gmra.mxu0 %v691_v51 }
  0xcf   : > { %v851_v55 = vld [vmem:[#allocation2 + $0x20] sm:$0xff]  ;;  %1562 = vmatpush.bf16.msrb.mxu1 %v4079_v26 }
  0xd0   : > { %v874_v56 = vld [vmem:[#allocation2 + $0x1a] sm:$0xff]  ;;  %v875_v57 = vld [vmem:[#allocation2 + $0x22] sm:$0xff]  ;;  %v913_v58 = vpack.c.bf16 %v851_v55, %v850_v54 }
  0xd1   : > { %v1205_v59 = vpack.c.bf16 %v875_v57, %v874_v56 }
  0xd2   : > { %1131 = vmatmul.bf16.gmra.mxu2 %v913_v58 }
  0xd3   : > { %1277 = vmatmul.bf16.gmra.mxu3 %v1205_v59  ;;  %v766_v61 = vpop.f32.mrf.mxu0  ;;  %v4096_v59 = vld [vmem:[%s5326_s6 + $0x90] sm:$0xff] }
  0xd4   : > { %v767_v0 = vadd.f32 %v4522_v16, %v766_v61  ;;  %1686 = vmatpush.bf16.msrb.mxu2 %v4096_v59 }
  0xd5   : > { %v852_v12 = vld [vmem:[#allocation2 + $0x30] sm:$0xff] }
  0xd6   : > { %829 = vst [vmem:[#allocation2 + $0x39] sm:$0xff] %v767_v0  ;;  %v943_v5 = vpack.c.bf16 %v767_v0, %v765_v53 }
  0xda   : > { %1019 = vmatmul.bf16.gmra.mxu1 %v943_v5 }
  0xdb   : > { %v769_v7 = vpop.f32.mrf.mxu0 }
  0xdc   : > { %v770_v8 = vadd.f32 %v4522_v16, %v769_v7 }
  0xdd   : > { %v853_v9 = vld [vmem:[#allocation2 + $0x38] sm:$0xff] }
  0xde   : > { %v876_v10 = vld [vmem:[#allocation2 + $0x32] sm:$0xff]  ;;  %v877_v11 = vld [vmem:[#allocation2 + $0x3a] sm:$0xff]  ;;  %830 = vst [vmem:[#allocation2 + $0x49] sm:$0xff] %v770_v8  ;;  %808 = vmatmul.bf16.gmra.mxu0 %v692_v6  ;;  %v914_v13 = vpack.c.bf16 %v853_v9, %v852_v12 }
  0xdf   : > { %v1206_v14 = vpack.c.bf16 %v877_v11, %v876_v10 }
  0xe2   : > { %1136 = vmatmul.bf16.gmra.mxu2 %v914_v13 }
  0xe3   : > { %1282 = vmatmul.bf16.gmra.mxu3 %v1206_v14  ;;  %v771_v15 = vpop.f32.mrf.mxu0 }
  0xe4   : > { %v772_v17 = vadd.f32 %v4522_v16, %v771_v15 }
  0xe5   : > { %v854_v28 = vld [vmem:[#allocation2 + $0x48] sm:$0xff] }
  0xe6   : > { %831 = vst [vmem:[#allocation2 + $0x51] sm:$0xff] %v772_v17  ;;  %v944_v18 = vpack.c.bf16 %v772_v17, %v770_v8 }
  0xea   : > { %1024 = vmatmul.bf16.gmra.mxu1 %v944_v18  ;;  %v4095_v18 = vld [vmem:[%s5326_s6 + $0x88] sm:$0xff] }
  0xeb   : > { %v774_v21 = vpop.f32.mrf.mxu0  ;;  %1687 = vmatpush.bf16.msrb.mxu2 %v4095_v18 }
  0xec   : > { %v775_v22 = vadd.f32 %v4522_v16, %v774_v21 }
  0xed   : > { %v855_v23 = vld [vmem:[#allocation2 + $0x50] sm:$0xff] }
  0xee   : > { %v878_v24 = vld [vmem:[#allocation2 + $0x4a] sm:$0xff]  ;;  %v879_v25 = vld [vmem:[#allocation2 + $0x52] sm:$0xff]  ;;  %832 = vst [vmem:[#allocation2 + $0x61] sm:$0xff] %v775_v22  ;;  %v915_v29 = vpack.c.bf16 %v855_v23, %v854_v28 }
  0xef   : > { %v1207_v30 = vpack.c.bf16 %v879_v25, %v878_v24  ;;  %v4087_v25 = vld [vmem:[%s5326_s6 + $0x48] sm:$0xff] }
  0xf0   : > { %1455 = vmatpush.bf16.msrb.mxu0 %v4087_v25 }
  0xf2   : > { %1141 = vmatmul.bf16.gmra.mxu2 %v915_v29 }
  0xf3   : > { %1287 = vmatmul.bf16.gmra.mxu3 %v1207_v30  ;;  %v776_v31 = vpop.f32.mrf.mxu0 }
  0xf4   : > { %v777_v32 = vadd.f32 %v4522_v16, %v776_v31 }
  0xf5   : > { %v856_v39 = vld [vmem:[#allocation2 + $0x60] sm:$0xff] }
  0xf6   : > { %833 = vst [vmem:[#allocation2 + $0x69] sm:$0xff] %v777_v32  ;;  %v945_v33 = vpack.c.bf16 %v777_v32, %v775_v22  ;;  %v4117_v22 = vld [vmem:[%s5327_s7 + $0x78] sm:$0xff] }
  0xf7   : > { %1921 = vmatpush.bf16.msrb.mxu3 %v4117_v22 }
  0xfa   : > { %1029 = vmatmul.bf16.gmra.mxu1 %v945_v33 }
  0xfb   : > { %v779_v34 = vpop.f32.mrf.mxu0 }
  0xfc   : > { %v780_v35 = vadd.f32 %v4522_v16, %v779_v34  ;;  %v4086_v34 = vld [vmem:[%s5326_s6 + $0x40] sm:$0xff] }
  0xfd   : > { %v857_v36 = vld [vmem:[#allocation2 + $0x68] sm:$0xff]  ;;  %1456 = vmatpush.bf16.msrb.mxu0 %v4086_v34 }
  0xfe   : > { %v880_v37 = vld [vmem:[#allocation2 + $0x62] sm:$0xff]  ;;  %v881_v38 = vld [vmem:[#allocation2 + $0x6a] sm:$0xff]  ;;  %834 = vst [vmem:[#allocation2 + $0x79] sm:$0xff] %v780_v35  ;;  %v916_v40 = vpack.c.bf16 %v857_v36, %v856_v39 }
  0xff   : > { %v1208_v41 = vpack.c.bf16 %v881_v38, %v880_v37 }
 0x102   : > { %1146 = vmatmul.bf16.gmra.mxu2 %v916_v40 }
 0x103   : > { %1292 = vmatmul.bf16.gmra.mxu3 %v1208_v41  ;;  %v781_v43 = vpop.f32.mrf.mxu0 }
 0x104   : > { %v782_v44 = vadd.f32 %v4522_v16, %v781_v43  ;;  %v4094_v43 = vld [vmem:[%s5326_s6 + $0x80] sm:$0xff] }
 0x105   : > { %v858_v53 = vld [vmem:[#allocation2 + $0x78] sm:$0xff]  ;;  %1688 = vmatpush.bf16.msrb.mxu2 %v4094_v43 }
 0x106   : > { %835 = vst [vmem:[#allocation2 + $0x81] sm:$0xff] %v782_v44  ;;  %v946_v47 = vpack.c.bf16 %v782_v44, %v780_v35  ;;  %v4116_v44 = vld [vmem:[%s5327_s7 + $0x70] sm:$0xff] }
 0x107   : > { %1922 = vmatpush.bf16.msrb.mxu3 %v4116_v44 }
 0x10a   : > { %1034 = vmatmul.bf16.gmra.mxu1 %v946_v47 }
 0x10b   : > { %v784_v48 = vpop.f32.mrf.mxu0 }
 0x10c   : > { %v785_v49 = vadd.f32 %v4522_v16, %v784_v48 }
 0x10d   : > { %v859_v50 = vld [vmem:[#allocation2 + $0x80] sm:$0xff] }
 0x10e   : > { %v882_v51 = vld [vmem:[#allocation2 + $0x7a] sm:$0xff]  ;;  %v883_v52 = vld [vmem:[#allocation2 + $0x82] sm:$0xff]  ;;  %836 = vst [vmem:[#allocation2 + $0x91] sm:$0xff] %v785_v49  ;;  %v917_v54 = vpack.c.bf16 %v859_v50, %v858_v53 }
 0x10f   : > { %v1209_v55 = vpack.c.bf16 %v883_v52, %v882_v51 }
 0x112   : > { %1151 = vmatmul.bf16.gmra.mxu2 %v917_v54 }
 0x113   : > { %1297 = vmatmul.bf16.gmra.mxu3 %v1209_v55  ;;  %v786_v56 = vpop.f32.mrf.mxu0 }
 0x114   : > { %v787_v57 = vadd.f32 %v4522_v16, %v786_v56 }
 0x115   : > { %v860_v3 = vld [vmem:[#allocation2 + $0x90] sm:$0xff] }
 0x116   : > { %837 = vst [vmem:[#allocation2 + $0x99] sm:$0xff] %v787_v57  ;;  %v947_v58 = vpack.c.bf16 %v787_v57, %v785_v49 }
 0x11a   : > { %1039 = vmatmul.bf16.gmra.mxu1 %v947_v58  ;;  %v4078_v58 = vld [vmem:[%s5326_s6] sm:$0xff] }
 0x11b   : > { %v789_v60 = vpop.f32.mrf.mxu0  ;;  %1563 = vmatpush.bf16.msrb.mxu1 %v4078_v58 }
 0x11c   : > { %v790_v61 = vadd.f32 %v4522_v16, %v789_v60 }
 0x11d   : > { %v861_v62 = vld [vmem:[#allocation2 + $0x98] sm:$0xff] }
 0x11e   : > { %v884_v63 = vld [vmem:[#allocation2 + $0x92] sm:$0xff]  ;;  %v885_v0 = vld [vmem:[#allocation2 + $0x9a] sm:$0xff]  ;;  %838 = vst [vmem:[#allocation2 + $0xa9] sm:$0xff] %v790_v61  ;;  %v918_v4 = vpack.c.bf16 %v861_v62, %v860_v3 }
 0x11f   : > { %v1210_v5 = vpack.c.bf16 %v885_v0, %v884_v63 }
 0x122   : > { %1156 = vmatmul.bf16.gmra.mxu2 %v918_v4 }
 0x123   : > { %1302 = vmatmul.bf16.gmra.mxu3 %v1210_v5  ;;  %v791_v6 = vpop.f32.mrf.mxu0 }
 0x124   : > { %v792_v7 = vadd.f32 %v4522_v16, %v791_v6 }
 0x125   : > { %v862_v14 = vld [vmem:[#allocation2 + $0xa8] sm:$0xff] }
 0x126   : > { %839 = vst [vmem:[#allocation2 + $0xb1] sm:$0xff] %v792_v7  ;;  %v948_v8 = vpack.c.bf16 %v792_v7, %v790_v61 }
 0x12a   : > { %1044 = vmatmul.bf16.gmra.mxu1 %v948_v8 }
 0x12b   : > { %v794_v9 = vpop.f32.mrf.mxu0 }
 0x12c   : > { %v795_v10 = vadd.f32 %v4522_v16, %v794_v9 }
 0x12d   : > { %v863_v11 = vld [vmem:[#allocation2 + $0xb0] sm:$0xff] }
 0x12e   : > { %v886_v12 = vld [vmem:[#allocation2 + $0xaa] sm:$0xff]  ;;  %v887_v13 = vld [vmem:[#allocation2 + $0xb2] sm:$0xff]  ;;  %840 = vst [vmem:[#allocation2 + $0xc1] sm:$0xff] %v795_v10  ;;  %v919_v15 = vpack.c.bf16 %v863_v11, %v862_v14 }
 0x12f   : > { %v1211_v17 = vpack.c.bf16 %v887_v13, %v886_v12 }
 0x132   : > { %1161 = vmatmul.bf16.gmra.mxu2 %v919_v15 }
 0x133   : > { %1307 = vmatmul.bf16.gmra.mxu3 %v1211_v17  ;;  %v796_v20 = vpop.f32.mrf.mxu0 }
 0x134   : > { %v797_v21 = vadd.f32 %v4522_v16, %v796_v20 }
 0x135   : > { %v864_v33 = vld [vmem:[#allocation2 + $0xc0] sm:$0xff] }
 0x136   : > { %841 = vst [vmem:[#allocation2 + $0xc9] sm:$0xff] %v797_v21  ;;  %v949_v24 = vpack.c.bf16 %v797_v21, %v795_v10 }
 0x137   : > { %v4618_v23 = vpop.f32.mrf.mxu1 }
 0x13a   : > { %1049 = vmatmul.bf16.gmra.mxu1 %v949_v24  ;;  %v4115_v24 = vld [vmem:[%s5327_s7 + $0x68] sm:$0xff] }
 0x13b   : > { %v799_v27 = vpop.f32.mrf.mxu0  ;;  %1923 = vmatpush.bf16.msrb.mxu3 %v4115_v24 }
 0x13c   : > { %v800_v28 = vadd.f32 %v4522_v16, %v799_v27 }
 0x13d   : > { %v865_v29 = vld [vmem:[#allocation2 + $0xc8] sm:$0xff] }
 0x13e   : > { %v888_v30 = vld [vmem:[#allocation2 + $0xc2] sm:$0xff]  ;;  %v889_v31 = vld [vmem:[#allocation2 + $0xca] sm:$0xff]  ;;  %842 = vst [vmem:[#allocation2 + $0xd9] sm:$0xff] %v800_v28  ;;  %v920_v35 = vpack.c.bf16 %v865_v29, %v864_v33 }
 0x13f   : > { %v4627_v32 = vpop.f32.mrf.mxu1  ;;  %v1212_v36 = vpack.c.bf16 %v889_v31, %v888_v30 }
 0x142   : > { %1166 = vmatmul.bf16.gmra.mxu2 %v920_v35 }
 0x143   : > { %1312 = vmatmul.bf16.gmra.mxu3 %v1212_v36  ;;  %v801_v37 = vpop.f32.mrf.mxu0 }
 0x144   : > { %v802_v38 = vadd.f32 %v4522_v16, %v801_v37 }
 0x145   : > { %v4633_v39 = vpop.f32.mrf.mxu2  ;;  %v866_v55 = vld [vmem:[#allocation2 + $0xd8] sm:$0xff] }
 0x146   : > { %v4635_v40 = vpop.f32.mrf.mxu3  ;;  %843 = vst [vmem:[#allocation2 + $0xe1] sm:$0xff] %v802_v38  ;;  %v950_v42 = vpack.c.bf16 %v802_v38, %v800_v28 }
 0x147   : > { %v1015_v41 = vpop.f32.mrf.mxu1 }
 0x14a   : > { %1054 = vmatmul.bf16.gmra.mxu1 %v950_v42 }
 0x14b   : > { %v804_v45 = vpop.f32.mrf.mxu0 }
 0x14c   : > { %v805_v47 = vadd.f32 %v4522_v16, %v804_v45 }
 0x14d   : > { %v1129_v48 = vpop.f32.mrf.mxu2  ;;  %v867_v50 = vld [vmem:[#allocation2 + $0xe0] sm:$0xff] }
 0x14e   : > { %v4648_v49 = vpop.f32.mrf.mxu3  ;;  %v890_v51 = vld [vmem:[#allocation2 + $0xda] sm:$0xff]  ;;  %v891_v52 = vld [vmem:[#allocation2 + $0xe2] sm:$0xff]  ;;  %v820_v53 = vmul.f32 %v4645_v46, %v805_v47  ;;  %v921_v56 = vpack.c.bf16 %v867_v50, %v866_v55  ;;  %v1128_v47 = vadd.f32 %v4633_v39, %v4618_v23 }
 0x14f   : > { %v1017_v54 = vpop.f32.mrf.mxu1  ;;  %v1213_v57 = vpack.c.bf16 %v891_v52, %v890_v51  ;;  %v4114_v55 = vld [vmem:[%s5327_s7 + $0x60] sm:$0xff] }
 0x150   : > { %844 = vst [vmem:[#allocation2 + $0xf1] sm:$0xff] %v820_v53  ;;  %1924 = vmatpush.bf16.msrb.mxu3 %v4114_v55 }
 0x152   : > { %1171 = vmatmul.bf16.gmra.mxu2 %v921_v56 }
 0x153   : > { %1317 = vmatmul.bf16.gmra.mxu3 %v1213_v57  ;;  %v806_v59 = vpop.f32.mrf.mxu0 }
 0x154   : > { %v807_v60 = vadd.f32 %v4522_v16, %v806_v59 }
 0x155   : > { %v1132_v61 = vpop.f32.mrf.mxu2 }
 0x156   : > { %v1278_v62 = vpop.f32.mrf.mxu3  ;;  %v821_v63 = vmul.f32 %v4645_v46, %v807_v60  ;;  %v1133_v3 = vadd.f32 %v1132_v61, %v1015_v41 }
 0x157   : > { %v1020_v0 = vpop.f32.mrf.mxu1  ;;  %v868_v9 = vld [vmem:[#allocation2 + $0xf0] sm:$0xff] }
 0x158   : > { %845 = vst [vmem:[#allocation2 + $0xf9] sm:$0xff] %v821_v63  ;;  %v951_v1 = vpack.c.bf16 %v821_v63, %v820_v53  ;;  %v1335_v14 = vadd.f32 %v1278_v62, %v1133_v3 }
 0x15a   : > { %1059 = vmatmul.bf16.gmra.mxu1 %v951_v1 }
 0x15b   : > { %v809_v2 = vpop.f32.mrf.mxu0 }
 0x15c   : > { %v810_v4 = vadd.f32 %v4522_v16, %v809_v2 }
 0x15d   : > { %v1134_v5 = vpop.f32.mrf.mxu2 }
 0x15e   : > { %v1280_v6 = vpop.f32.mrf.mxu3  ;;  %v822_v7 = vmul.f32 %v4645_v46, %v810_v4  ;;  %v1135_v8 = vadd.f32 %v1134_v5, %v1017_v54 }
 0x15f   : > { %v1022_v10 = vpop.f32.mrf.mxu1  ;;  %v869_v11 = vld [vmem:[#allocation2 + $0xf8] sm:$0xff] }
 0x160   : > { %v892_v12 = vld [vmem:[#allocation2 + $0xf2] sm:$0xff]  ;;  %v893_v13 = vld [vmem:[#allocation2 + $0xfa] sm:$0xff]  ;;  %846 = vst [vmem:[#allocation2 + $0x109] sm:$0xff] %v822_v7  ;;  %v1336_v15 = vadd.f32 %v1280_v6, %v1135_v8  ;;  %v922_v17 = vpack.c.bf16 %v869_v11, %v868_v9 }
 0x161   : > { %v1214_v18 = vpack.c.bf16 %v893_v13, %v892_v12 }
 0x162   : > { %v1374_v20 = vpack.c.bf16 %v1336_v15, %v1335_v14  ;;  %1176 = vmatmul.bf16.gmra.mxu2 %v922_v17 }
 0x163   : > { %1322 = vmatmul.bf16.gmra.mxu3 %v1214_v18  ;;  %v811_v21 = vpop.f32.mrf.mxu0 }
 0x164   : > { %v812_v22 = vadd.f32 %v4522_v16, %v811_v21  ;;  %1457 = vmatmul.bf16.vlgmr.msrb.gmra.mxu0 %v1374_v20  ;;  %v1130_v16 = vadd.f32 %v1129_v48, %v4627_v32  ;;  %v1333_v32 = vadd.f32 %v4635_v40, %v1128_v47 }
 0x165   : > { %v1137_v25 = vpop.f32.mrf.mxu2 }
 0x166   : > { %v1283_v26 = vpop.f32.mrf.mxu3  ;;  %v823_v27 = vmul.f32 %v4645_v46, %v812_v22  ;;  %v1138_v30 = vadd.f32 %v1137_v25, %v1020_v0  ;;  %v1334_v51 = vadd.f32 %v4648_v49, %v1130_v16  ;;  %v4112_v25 = vld [vmem:[%s5327_s7 + $0x50] sm:$0xff] }
 0x167   : > { %v1025_v28 = vpop.f32.mrf.mxu1  ;;  %v870_v35 = vld [vmem:[#allocation2 + $0x108] sm:$0xff] }
 0x168   : > { %847 = vst [vmem:[#allocation2 + $0x111] sm:$0xff] %v823_v27  ;;  %v952_v29 = vpack.c.bf16 %v823_v27, %v822_v7  ;;  %v1337_v42 = vadd.f32 %v1283_v26, %v1138_v30  ;;  %v1373_v54 = vpack.c.bf16 %v1334_v51, %v1333_v32  ;;  %v4113_v7 = vld [vmem:[%s5327_s7 + $0x58] sm:$0xff] }
 0x169   : > { %1925 = vmatpush.bf16.msrb.mxu3 %v4113_v7 }
 0x16a   : > { %1064 = vmatmul.bf16.gmra.mxu1 %v952_v29 }
 0x16d   : > { %v1139_v31 = vpop.f32.mrf.mxu2  ;;  %1926 = vmatpush.bf16.msrb.mxu3 %v4112_v25 }
 0x16e   : > { %v1285_v33 = vpop.f32.mrf.mxu3  ;;  %v1140_v34 = vadd.f32 %v1139_v31, %v1022_v10 }
 0x16f   : > { %v1027_v36 = vpop.f32.mrf.mxu1  ;;  %v871_v37 = vld [vmem:[#allocation2 + $0x110] sm:$0xff] }
 0x170   : > { %v894_v38 = vld [vmem:[#allocation2 + $0x10a] sm:$0xff]  ;;  %v895_v41 = vld [vmem:[#allocation2 + $0x112] sm:$0xff]  ;;  %v1338_v43 = vadd.f32 %v1285_v33, %v1140_v34  ;;  %v923_v44 = vpack.c.bf16 %v871_v37, %v870_v35 }
 0x171   : > { %v1215_v45 = vpack.c.bf16 %v895_v41, %v894_v38 }
 0x172   : > { %v1375_v50 = vpack.c.bf16 %v1338_v43, %v1337_v42  ;;  %1181 = vmatmul.bf16.gmra.mxu2 %v923_v44 }
 0x173   : > { %1327 = vmatmul.bf16.gmra.mxu3 %v1215_v45 }
 0x174   : > { %1462 = vmatmul.bf16.gmra.mxu0 %v1375_v50 }
 0x175   : > { %v1142_v52 = vpop.f32.mrf.mxu2 }
 0x176   : > { %v1288_v53 = vpop.f32.mrf.mxu3  ;;  %v1143_v56 = vadd.f32 %v1142_v52, %v1025_v28 }
 0x177   : > { %v1030_v48 = vpop.f32.mrf.mxu1 }
 0x178   : > { %v1339_v59 = vadd.f32 %v1288_v53, %v1143_v56 }
 0x17a   : > { %1564 = vmatmul.bf16.vlgmr.msrb.gmra.mxu1 %v1373_v54 }
 0x17d   : > { %v1144_v23 = vpop.f32.mrf.mxu2 }
 0x17e   : > { %v1290_v39 = vpop.f32.mrf.mxu3  ;;  %v1145_v57 = vadd.f32 %v1144_v23, %v1027_v36 }
 0x17f   : > { %v1032_v58 = vpop.f32.mrf.mxu1 }
 0x180   : > { %v1340_v49 = vadd.f32 %v1290_v39, %v1145_v57 }
 0x182   : > { %v1376_v60 = vpack.c.bf16 %v1340_v49, %v1339_v59  ;;  %1689 = vmatmul.bf16.vlgmr.msrb.gmra.mxu2 %v1375_v50 }
 0x184   : > { %1467 = vmatmul.bf16.gmra.mxu0 %v1376_v60 }
 0x185   : > { %v1147_v61 = vpop.f32.mrf.mxu2 }
 0x186   : > { %v1293_v40 = vpop.f32.mrf.mxu3  ;;  %v1148_v63 = vadd.f32 %v1147_v61, %v1030_v48  ;;  %v4110_v61 = vld [vmem:[%s5327_s7 + $0x40] sm:$0xff] }
 0x187   : > { %v1035_v62 = vpop.f32.mrf.mxu1 }
 0x188   : > { %v1341_v4 = vadd.f32 %v1293_v40, %v1148_v63  ;;  %v4125_v40 = vld [vmem:[%s5327_s7 + $0xb8] sm:$0xff] }
 0x189   : > { %2140 = vmatpush.bf16.msra.mxu0 %v4125_v40 }
 0x18a   : > { %1569 = vmatmul.bf16.gmra.mxu1 %v1374_v20 }
 0x18d   : > { %v1149_v0 = vpop.f32.mrf.mxu2 }
 0x18e   : > { %v1295_v1 = vpop.f32.mrf.mxu3  ;;  %v1150_v2 = vadd.f32 %v1149_v0, %v1032_v58 }
 0x18f   : > { %v1037_v3 = vpop.f32.mrf.mxu1 }
 0x190   : > { %v1342_v5 = vadd.f32 %v1295_v1, %v1150_v2 }
 0x192   : > { %v1377_v6 = vpack.c.bf16 %v1342_v5, %v1341_v4  ;;  %1694 = vmatmul.bf16.gmra.mxu2 %v1376_v60 }
 0x194   : > { %1472 = vmatmul.bf16.gmra.mxu0 %v1377_v6 }
 0x195   : > { %v1152_v8 = vpop.f32.mrf.mxu2 }
 0x196   : > { %v1298_v9 = vpop.f32.mrf.mxu3  ;;  %v1153_v11 = vadd.f32 %v1152_v8, %v1035_v62  ;;  %v4133_v8 = vld [vmem:[%s5327_s7 + $0xf8] sm:$0xff] }
 0x197   : > { %v1040_v10 = vpop.f32.mrf.mxu1  ;;  %2271 = vmatpush.bf16.msra.mxu1 %v4133_v8 }
 0x198   : > { %v1343_v17 = vadd.f32 %v1298_v9, %v1153_v11  ;;  %v4123_v9 = vld [vmem:[%s5327_s7 + $0xa8] sm:$0xff] }
 0x19a   : > { %1574 = vmatmul.bf16.gmra.mxu1 %v1375_v50  ;;  %v4111_v50 = vld [vmem:[%s5327_s7 + $0x48] sm:$0xff] }
 0x19b   : > { %1927 = vmatpush.bf16.msrb.mxu3 %v4111_v50 }
 0x19d   : > { %v1154_v12 = vpop.f32.mrf.mxu2 }
 0x19e   : > { %v1300_v13 = vpop.f32.mrf.mxu3  ;;  %v1155_v14 = vadd.f32 %v1154_v12, %v1037_v3  ;;  %v4124_v3 = vld [vmem:[%s5327_s7 + $0xb0] sm:$0xff] }
 0x19f   : > { %v1042_v15 = vpop.f32.mrf.mxu1  ;;  %1928 = vmatpush.bf16.msrb.mxu3 %v4110_v61  ;;  %2141 = vmatpush.bf16.msra.mxu0 %v4124_v3  ;;  %v4140_v12 = vld [vmem:[%s5327_s7 + $0x130] sm:$0xff] }
 0x1a0   : > { %v1344_v18 = vadd.f32 %v1300_v13, %v1155_v14  ;;  %v4122_v14 = vld [vmem:[%s5327_s7 + $0xa0] sm:$0xff] }
 0x1a2   : > { %v1378_v20 = vpack.c.bf16 %v1344_v18, %v1343_v17  ;;  %1699 = vmatmul.bf16.gmra.mxu2 %v1377_v6  ;;  %v4139_v17 = vld [vmem:[%s5327_s7 + $0x128] sm:$0xff]  ;;  %v4121_v18 = vld [vmem:[%s5327_s7 + $0x98] sm:$0xff] }
 0x1a3   : > { %2142 = vmatpush.bf16.msra.mxu0 %v4123_v9 }
 0x1a4   : > { %1477 = vmatmul.bf16.gmra.mxu0 %v1378_v20 }
 0x1a5   : > { %v1157_v21 = vpop.f32.mrf.mxu2 }
 0x1a6   : > { %v1303_v22 = vpop.f32.mrf.mxu3  ;;  %v1158_v26 = vadd.f32 %v1157_v21, %v1040_v10 }
 0x1a7   : > { %v1045_v24 = vpop.f32.mrf.mxu1  ;;  %2143 = vmatpush.bf16.msra.mxu0 %v4122_v14 }
 0x1a8   : > { %v1345_v31 = vadd.f32 %v1303_v22, %v1158_v26  ;;  %v4132_v22 = vld [vmem:[%s5327_s7 + $0xf0] sm:$0xff] }
 0x1a9   : > { %2272 = vmatpush.bf16.msra.mxu1 %v4132_v22 }
 0x1aa   : > { %1579 = vmatmul.bf16.gmra.mxu1 %v1376_v60  ;;  %v4141_v60 = vld [vmem:[%s5327_s7 + $0x138] sm:$0xff] }
 0x1ab   : > { %2402 = vmatpush.bf16.msra.mxu2 %v4141_v60  ;;  %2144 = vmatpush.bf16.msra.mxu0 %v4121_v18 }
 0x1ad   : > { %v1159_v27 = vpop.f32.mrf.mxu2 }
 0x1ae   : > { %v1305_v28 = vpop.f32.mrf.mxu3  ;;  %v1160_v29 = vadd.f32 %v1159_v27, %v1042_v15 }
 0x1af   : > { %v1047_v30 = vpop.f32.mrf.mxu1  ;;  %2403 = vmatpush.bf16.msra.mxu2 %v4140_v12 }
 0x1b0   : > { %v1346_v33 = vadd.f32 %v1305_v28, %v1160_v29  ;;  %v4120_v28 = vld [vmem:[%s5327_s7 + $0x90] sm:$0xff] }
 0x1b1   : > { %2145 = vmatpush.bf16.msra.mxu0 %v4120_v28 }
 0x1b2   : > { %v1379_v34 = vpack.c.bf16 %v1346_v33, %v1345_v31  ;;  %1704 = vmatmul.bf16.gmra.mxu2 %v1378_v20  ;;  %v4131_v33 = vld [vmem:[%s5327_s7 + $0xe8] sm:$0xff] }
 0x1b3   : > { %2404 = vmatpush.bf16.msra.mxu2 %v4139_v17  ;;  %2273 = vmatpush.bf16.msra.mxu1 %v4131_v33 }
 0x1b4   : > { %1482 = vmatmul.bf16.gmra.mxu0 %v1379_v34 }
 0x1b5   : > { %v1162_v35 = vpop.f32.mrf.mxu2 }
 0x1b6   : > { %v1308_v16 = vpop.f32.mrf.mxu3  ;;  %v1163_v37 = vadd.f32 %v1162_v35, %v1045_v24  ;;  %v4138_v24 = vld [vmem:[%s5327_s7 + $0x120] sm:$0xff] }
 0x1b7   : > { %v1050_v36 = vpop.f32.mrf.mxu1  ;;  %2405 = vmatpush.bf16.msra.mxu2 %v4138_v24 }
 0x1b8   : > { %v1347_v44 = vadd.f32 %v1308_v16, %v1163_v37  ;;  %v4119_v16 = vld [vmem:[%s5327_s7 + $0x88] sm:$0xff] }
 0x1b9   : > { %2146 = vmatpush.bf16.msra.mxu0 %v4119_v16 }
 0x1ba   : > { %1584 = vmatmul.bf16.gmra.mxu1 %v1377_v6 }
 0x1bd   : > { %v1164_v38 = vpop.f32.mrf.mxu2 }
 0x1be   : > { %v1310_v41 = vpop.f32.mrf.mxu3  ;;  %v1165_v42 = vadd.f32 %v1164_v38, %v1047_v30  ;;  %v4130_v38 = vld [vmem:[%s5327_s7 + $0xe0] sm:$0xff] }
 0x1bf   : > { %v1052_v43 = vpop.f32.mrf.mxu1  ;;  %2274 = vmatpush.bf16.msra.mxu1 %v4130_v38 }
 0x1c0   : > { %v1348_v45 = vadd.f32 %v1310_v41, %v1165_v42  ;;  %v4136_v41 = vld [vmem:[%s5327_s7 + $0x110] sm:$0xff] }
 0x1c2   : > { %v1380_v47 = vpack.c.bf16 %v1348_v45, %v1347_v44  ;;  %1709 = vmatmul.bf16.gmra.mxu2 %v1379_v34  ;;  %v4129_v44 = vld [vmem:[%s5327_s7 + $0xd8] sm:$0xff]  ;;  %v4135_v45 = vld [vmem:[%s5327_s7 + $0x108] sm:$0xff] }
 0x1c3   : > { %2275 = vmatpush.bf16.msra.mxu1 %v4129_v44  ;;  %v4105_v44 = vld [vmem:[%s5327_s7 + $0x18] sm:$0xff] }
 0x1c4   : > { %1487 = vmatmul.bf16.gmra.mxu0 %v1380_v47 }
 0x1c5   : > { %v1167_v51 = vpop.f32.mrf.mxu2 }
 0x1c6   : > { %v1313_v52 = vpop.f32.mrf.mxu3  ;;  %v1168_v32 = vadd.f32 %v1167_v51, %v1050_v36  ;;  %v4109_v36 = vld [vmem:[%s5327_s7 + $0x38] sm:$0xff]  ;;  %v4128_v51 = vld [vmem:[%s5327_s7 + $0xd0] sm:$0xff] }
 0x1c7   : > { %v1055_v53 = vpop.f32.mrf.mxu1  ;;  %2018 = vmatpush.bf16.msra.mxu3 %v4109_v36  ;;  %2276 = vmatpush.bf16.msra.mxu1 %v4128_v51 }
 0x1c8   : > { %v1349_v23 = vadd.f32 %v1313_v52, %v1168_v32  ;;  %v4134_v52 = vld [vmem:[%s5327_s7 + $0x100] sm:$0xff] }
 0x1ca   : > { %1589 = vmatmul.bf16.gmra.mxu1 %v1378_v20 }
 0x1cd   : > { %v1169_v48 = vpop.f32.mrf.mxu2 }
 0x1ce   : > { %v1315_v54 = vpop.f32.mrf.mxu3  ;;  %v1170_v55 = vadd.f32 %v1169_v48, %v1052_v43  ;;  %v4118_v43 = vld [vmem:[%s5327_s7 + $0x80] sm:$0xff]  ;;  %v4127_v48 = vld [vmem:[%s5327_s7 + $0xc8] sm:$0xff] }
 0x1cf   : > { %v1057_v56 = vpop.f32.mrf.mxu1  ;;  %2147 = vmatpush.bf16.msra.mxu0 %v4118_v43  ;;  %2277 = vmatpush.bf16.msra.mxu1 %v4127_v48 }
 0x1d0   : > { %v1350_v39 = vadd.f32 %v1315_v54, %v1170_v55  ;;  %v4108_v55 = vld [vmem:[%s5327_s7 + $0x30] sm:$0xff] }
 0x1d1   : > { %2019 = vmatpush.bf16.msra.mxu3 %v4108_v55 }
 0x1d2   : > { %v4680_v57 = vpack.c.bf16 %v1350_v39, %v1349_v23  ;;  %1714 = vmatmul.bf16.gmra.mxu2 %v1380_v47  ;;  %v4126_v39 = vld [vmem:[%s5327_s7 + $0xc0] sm:$0xff] }
 0x1d3   : > { %2278 = vmatpush.bf16.msra.mxu1 %v4126_v39 }
 0x1d4   : > { %1492 = vmatmul.bf16.gmra.mxu0 %v4680_v57 }
 0x1d5   : > { %v1172_v58 = vpop.f32.mrf.mxu2 }
 0x1d6   : > { %v1318_v59 = vpop.f32.mrf.mxu3  ;;  %v1173_v62 = vadd.f32 %v1172_v58, %v1055_v53 }
 0x1d7   : > { %v1060_v49 = vpop.f32.mrf.mxu1 }
 0x1d8   : > { %v1351_v4 = vadd.f32 %v1318_v59, %v1173_v62 }
 0x1da   : > { %1594 = vmatmul.bf16.gmra.mxu1 %v1379_v34  ;;  %v4137_v34 = vld [vmem:[%s5327_s7 + $0x118] sm:$0xff] }
 0x1db   : > { %2406 = vmatpush.bf16.msra.mxu2 %v4137_v34 }
 0x1dd   : > { %v1174_v63 = vpop.f32.mrf.mxu2 }
 0x1de   : > { %v1320_v0 = vpop.f32.mrf.mxu3  ;;  %v1175_v1 = vadd.f32 %v1174_v63, %v1057_v56 }
 0x1df   : > { %v1062_v2 = vpop.f32.mrf.mxu1  ;;  %2407 = vmatpush.bf16.msra.mxu2 %v4136_v41 }
 0x1e0   : > { %v1352_v5 = vadd.f32 %v1320_v0, %v1175_v1 }
 0x1e1   : > { %v4695_v6 = vpop.f32.mrf.mxu0 }
 0x1e2   : > { %v4697_v7 = vpack.c.bf16 %v1352_v5, %v1351_v4  ;;  %1719 = vmatmul.bf16.gmra.mxu2 %v4680_v57 }
 0x1e3   : > { %2408 = vmatpush.bf16.msra.mxu2 %v4135_v45 }
 0x1e4   : > { %1497 = vmatmul.bf16.gmra.mxu0 %v4697_v7 }
 0x1e5   : > { %v1177_v10 = vpop.f32.mrf.mxu2 }
 0x1e6   : > { %v1323_v11 = vpop.f32.mrf.mxu3  ;;  %v1178_v20 = vadd.f32 %v1177_v10, %v1060_v49 }
 0x1e7   : > { %v4710_v13 = vpop.f32.mrf.mxu1  ;;  %2409 = vmatpush.bf16.msra.mxu2 %v4134_v52 }
 0x1e8   : > { %v1353_v29 = vadd.f32 %v1323_v11, %v1178_v20 }
 0x1e9   : > { %v4715_v15 = vpop.f32.mrf.mxu0 }
 0x1ea   : > { %1599 = vmatmul.bf16.gmra.mxu1 %v1380_v47 }
 0x1ed   : > { %v1179_v21 = vpop.f32.mrf.mxu2 }
 0x1ee   : > { %v1180_v25 = vadd.f32 %v1179_v21, %v1062_v2  ;;  %v1325_v26 = vpop.f32.mrf.mxu3 }
 0x1ef   : > { %v1067_v27 = vpop.f32.mrf.mxu1 }
 0x1f0   : > { %v1354_v30 = vadd.f32 %v1325_v26, %v1180_v25  ;;  %v4106_v25 = vld [vmem:[%s5327_s7 + $0x20] sm:$0xff] }
 0x1f1   : > { %v4732_v31 = vpop.f32.mrf.mxu0 }
 0x1f2   : > { %v1400_v35 = vpack.c.bf16 %v1354_v30, %v1353_v29  ;;  %1724 = vmatmul.bf16.gmra.mxu2 %v4697_v7 }
 0x1f4   : > { %1502 = vmatmul.bf16.gmra.mxu0 %v1400_v35 }
 0x1f5   : > { %v1182_v37 = vpop.f32.mrf.mxu2 }
 0x1f6   : > { %v1328_v32 = vpop.f32.mrf.mxu3  ;;  %v1183_v60 = vadd.f32 %v1182_v37, %v4710_v13 }
 0x1f7   : > { %v1565_v42 = vpop.f32.mrf.mxu1 }
 0x1f8   : > { %v1566_v54 = vadd.f32 %v1565_v42, %v4695_v6  ;;  %v1355_v0 = vadd.f32 %v1328_v32, %v1183_v60  ;;  %v4104_v60 = vld [vmem:[%s5327_s7 + $0x10] sm:$0xff] }
 0x1f9   : > { %v1465_v47 = vpop.f32.mrf.mxu0 }
 0x1fa   : > { %1604 = vmatmul.bf16.gmra.mxu1 %v4680_v57 }
 0x1fd   : > { %v1184_v50 = vpop.f32.mrf.mxu2 }
 0x1fe   : > { %v1185_v59 = vadd.f32 %v1184_v50, %v1067_v27  ;;  %v1330_v61 = vpop.f32.mrf.mxu3 }
 0x1ff   : > { %v1567_v53 = vpop.f32.mrf.mxu1 }
 0x200   : > { %v1356_v40 = vadd.f32 %v1330_v61, %v1185_v59  ;;  %v1568_v62 = vadd.f32 %v1567_v53, %v4715_v15 }
 0x201   : > { %v1468_v56 = vpop.f32.mrf.mxu0 }
 0x202   : > { %1729 = vmatmul.bf16.gmra.mxu2 %v1400_v35  ;;  %v1632_v4 = vpack.c.bf16 %v1356_v40, %v1355_v0 }
 0x205   : > { %v1690_v23 = vpop.f32.mrf.mxu2 }
 0x206   : > { %v1740_v57 = vadd.f32 %v1690_v23, %v1566_v54 }
 0x207   : > { %v1570_v58 = vpop.f32.mrf.mxu1 }
 0x208   : > { %v1760_v49 = vmul.f32 %v1740_v57, %v4524_v19  ;;  %v1571_v8 = vadd.f32 %v1570_v58, %v4732_v31 }
 0x209   : > { %v1470_v2 = vpop.f32.mrf.mxu0 }
 0x20a   : > { %1764 = vst [vmem:[#allocation2 + $0x1] sm:$0xff] %v1760_v49  ;;  %1609 = vmatmul.bf16.gmra.mxu1 %v4697_v7  ;;  %v4107_v7 = vld [vmem:[%s5327_s7 + $0x28] sm:$0xff] }
 0x20b   : > { %2020 = vmatpush.bf16.msra.mxu3 %v4107_v7 }
 0x20d   : > { %v1692_v63 = vpop.f32.mrf.mxu2 }
 0x20e   : > { %v1741_v1 = vadd.f32 %v1692_v63, %v1568_v62 }
 0x20f   : > { %v1572_v3 = vpop.f32.mrf.mxu1  ;;  %2021 = vmatpush.bf16.msra.mxu3 %v4106_v25  ;;  %v4157_v25 = vld [vmem:[%s5327_s7 + $0x1b8] sm:$0xff] }
 0x210   : > { %v1761_v5 = vmul.f32 %v1741_v1, %v4524_v19  ;;  %v1573_v19 = vadd.f32 %v1572_v3, %v1465_v47  ;;  %2664 = vmatpush.bf16.msrb.mxu0 %v4157_v25  ;;  %v4167_v25 = vld [vmem:[%s5327_s7 + $0x208] sm:$0xff] }
 0x211   : > { %v1473_v12 = vpop.f32.mrf.mxu0 }
 0x212   : > { %1765 = vst [vmem:[#allocation2 + $0x9] sm:$0xff] %v1761_v5  ;;  %v1865_v6 = vpack.c.bf16 %v1761_v5, %v1760_v49  ;;  %1734 = vmatmul.bf16.gmra.mxu2 %v1632_v4 }
 0x213   : > { %2022 = vmatpush.bf16.msra.mxu3 %v4105_v44 }
 0x214   : > { %1929 = vmatmul.bf16.vlgmr.msrb.gmra.mxu3 %v1865_v6 }
 0x215   : > { %v1695_v9 = vpop.f32.mrf.mxu2 }
 0x216   : > { %v1742_v10 = vadd.f32 %v1695_v9, %v1571_v8 }
 0x217   : > { %v1575_v11 = vpop.f32.mrf.mxu1  ;;  %2023 = vmatpush.bf16.msra.mxu3 %v4104_v60  ;;  %v4164_v60 = vld [vmem:[%s5327_s7 + $0x1f0] sm:$0xff] }
 0x218   : > { %1766 = vst [vmem:[#allocation2 + $0x19] sm:$0xff] %v1742_v10  ;;  %v1576_v24 = vadd.f32 %v1575_v11, %v1468_v56 }
 0x219   : > { %v1804_v13 = vld [vmem:[#allocation2 + $0x2] sm:$0xff]  ;;  %v1805_v14 = vld [vmem:[#allocation2 + $0xa] sm:$0xff]  ;;  %v1475_v22 = vpop.f32.mrf.mxu0 }
 0x21a   : > { %v2084_v15 = vpack.c.bf16 %v1805_v14, %v1804_v13 }
 0x21c   : > { %2148 = vmatmul.bf16.vlgmr.msra.gmra.mxu0 %v2084_v15 }
 0x21d   : > { %v1697_v17 = vpop.f32.mrf.mxu2 }
 0x21e   : > { %v1743_v18 = vadd.f32 %v1697_v17, %v1573_v19 }
 0x21f   : > { %v1577_v20 = vpop.f32.mrf.mxu1  ;;  %v1786_v28 = vld [vmem:[#allocation2 + $0x18] sm:$0xff] }
 0x220   : > { %1767 = vst [vmem:[#allocation2 + $0x21] sm:$0xff] %v1743_v18  ;;  %v1866_v21 = vpack.c.bf16 %v1743_v18, %v1742_v10  ;;  %v1578_v16 = vadd.f32 %v1577_v20, %v1470_v2 }
 0x221   : > { %v1478_v36 = vpop.f32.mrf.mxu0 }
 0x222   : > { %2410 = vmatmul.bf16.vlgmr.msra.gmra.mxu2 %v1866_v21 }
 0x224   : > { %1934 = vmatmul.bf16.gmra.mxu3 %v1866_v21 }
 0x225   : > { %v1700_v26 = vpop.f32.mrf.mxu2 }
 0x226   : > { %v1744_v27 = vadd.f32 %v1700_v26, %v1576_v24 }
 0x227   : > { %v1580_v29 = vpop.f32.mrf.mxu1  ;;  %v1787_v30 = vld [vmem:[#allocation2 + $0x20] sm:$0xff] }
 0x228   : > { %v1806_v31 = vld [vmem:[#allocation2 + $0x1a] sm:$0xff]  ;;  %v1807_v33 = vld [vmem:[#allocation2 + $0x22] sm:$0xff]  ;;  %1768 = vst [vmem:[#allocation2 + $0x31] sm:$0xff] %v1744_v27  ;;  %v4791_v34 = vpack.c.bf16 %v1787_v30, %v1786_v28  ;;  %v1581_v43 = vadd.f32 %v1580_v29, %v1473_v12 }
 0x229   : > { %v4794_v35 = vpack.c.bf16 %v1807_v33, %v1806_v31  ;;  %v1480_v51 = vpop.f32.mrf.mxu0  ;;  %v4103_v12 = vld [vmem:[%s5327_s7 + $0x8] sm:$0xff]  ;;  %v4156_v31 = vld [vmem:[%s5327_s7 + $0x1b0] sm:$0xff] }
 0x22a   : > { %2279 = vmatmul.bf16.vlgmr.msra.gmra.mxu1 %v4791_v34  ;;  %2024 = vmatpush.bf16.msra.mxu3 %v4103_v12  ;;  %v4168_v12 = vld [vmem:[%s5327_s7 + $0x210] sm:$0xff] }
 0x22b   : > { %2665 = vmatpush.bf16.msrb.mxu0 %v4156_v31  ;;  %v4160_v31 = vld [vmem:[%s5327_s7 + $0x1d0] sm:$0xff] }
 0x22c   : > { %2153 = vmatmul.bf16.gmra.mxu0 %v4794_v35 }
 0x22d   : > { %v1702_v37 = vpop.f32.mrf.mxu2 }
 0x22e   : > { %v1745_v38 = vadd.f32 %v1702_v37, %v1578_v16  ;;  %v4173_v16 = vld [vmem:[%s5327_s7 + $0x238] sm:$0xff] }
 0x22f   : > { %v1582_v41 = vpop.f32.mrf.mxu1  ;;  %v1788_v50 = vld [vmem:[#allocation2 + $0x30] sm:$0xff]  ;;  %2926 = vmatpush.bf16.msrb.mxu2 %v4173_v16  ;;  %v4166_v16 = vld [vmem:[%s5327_s7 + $0x200] sm:$0xff] }
 0x230   : > { %1769 = vst [vmem:[#allocation2 + $0x39] sm:$0xff] %v1745_v38  ;;  %v4797_v42 = vpack.c.bf16 %v1745_v38, %v1744_v27  ;;  %v1583_v56 = vadd.f32 %v1582_v41, %v1475_v22  ;;  %v4102_v38 = vld [vmem:[%s5327_s7] sm:$0xff] }
 0x231   : > { %v1483_v59 = vpop.f32.mrf.mxu0  ;;  %2025 = vmatpush.bf16.msra.mxu3 %v4102_v38  ;;  %v4159_v38 = vld [vmem:[%s5327_s7 + $0x1c8] sm:$0xff] }
 0x232   : > { %2415 = vmatmul.bf16.gmra.mxu2 %v4797_v42 }
 0x234   : > { %1939 = vmatmul.bf16.gmra.mxu3 %v4797_v42 }
 0x235   : > { %v1705_v45 = vpop.f32.mrf.mxu2 }
 0x236   : > { %v1746_v47 = vadd.f32 %v1705_v45, %v1581_v43  ;;  %v4172_v43 = vld [vmem:[%s5327_s7 + $0x230] sm:$0xff] }
 0x237   : > { %v1585_v52 = vpop.f32.mrf.mxu1  ;;  %v1789_v53 = vld [vmem:[#allocation2 + $0x38] sm:$0xff]  ;;  %2927 = vmatpush.bf16.msrb.mxu2 %v4172_v43  ;;  %v4148_v43 = vld [vmem:[%s5327_s7 + $0x170] sm:$0xff] }
 0x238   : > { %v1808_v32 = vld [vmem:[#allocation2 + $0x32] sm:$0xff]  ;;  %v1809_v48 = vld [vmem:[#allocation2 + $0x3a] sm:$0xff]  ;;  %1770 = vst [vmem:[#allocation2 + $0x49] sm:$0xff] %v1746_v47  ;;  %v4804_v54 = vpack.c.bf16 %v1789_v53, %v1788_v50  ;;  %v1586_v49 = vadd.f32 %v1585_v52, %v1478_v36  ;;  %v4155_v36 = vld [vmem:[%s5327_s7 + $0x1a8] sm:$0xff] }
 0x239   : > { %v4807_v55 = vpack.c.bf16 %v1809_v48, %v1808_v32  ;;  %v1485_v5 = vpop.f32.mrf.mxu0  ;;  %2666 = vmatpush.bf16.msrb.mxu0 %v4155_v36  ;;  %v4154_v32 = vld [vmem:[%s5327_s7 + $0x1a0] sm:$0xff] }
 0x23a   : > { %2284 = vmatmul.bf16.gmra.mxu1 %v4804_v54 }
 0x23c   : > { %2158 = vmatmul.bf16.gmra.mxu0 %v4807_v55 }
 0x23d   : > { %v1707_v23 = vpop.f32.mrf.mxu2  ;;  %2667 = vmatpush.bf16.msrb.mxu0 %v4154_v32 }
 0x23e   : > { %v1747_v39 = vadd.f32 %v1707_v23, %v1583_v56  ;;  %v4165_v56 = vld [vmem:[%s5327_s7 + $0x1f8] sm:$0xff]  ;;  %v4171_v23 = vld [vmem:[%s5327_s7 + $0x228] sm:$0xff] }
 0x23f   : > { %v1587_v57 = vpop.f32.mrf.mxu1  ;;  %v1790_v62 = vld [vmem:[#allocation2 + $0x48] sm:$0xff]  ;;  %2795 = vmatpush.bf16.msrb.mxu1 %v4165_v56  ;;  %2928 = vmatpush.bf16.msrb.mxu2 %v4171_v23 }
 0x240   : > { %1771 = vst [vmem:[#allocation2 + $0x51] sm:$0xff] %v1747_v39  ;;  %v4810_v58 = vpack.c.bf16 %v1747_v39, %v1746_v47  ;;  %v1588_v6 = vadd.f32 %v1587_v57, %v1480_v51  ;;  %v4153_v57 = vld [vmem:[%s5327_s7 + $0x198] sm:$0xff] }
 0x241   : > { %v1488_v13 = vpop.f32.mrf.mxu0  ;;  %2668 = vmatpush.bf16.msrb.mxu0 %v4153_v57 }
 0x242   : > { %2420 = vmatmul.bf16.gmra.mxu2 %v4810_v58 }
 0x243   : > { %2796 = vmatpush.bf16.msrb.mxu1 %v4164_v60 }
 0x244   : > { %1944 = vmatmul.bf16.gmra.mxu3 %v4810_v58 }
 0x245   : > { %v1710_v61 = vpop.f32.mrf.mxu2 }
 0x246   : > { %v1748_v40 = vadd.f32 %v1710_v61, %v1586_v49  ;;  %v4170_v61 = vld [vmem:[%s5327_s7 + $0x220] sm:$0xff] }
 0x247   : > { %v1590_v63 = vpop.f32.mrf.mxu1  ;;  %v1791_v0 = vld [vmem:[#allocation2 + $0x50] sm:$0xff]  ;;  %2929 = vmatpush.bf16.msrb.mxu2 %v4170_v61 }
 0x248   : > { %v1810_v1 = vld [vmem:[#allocation2 + $0x4a] sm:$0xff]  ;;  %v1811_v2 = vld [vmem:[#allocation2 + $0x52] sm:$0xff]  ;;  %1772 = vst [vmem:[#allocation2 + $0x61] sm:$0xff] %v1748_v40  ;;  %v4817_v3 = vpack.c.bf16 %v1791_v0, %v1790_v62  ;;  %v1591_v11 = vadd.f32 %v1590_v63, %v1483_v59 }
 0x249   : > { %v4820_v4 = vpack.c.bf16 %v1811_v2, %v1810_v1  ;;  %v1490_v29 = vpop.f32.mrf.mxu0  ;;  %v4152_v62 = vld [vmem:[%s5327_s7 + $0x190] sm:$0xff]  ;;  %v4163_v1 = vld [vmem:[%s5327_s7 + $0x1e8] sm:$0xff]  ;;  %v4169_v2 = vld [vmem:[%s5327_s7 + $0x218] sm:$0xff] }
 0x24a   : > { %2289 = vmatmul.bf16.gmra.mxu1 %v4817_v3  ;;  %2669 = vmatpush.bf16.msrb.mxu0 %v4152_v62 }
 0x24b   : > { %2797 = vmatpush.bf16.msrb.mxu1 %v4163_v1  ;;  %2930 = vmatpush.bf16.msrb.mxu2 %v4169_v2  ;;  %v1784_v1 = vld [vmem:[#allocation2] sm:$0xff] }
 0x24c   : > { %2163 = vmatmul.bf16.gmra.mxu0 %v4820_v4 }
 0x24d   : > { %v1712_v8 = vpop.f32.mrf.mxu2 }
 0x24e   : > { %v1749_v7 = vadd.f32 %v1712_v8, %v1588_v6  ;;  %v4151_v6 = vld [vmem:[%s5327_s7 + $0x188] sm:$0xff] }
 0x24f   : > { %v1592_v9 = vpop.f32.mrf.mxu1  ;;  %v1792_v19 = vld [vmem:[#allocation2 + $0x60] sm:$0xff]  ;;  %2670 = vmatpush.bf16.msrb.mxu0 %v4151_v6  ;;  %2931 = vmatpush.bf16.msrb.mxu2 %v4168_v12  ;;  %v4147_v6 = vld [vmem:[%s5327_s7 + $0x168] sm:$0xff] }
 0x250   : > { %1773 = vst [vmem:[#allocation2 + $0x69] sm:$0xff] %v1749_v7  ;;  %v4823_v10 = vpack.c.bf16 %v1749_v7, %v1748_v40  ;;  %v1593_v26 = vadd.f32 %v1592_v9, %v1485_v5  ;;  %v4149_v7 = vld [vmem:[%s5327_s7 + $0x178] sm:$0xff] }
 0x251   : > { %v1493_v48 = vpop.f32.mrf.mxu0  ;;  %2533 = vmatpush.bf16.msrb.mxu3 %v4149_v7 }
 0x252   : > { %2425 = vmatmul.bf16.gmra.mxu2 %v4823_v10 }
 0x253   : > { %2932 = vmatpush.bf16.msrb.mxu2 %v4167_v25 }
 0x254   : > { %1949 = vmatmul.bf16.gmra.mxu3 %v4823_v10 }
 0x255   : > { %v1715_v14 = vpop.f32.mrf.mxu2  ;;  %2534 = vmatpush.bf16.msrb.mxu3 %v4148_v43  ;;  %v4143_v43 = vld [vmem:[%s5327_s7 + $0x148] sm:$0xff] }
 0x256   : > { %v1750_v15 = vadd.f32 %v1715_v14, %v1591_v11  ;;  %v4162_v11 = vld [vmem:[%s5327_s7 + $0x1e0] sm:$0xff] }
 0x257   : > { %v1595_v17 = vpop.f32.mrf.mxu1  ;;  %v1793_v18 = vld [vmem:[#allocation2 + $0x68] sm:$0xff]  ;;  %2798 = vmatpush.bf16.msrb.mxu1 %v4162_v11  ;;  %2933 = vmatpush.bf16.msrb.mxu2 %v4166_v16 }
 0x258   : > { %v1812_v20 = vld [vmem:[#allocation2 + $0x62] sm:$0xff]  ;;  %v1813_v21 = vld [vmem:[#allocation2 + $0x6a] sm:$0xff]  ;;  %1774 = vst [vmem:[#allocation2 + $0x79] sm:$0xff] %v1750_v15  ;;  %v4830_v22 = vpack.c.bf16 %v1793_v18, %v1792_v19  ;;  %v1596_v37 = vadd.f32 %v1595_v17, %v1488_v13 }
 0x259   : > { %v4833_v24 = vpack.c.bf16 %v1813_v21, %v1812_v20  ;;  %v1495_v5 = vpop.f32.mrf.mxu0  ;;  %v4150_v20 = vld [vmem:[%s5327_s7 + $0x180] sm:$0xff]  ;;  %v4161_v21 = vld [vmem:[%s5327_s7 + $0x1d8] sm:$0xff]  ;;  %2535 = vmatpush.bf16.msrb.mxu3 %v4147_v6 }
 0x25a   : > { %2294 = vmatmul.bf16.gmra.mxu1 %v4830_v22  ;;  %2671 = vmatpush.bf16.msrb.mxu0 %v4150_v20 }
 0x25b   : > { %2799 = vmatpush.bf16.msrb.mxu1 %v4161_v21 }
 0x25c   : > { %2168 = vmatmul.bf16.gmra.mxu0 %v4833_v24 }
 0x25d   : > { %v1717_v27 = vpop.f32.mrf.mxu2 }
 0x25e   : > { %v1751_v28 = vadd.f32 %v1717_v27, %v1593_v26 }
 0x25f   : > { %v1597_v30 = vpop.f32.mrf.mxu1  ;;  %v1794_v45 = vld [vmem:[#allocation2 + $0x78] sm:$0xff]  ;;  %2800 = vmatpush.bf16.msrb.mxu1 %v4160_v31 }
 0x260   : > { %1775 = vst [vmem:[#allocation2 + $0x81] sm:$0xff] %v1751_v28  ;;  %v4842_v33 = vpack.c.bf16 %v1751_v28, %v1750_v15  ;;  %v1598_v59 = vadd.f32 %v1597_v30, %v1490_v29 }
 0x261   : > { %v1498_v29 = vpop.f32.mrf.mxu0 }
 0x262   : > { %2430 = vmatmul.bf16.gmra.mxu2 %v4842_v33 }
 0x263   : > { %2801 = vmatpush.bf16.msrb.mxu1 %v4159_v38 }
 0x264   : > { %1954 = vmatmul.bf16.gmra.mxu3 %v4842_v33 }
 0x265   : > { %v1720_v41 = vpop.f32.mrf.mxu2 }
 0x266   : > { %v1752_v44 = vadd.f32 %v1720_v41, %v1596_v37 }
 0x267   : > { %v1600_v47 = vpop.f32.mrf.mxu1  ;;  %v1795_v50 = vld [vmem:[#allocation2 + $0x80] sm:$0xff] }
 0x268   : > { %v1814_v51 = vld [vmem:[#allocation2 + $0x7a] sm:$0xff]  ;;  %v1815_v52 = vld [vmem:[#allocation2 + $0x82] sm:$0xff]  ;;  %1776 = vst [vmem:[#allocation2 + $0x91] sm:$0xff] %v1752_v44  ;;  %v4858_v53 = vpack.c.bf16 %v1795_v50, %v1794_v45  ;;  %v1601_v8 = vadd.f32 %v1600_v47, %v1493_v48 }
 0x269   : > { %v4870_v39 = vpack.c.bf16 %v1815_v52, %v1814_v51  ;;  %v4158_v47 = vld [vmem:[%s5327_s7 + $0x1c0] sm:$0xff]  ;;  %v1500_v52 = vpop.f32.mrf.mxu0 }
 0x26a   : > { %2299 = vmatmul.bf16.gmra.mxu1 %v4858_v53 }
 0x26b   : > { %2802 = vmatpush.bf16.msrb.mxu1 %v4158_v47 }
 0x26c   : > { %2173 = vmatmul.bf16.gmra.mxu0 %v4870_v39 }
 0x26d   : > { %v1722_v49 = vpop.f32.mrf.mxu2 }
 0x26e   : > { %v1753_v40 = vadd.f32 %v1722_v49, %v1598_v59 }
 0x26f   : > { %v1602_v0 = vpop.f32.mrf.mxu1  ;;  %v1796_v14 = vld [vmem:[#allocation2 + $0x90] sm:$0xff] }
 0x270   : > { %1777 = vst [vmem:[#allocation2 + $0x99] sm:$0xff] %v1753_v40  ;;  %v4885_v63 = vpack.c.bf16 %v1753_v40, %v1752_v44  ;;  %v1603_v28 = vadd.f32 %v1602_v0, %v1495_v5  ;;  %v1785_v40 = vld [vmem:[#allocation2 + $0x8] sm:$0xff] }
 0x271   : > { %v1503_v0 = vpop.f32.mrf.mxu0  ;;  %v1840_v2 = vpack.c.bf16 %v1785_v40, %v1784_v1 }
 0x272   : > { %2435 = vmatmul.bf16.gmra.mxu2 %v4885_v63 }
 0x274   : > { %1959 = vmatmul.bf16.gmra.mxu3 %v4885_v63 }
 0x275   : > { %v1725_v9 = vpop.f32.mrf.mxu2 }
 0x276   : > { %v1754_v13 = vadd.f32 %v1725_v9, %v1601_v8 }
 0x277   : > { %v1797_v15 = vld [vmem:[#allocation2 + $0x98] sm:$0xff]  ;;  %v1605_v27 = vpop.f32.mrf.mxu1 }
 0x278   : > { %v1816_v19 = vld [vmem:[#allocation2 + $0x92] sm:$0xff]  ;;  %v1817_v17 = vld [vmem:[#allocation2 + $0x9a] sm:$0xff]  ;;  %1778 = vst [vmem:[#allocation2 + $0xa9] sm:$0xff] %v1754_v13  ;;  %v4907_v18 = vpack.c.bf16 %v1797_v15, %v1796_v14  ;;  %v1606_v41 = vadd.f32 %v1605_v27, %v1498_v29 }
 0x279   : > { %v4919_v26 = vpack.c.bf16 %v1817_v17, %v1816_v19  ;;  %v1505_v19 = vpop.f32.mrf.mxu0  ;;  %v4146_v29 = vld [vmem:[%s5327_s7 + $0x160] sm:$0xff] }
 0x27a   : > { %2304 = vmatmul.bf16.gmra.mxu1 %v4907_v18  ;;  %2536 = vmatpush.bf16.msrb.mxu3 %v4146_v29 }
 0x27c   : > { %2178 = vmatmul.bf16.gmra.mxu0 %v4919_v26 }
 0x27d   : > { %v1727_v30 = vpop.f32.mrf.mxu2 }
 0x27e   : > { %v1755_v36 = vadd.f32 %v1727_v30, %v1603_v28 }
 0x27f   : > { %v1607_v44 = vpop.f32.mrf.mxu1  ;;  %v1798_v51 = vld [vmem:[#allocation2 + $0xa8] sm:$0xff] }
 0x280   : > { %1779 = vst [vmem:[#allocation2 + $0xb1] sm:$0xff] %v1755_v36  ;;  %v4928_v37 = vpack.c.bf16 %v1755_v36, %v1754_v13  ;;  %v1608_v59 = vadd.f32 %v1607_v44, %v1500_v52  ;;  %v4142_v52 = vld [vmem:[%s5327_s7 + $0x140] sm:$0xff] }
 0x282   : > { %2440 = vmatmul.bf16.gmra.mxu2 %v4928_v37 }
 0x284   : > { %1964 = vmatmul.bf16.gmra.mxu3 %v4928_v37 }
 0x285   : > { %v1730_v45 = vpop.f32.mrf.mxu2 }
 0x286   : > { %v1756_v50 = vadd.f32 %v1730_v45, %v1606_v41 }
 0x287   : > { %v1799_v32 = vld [vmem:[#allocation2 + $0xb0] sm:$0xff]  ;;  %v1610_v61 = vpop.f32.mrf.mxu1 }
 0x288   : > { %v1818_v48 = vld [vmem:[#allocation2 + $0xaa] sm:$0xff]  ;;  %v1819_v56 = vld [vmem:[#allocation2 + $0xb2] sm:$0xff]  ;;  %1780 = vst [vmem:[#allocation2 + $0xc1] sm:$0xff] %v1756_v50  ;;  %v4941_v23 = vpack.c.bf16 %v1799_v32, %v1798_v51  ;;  %v1611_v5 = vadd.f32 %v1610_v61, %v1503_v0 }
 0x289   : > { %v4944_v57 = vpack.c.bf16 %v1819_v56, %v1818_v48 }
 0x28a   : > { %2309 = vmatmul.bf16.gmra.mxu1 %v4941_v23 }
 0x28c   : > { %2183 = vmatmul.bf16.gmra.mxu0 %v4944_v57 }
 0x28d   : > { %v1732_v49 = vpop.f32.mrf.mxu2 }
 0x28e   : > { %v1757_v60 = vadd.f32 %v1732_v49, %v1608_v59 }
 0x28f   : > { %v1800_v11 = vld [vmem:[#allocation2 + $0xc0] sm:$0xff]  ;;  %v1612_v15 = vpop.f32.mrf.mxu1 }
 0x290   : > { %1781 = vst [vmem:[#allocation2 + $0xc9] sm:$0xff] %v1757_v60  ;;  %v4947_v62 = vpack.c.bf16 %v1757_v60, %v1756_v50  ;;  %v1613_v17 = vadd.f32 %v1612_v15, %v1505_v19 }
 0x292   : > { %2445 = vmatmul.bf16.gmra.mxu2 %v4947_v62 }
 0x294   : > { %2026 = vmatmul.bf16.vlgmr.msra.gmra.mxu3 %v1840_v2 }
 0x295   : > { %v1735_v8 = vpop.f32.mrf.mxu2 }
 0x296   : > { %v1758_v7 = vadd.f32 %v1735_v8, %v1611_v5 }
 0x297   : > { %v4953_v9 = vpop.f32.mrf.mxu3  ;;  %v1801_v12 = vld [vmem:[#allocation2 + $0xc8] sm:$0xff] }
 0x298   : > { %v4956_v13 = vmul.f32 %v1758_v7, %v4645_v46  ;;  %v4958_v14 = vpack.c.bf16 %v1801_v12, %v1800_v11  ;;  %v1820_v40 = vld [vmem:[#allocation2 + $0xc2] sm:$0xff]  ;;  %v1821_v0 = vld [vmem:[#allocation2 + $0xca] sm:$0xff] }
 0x299   : > { %v4998_v16 = vpop.f32.mrf.mxu0  ;;  %v5068_v5 = vpack.c.bf16 %v1821_v0, %v1820_v40 }
 0x29a   : > { %1782 = vst [vmem:[#allocation2 + $0xd9] sm:$0xff] %v4956_v13  ;;  %2314 = vmatmul.bf16.gmra.mxu1 %v4958_v14 }
 0x29c   : > { %2672 = vmatmul.bf16.vlgmr.msrb.gmra.mxu0 %v4804_v54 }
 0x29d   : > { %v1737_v20 = vpop.f32.mrf.mxu2 }
 0x29e   : > { %v1759_v21 = vadd.f32 %v1737_v20, %v1613_v17 }
 0x29f   : > { %v4963_v25 = vpop.f32.mrf.mxu3 }
 0x2a0   : > { %v4966_v27 = vmul.f32 %v1759_v21, %v4645_v46 }
 0x2a1   : > { %v5008_v41 = vpop.f32.mrf.mxu0  ;;  %v1802_v11 = vld [vmem:[#allocation2 + $0xd8] sm:$0xff] }
 0x2a2   : > { %1783 = vst [vmem:[#allocation2 + $0xe1] sm:$0xff] %v4966_v27  ;;  %2934 = vmatmul.bf16.vlgmr.msrb.gmra.mxu2 %v4807_v55  ;;  %v2746_v28 = vpack.c.bf16 %v4966_v27, %v4956_v13 }
 0x2a4   : > { %2031 = vmatmul.bf16.gmra.mxu3 %v4791_v34  ;;  %v4145_v34 = vld [vmem:[%s5327_s7 + $0x158] sm:$0xff] }
 0x2a5   : > { %2537 = vmatpush.bf16.msrb.mxu3 %v4145_v34 }
 0x2a7   : > { %v4976_v30 = vpop.f32.mrf.mxu3 }
 0x2a9   : > { %v5021_v45 = vpop.f32.mrf.mxu0  ;;  %v1803_v8 = vld [vmem:[#allocation2 + $0xe0] sm:$0xff] }
 0x2aa   : > { %2803 = vmatmul.bf16.vlgmr.msrb.gmra.mxu1 %v4797_v42  ;;  %v2615_v12 = vpack.c.bf16 %v1803_v8, %v1802_v11  ;;  %v1822_v15 = vld [vmem:[#allocation2 + $0xda] sm:$0xff]  ;;  %v1823_v19 = vld [vmem:[#allocation2 + $0xe2] sm:$0xff] }
 0x2ac   : > { %2677 = vmatmul.bf16.gmra.mxu0 %v4817_v3 }
 0x2af   : > { %v4980_v46 = vpop.f32.mrf.mxu3 }
 0x2b1   : > { %v5032_v51 = vpop.f32.mrf.mxu0 }
 0x2b2   : > { %2939 = vmatmul.bf16.gmra.mxu2 %v4820_v4 }
 0x2b4   : > { %2036 = vmatmul.bf16.gmra.mxu3 %v4804_v54  ;;  %v4144_v54 = vld [vmem:[%s5327_s7 + $0x150] sm:$0xff] }
 0x2b5   : > { %2538 = vmatpush.bf16.msrb.mxu3 %v4144_v54 }
 0x2b7   : > { %v4987_v31 = vpop.f32.mrf.mxu3 }
 0x2b9   : > { %2539 = vmatpush.bf16.msrb.mxu3 %v4143_v43  ;;  %v5046_v56 = vpop.f32.mrf.mxu0 }
 0x2ba   : > { %2808 = vmatmul.bf16.gmra.mxu1 %v4810_v58  ;;  %v5003_v58 = vpop.f32.mrf.mxu2 }
 0x2bc   : > { %2682 = vmatmul.bf16.gmra.mxu0 %v4830_v22 }
 0x2bd   : > { %2540 = vmatpush.bf16.msrb.mxu3 %v4142_v52 }
 0x2bf   : > { %v4991_v42 = vpop.f32.mrf.mxu3 }
 0x2c1   : > { %v5058_v61 = vpop.f32.mrf.mxu0 }
 0x2c2   : > { %2944 = vmatmul.bf16.gmra.mxu2 %v4833_v24  ;;  %v5017_v44 = vpop.f32.mrf.mxu2 }
 0x2c4   : > { %2041 = vmatmul.bf16.gmra.mxu3 %v4817_v3  ;;  %v5011_v3 = vpop.f32.mrf.mxu1 }
 0x2c7   : > { %v5000_v36 = vpop.f32.mrf.mxu3 }
 0x2c9   : > { %v5070_v6 = vpop.f32.mrf.mxu0 }
 0x2ca   : > { %2813 = vmatmul.bf16.gmra.mxu1 %v4823_v10 }
 0x2cc   : > { %2687 = vmatmul.bf16.gmra.mxu0 %v4858_v53  ;;  %v5025_v47 = vpop.f32.mrf.mxu1 }
 0x2cf   : > { %v5006_v38 = vpop.f32.mrf.mxu3 }
 0x2d2   : > { %2949 = vmatmul.bf16.gmra.mxu2 %v4870_v39 }
 0x2d4   : > { %2046 = vmatmul.bf16.gmra.mxu3 %v4830_v22  ;;  %v5029_v22 = vpop.f32.mrf.mxu2  ;;  %v5040_v32 = vpop.f32.mrf.mxu1 }
 0x2d7   : > { %v5019_v10 = vpop.f32.mrf.mxu3 }
 0x2da   : > { %2818 = vmatmul.bf16.gmra.mxu1 %v4842_v33 }
 0x2dc   : > { %2692 = vmatmul.bf16.gmra.mxu0 %v4907_v18  ;;  %v5042_v48 = vpop.f32.mrf.mxu2 }
 0x2df   : > { %v5027_v50 = vpop.f32.mrf.mxu3 }
 0x2e2   : > { %2954 = vmatmul.bf16.gmra.mxu2 %v4919_v26 }
 0x2e4   : > { %2051 = vmatmul.bf16.gmra.mxu3 %v4858_v53  ;;  %v5050_v53 = vpop.f32.mrf.mxu1  ;;  %v5053_v49 = vpop.f32.mrf.mxu2 }
 0x2e7   : > { %v5038_v33 = vpop.f32.mrf.mxu3 }
 0x2e8   : > { %5334 = vst [vmem:[#allocation4_spill] sm:$0xff] %v5038_v33 }
 0x2ea   : > { %2823 = vmatmul.bf16.gmra.mxu1 %v4885_v63 }
 0x2ec   : > { %2697 = vmatmul.bf16.gmra.mxu0 %v4941_v23  ;;  %v5061_v63 = vpop.f32.mrf.mxu1  ;;  %v5064_v1 = vpop.f32.mrf.mxu2 }
 0x2ef   : > { %v5048_v59 = vpop.f32.mrf.mxu3 }
 0x2f0   : > { %5335 = vst [vmem:[#allocation5_spill] sm:$0xff] %v5048_v59 }
 0x2f2   : > { %2959 = vmatmul.bf16.gmra.mxu2 %v4944_v57 }
 0x2f4   : > { %2056 = vmatmul.bf16.gmra.mxu3 %v4907_v18  ;;  %v5074_v18 = vpop.f32.mrf.mxu1  ;;  %v5078_v7 = vpop.f32.mrf.mxu2 }
 0x2f7   : > { %v5056_v60 = vpop.f32.mrf.mxu3 }
 0x2f8   : > { %5336 = vst [vmem:[#allocation6_spill] sm:$0xff] %v5056_v60 }
 0x2fa   : > { %2828 = vmatmul.bf16.gmra.mxu1 %v4928_v37 }
 0x2fc   : > { %2702 = vmatmul.bf16.gmra.mxu0 %v4958_v14  ;;  %v5081_v14 = vpop.f32.mrf.mxu0  ;;  %v5085_v20 = vpop.f32.mrf.mxu1 }
 0x2fd   : > { %v5087_v21 = vpop.f32.mrf.mxu2 }
 0x2ff   : > { %v5066_v2 = vpop.f32.mrf.mxu3 }
 0x300   : > { %5337 = vst [vmem:[#allocation7_spill] sm:$0xff] %v5066_v2 }
 0x302   : > { %2964 = vmatmul.bf16.gmra.mxu2 %v5068_v5 }
 0x304   : > { %2061 = vmatmul.bf16.gmra.mxu3 %v4941_v23  ;;  %v2877_v23 = vpack.c.bf16 %v1823_v19, %v1822_v15  ;;  %v5090_v34 = vpop.f32.mrf.mxu1  ;;  %v5096_v43 = vpop.f32.mrf.mxu0 }
 0x305   : > { %v5100_v40 = vpop.f32.mrf.mxu2 }
 0x306   : > { %5340 = vst [vmem:[#allocation10_spill] sm:$0xff] %v5100_v40 }
 0x307   : > { %v5076_v37 = vpop.f32.mrf.mxu3 }
 0x308   : > { %5338 = vst [vmem:[#allocation8_spill] sm:$0xff] %v5076_v37 }
 0x30a   : > { %2833 = vmatmul.bf16.gmra.mxu1 %v4947_v62 }
 0x30c   : > { %2707 = vmatmul.bf16.gmra.mxu0 %v2615_v12  ;;  %v5098_v52 = vpop.f32.mrf.mxu1 }
 0x30d   : > { %v5111_v27 = vpop.f32.mrf.mxu2 }
 0x30e   : > { %5343 = vst [vmem:[#allocation13_spill] sm:$0xff] %v5111_v27 }
 0x30f   : > { %v5083_v17 = vpop.f32.mrf.mxu3 }
 0x310   : > { %5339 = vst [vmem:[#allocation9_spill] sm:$0xff] %v5083_v17 }
 0x312   : > { %2969 = vmatmul.bf16.gmra.mxu2 %v2877_v23 }
 0x314   : > { %2541 = vmatmul.bf16.vlgmr.msrb.gmra.mxu3 %v4794_v35  ;;  %v5105_v35 = vpop.f32.mrf.mxu0  ;;  %v5107_v8 = vpop.f32.mrf.mxu1 }
 0x315   : > { %5341 = vst [vmem:[#allocation11_spill] sm:$0xff] %v5105_v35  ;;  %v5119_v12 = vpop.f32.mrf.mxu2 }
 0x316   : > { %5342 = vst [vmem:[#allocation12_spill] sm:$0xff] %v5107_v8 }
 0x317   : > { %v2027_v29 = vpop.f32.mrf.mxu3  ;;  %5346 = vst [vmem:[#allocation16_spill] sm:$0xff] %v5119_v12 }
 0x31a   : > { %2838 = vmatmul.bf16.gmra.mxu1 %v2746_v28 }
 0x31c   : > { %v5117_v11 = vpop.f32.mrf.mxu1 }
 0x31d   : > { %5345 = vst [vmem:[#allocation15_spill] sm:$0xff] %v5117_v11  ;;  %v5128_v23 = vpop.f32.mrf.mxu2 }
 0x31e   : > { %5349 = vst [vmem:[#allocation19_spill] sm:$0xff] %v5128_v23 }
 0x31f   : > { %v2029_v62 = vpop.f32.mrf.mxu3 }
 0x324   : > { %2546 = vmatmul.bf16.gmra.mxu3 %v4807_v55  ;;  %v5113_v55 = vpop.f32.mrf.mxu0  ;;  %v5126_v19 = vpop.f32.mrf.mxu1 }
 0x325   : > { %5344 = vst [vmem:[#allocation14_spill] sm:$0xff] %v5113_v55  ;;  %v5137_v60 = vpop.f32.mrf.mxu2 }
 0x326   : > { %5348 = vst [vmem:[#allocation18_spill] sm:$0xff] %v5126_v19 }
 0x327   : > { %v2032_v54 = vpop.f32.mrf.mxu3  ;;  %5352 = vst [vmem:[#allocation22_spill] sm:$0xff] %v5137_v60 }
 0x32c   : > { %v5135_v2 = vpop.f32.mrf.mxu1 }
 0x32d   : > { %5351 = vst [vmem:[#allocation21_spill] sm:$0xff] %v5135_v2  ;;  %v5147_v19 = vpop.f32.mrf.mxu2 }
 0x32e   : > { %5356 = vst [vmem:[#allocation26_spill] sm:$0xff] %v5147_v19 }
 0x32f   : > { %v5102_v0 = vpop.f32.mrf.mxu3 }
 0x334   : > { %2551 = vmatmul.bf16.gmra.mxu3 %v4820_v4  ;;  %v5124_v4 = vpop.f32.mrf.mxu0  ;;  %v5143_v59 = vpop.f32.mrf.mxu1 }
 0x335   : > { %5347 = vst [vmem:[#allocation17_spill] sm:$0xff] %v5124_v4  ;;  %v5156_v2 = vpop.f32.mrf.mxu2 }
 0x336   : > { %5354 = vst [vmem:[#allocation24_spill] sm:$0xff] %v5143_v59 }
 0x337   : > { %v5109_v13 = vpop.f32.mrf.mxu3  ;;  %5360 = vst [vmem:[#allocation30_spill] sm:$0xff] %v5156_v2 }
 0x33c   : > { %v5132_v37 = vpop.f32.mrf.mxu0 }
 0x33d   : > { %5350 = vst [vmem:[#allocation20_spill] sm:$0xff] %v5132_v37  ;;  %v5165_v59 = vpop.f32.mrf.mxu2 }
 0x33e   : > { %5364 = vst [vmem:[#allocation34_spill] sm:$0xff] %v5165_v59 }
 0x33f   : > { %v5115_v28 = vpop.f32.mrf.mxu3 }
 0x344   : > { %2556 = vmatmul.bf16.gmra.mxu3 %v4833_v24  ;;  %v5141_v24 = vpop.f32.mrf.mxu0 }
 0x345   : > { %5353 = vst [vmem:[#allocation23_spill] sm:$0xff] %v5141_v24  ;;  %v2935_v27 = vpop.f32.mrf.mxu2 }
 0x347   : > { %v5122_v15 = vpop.f32.mrf.mxu3 }
 0x34c   : > { %v5150_v23 = vpop.f32.mrf.mxu0 }
 0x34d   : > { %5357 = vst [vmem:[#allocation27_spill] sm:$0xff] %v5150_v23 }
 0x34f   : > { %v5130_v17 = vpop.f32.mrf.mxu3 }
 0x354   : > { %2561 = vmatmul.bf16.gmra.mxu3 %v4870_v39  ;;  %v5154_v39 = vpop.f32.mrf.mxu1  ;;  %v5160_v11 = vpop.f32.mrf.mxu0 }
 0x355   : > { %5359 = vst [vmem:[#allocation29_spill] sm:$0xff] %v5154_v39 }
 0x356   : > { %5362 = vst [vmem:[#allocation32_spill] sm:$0xff] %v5160_v11  ;;  %v2937_v11 = vpop.f32.mrf.mxu2 }
 0x357   : > { %v5139_v12 = vpop.f32.mrf.mxu3 }
 0x35c   : > { %v5162_v24 = vpop.f32.mrf.mxu1 }
 0x35d   : > { %5363 = vst [vmem:[#allocation33_spill] sm:$0xff] %v5162_v24  ;;  %v2028_v24 = vadd.f32 %v2027_v29, %v4953_v9  ;;  %v2033_v9 = vadd.f32 %v2032_v54, %v4976_v30 }
 0x35f   : > { %v5145_v4 = vpop.f32.mrf.mxu3 }
 0x360   : > { %5355 = vst [vmem:[#allocation25_spill] sm:$0xff] %v5145_v4 }
 0x364   : > { %2566 = vmatmul.bf16.gmra.mxu3 %v4919_v26  ;;  %v2673_v26 = vpop.f32.mrf.mxu0  ;;  %v2804_v23 = vpop.f32.mrf.mxu1 }
 0x367   : > { %v5152_v37 = vpop.f32.mrf.mxu3 }
 0x368   : > { %5358 = vst [vmem:[#allocation28_spill] sm:$0xff] %v5152_v37  ;;  %v2030_v37 = vadd.f32 %v2029_v62, %v4963_v25  ;;  %v5187_v25 = vld [vmem:[%s5328_s8] ss:$0 sm:$0xff] }
 0x36c   : > { %v2675_v2 = vpop.f32.mrf.mxu0  ;;  %v2806_v39 = vpop.f32.mrf.mxu1 }
 0x36f   : > { %v5158_v60 = vpop.f32.mrf.mxu3 }
 0x370   : > { %5361 = vst [vmem:[#allocation31_spill] sm:$0xff] %v5158_v60 }
 0x374   : > { %2571 = vmatmul.bf16.gmra.mxu3 %v4944_v57  ;;  %v2189_v57 = vadd.f32 %v4998_v16, %v2028_v24  ;;  %v2678_v8 = vpop.f32.mrf.mxu0 }
 0x376   : > { %v2320_v33 = vadd.f32 %v5011_v3, %v2189_v57 }
 0x377   : > { %v5167_v19 = vpop.f32.mrf.mxu3 }
 0x378   : > { %5365 = vst [vmem:[#allocation35_spill] sm:$0xff] %v5167_v19  ;;  %v2809_v19 = vpop.f32.mrf.mxu1  ;;  %v2451_v40 = vadd.f32 %v5003_v58, %v2320_v33 }
 0x37c   : > { %v2680_v4 = vpop.f32.mrf.mxu0 }
 0x37f   : > { %v5169_v55 = vpop.f32.mrf.mxu3 }
 0x380   : > { %5366 = vst [vmem:[#allocation36_spill] sm:$0xff] %v5169_v55  ;;  %v2940_v55 = vpop.f32.mrf.mxu2  ;;  %v2811_v24 = vpop.f32.mrf.mxu1 }
 0x384   : > { %2576 = vmatmul.bf16.gmra.mxu3 %v5068_v5  ;;  %v2190_v5 = vadd.f32 %v5008_v41, %v2030_v37  ;;  %v2191_v41 = vadd.f32 %v5021_v45, %v2033_v9 }
 0x386   : > { %v2321_v29 = vadd.f32 %v5025_v47, %v2190_v5 }
 0x387   : > { %v5172_v60 = vpop.f32.mrf.mxu3 }
 0x388   : > { %5367 = vst [vmem:[#allocation37_spill] sm:$0xff] %v5172_v60  ;;  %v2942_v3 = vpop.f32.mrf.mxu2  ;;  %v2452_v58 = vadd.f32 %v5017_v44, %v2321_v29  ;;  %v2683_v44 = vpop.f32.mrf.mxu0 }
 0x38f   : > { %v5176_v59 = vpop.f32.mrf.mxu3 }
 0x390   : > { %5368 = vst [vmem:[#allocation38_spill] sm:$0xff] %v5176_v59 }
 0x397   : > { %v2542_v60 = vpop.f32.mrf.mxu3 }
 0x398   : > { %v2582_v35 = vadd.f32 %v2542_v60, %v2451_v40  ;;  %v2035_v60 = vadd.f32 %v5102_v0, %v4980_v46  ;;  %v2814_v40 = vpop.f32.mrf.mxu1  ;;  %v2038_v46 = vadd.f32 %v5109_v13, %v4987_v31 }
 0x39a   : > { %v2713_v16 = vadd.f32 %v2673_v26, %v2582_v35  ;;  %v2192_v54 = vadd.f32 %v5032_v51, %v2035_v60 }
 0x39c   : > { %v2844_v59 = vadd.f32 %v2804_v23, %v2713_v16  ;;  %v2945_v23 = vpop.f32.mrf.mxu2  ;;  %v2685_v16 = vpop.f32.mrf.mxu0 }
 0x39e   : > { %v2975_v37 = vadd.f32 %v2935_v27, %v2844_v59  ;;  %v2322_v59 = vadd.f32 %v5040_v32, %v2191_v41 }
 0x39f   : > { %v2544_v30 = vpop.f32.mrf.mxu3 }
 0x3a0   : > { %v2995_v47 = vadd.f32 %v5187_v25, %v2975_v37  ;;  %v2583_v33 = vadd.f32 %v2544_v30, %v2452_v58  ;;  %v2453_v27 = vadd.f32 %v5029_v22, %v2322_v59  ;;  %v2193_v22 = vadd.f32 %v5046_v56, %v2038_v46  ;;  %v2816_v37 = vpop.f32.mrf.mxu1 }
 0x3a2   : > { %3011 = vst [vmem:[%s5196_s23] sm:$0xff] %v2995_v47  ;;  %v2714_v45 = vadd.f32 %v2675_v2, %v2583_v33  ;;  %v2323_v2 = vadd.f32 %v5050_v53, %v2192_v54  ;;  %v3049_v0 = vmul.f32 %v2995_v47, %v2995_v47  ;;  %v2324_v30 = vadd.f32 %v5061_v63, %v2193_v22 }
 0x3a4   : > { %v2845_v62 = vadd.f32 %v2806_v39, %v2714_v45  ;;  %v2454_v41 = vadd.f32 %v5042_v48, %v2323_v2  ;;  %v2947_v53 = vpop.f32.mrf.mxu2  ;;  %v2455_v45 = vadd.f32 %v5053_v49, %v2324_v30  ;;  %v2688_v59 = vpop.f32.mrf.mxu0 }
 0x3a6   : > { %v2976_v35 = vadd.f32 %v2937_v11, %v2845_v62 }
 0x3a7   : > { %v2547_v26 = vpop.f32.mrf.mxu3 }
 0x3a8   : > { %v2996_v57 = vadd.f32 %v5187_v25, %v2976_v35  ;;  %v2584_v5 = vadd.f32 %v2547_v26, %v2453_v27 }
 0x3aa   : > { %3012 = vst [vmem:[%s5196_s23 + $0x8] sm:$0xff] %v2996_v57  ;;  %v3027_v32 = vadd.f32 %v2996_v57, %v2995_v47  ;;  %v3050_v39 = vmul.f32 %v2996_v57, %v2996_v57  ;;  %v2715_v51 = vadd.f32 %v2678_v8, %v2584_v5  ;;  %v2040_v47 = vadd.f32 %v5115_v28, %v4991_v42  ;;  %v2819_v28 = vpop.f32.mrf.mxu1 }
 0x3ab   : > { %v2043_v42 = vadd.f32 %v5122_v15, %v5000_v36 }
 0x3ac   : > { %v3065_v9 = vadd.f32 %v3050_v39, %v3049_v0  ;;  %v2846_v11 = vadd.f32 %v2809_v19, %v2715_v51  ;;  %v2194_v48 = vadd.f32 %v5058_v61, %v2040_v47  ;;  %v2950_v61 = vpop.f32.mrf.mxu2  ;;  %v2690_v15 = vpop.f32.mrf.mxu0 }
 0x3ad   : > { %v2195_v49 = vadd.f32 %v5070_v6, %v2043_v42 }
 0x3ae   : > { %v2977_v29 = vadd.f32 %v2940_v55, %v2846_v11 }
 0x3af   : > { %v2549_v58 = vpop.f32.mrf.mxu3  ;;  %v2326_v0 = vadd.f32 %v5085_v20, %v2195_v49  ;;  %v5375_v49 = vld [vmem:[#allocation12_spill] sm:$0xff] }
 0x3b0   : > { %v2997_v31 = vadd.f32 %v5187_v25, %v2977_v29  ;;  %v2585_v13 = vadd.f32 %v2549_v58, %v2454_v41 }
 0x3b1   : > { %v2457_v11 = vadd.f32 %v5078_v7, %v2326_v0  ;;  %v5377_v0 = vld [vmem:[#allocation13_spill] sm:$0xff] }
 0x3b2   : > { %3013 = vst [vmem:[%s5196_s23 + $0x10] sm:$0xff] %v2997_v31  ;;  %v3028_v8 = vadd.f32 %v3027_v32, %v2997_v31  ;;  %v3051_v19 = vmul.f32 %v2997_v31, %v2997_v31  ;;  %v2716_v56 = vadd.f32 %v2680_v4, %v2585_v13  ;;  %v2821_v39 = vpop.f32.mrf.mxu1 }
 0x3b4   : > { %v3066_v33 = vadd.f32 %v3065_v9, %v3051_v19  ;;  %v2847_v55 = vadd.f32 %v2811_v24, %v2716_v56  ;;  %v2325_v24 = vadd.f32 %v5074_v18, %v2194_v48  ;;  %v2952_v51 = vpop.f32.mrf.mxu2  ;;  %v2693_v58 = vpop.f32.mrf.mxu0  ;;  %v5370_v56 = vld [vmem:[#allocation25_spill] sm:$0xff] }
 0x3b6   : > { %v2978_v60 = vadd.f32 %v2942_v3, %v2847_v55  ;;  %v2456_v5 = vadd.f32 %v5064_v1, %v2325_v24 }
 0x3b7   : > { %v2552_v62 = vpop.f32.mrf.mxu3 }
 0x3b8   : > { %v2998_v54 = vadd.f32 %v5187_v25, %v2978_v60  ;;  %v2586_v63 = vadd.f32 %v2552_v62, %v2455_v45 }
 0x3ba   : > { %3014 = vst [vmem:[%s5196_s23 + $0x18] sm:$0xff] %v2998_v54  ;;  %v3029_v35 = vadd.f32 %v3028_v8, %v2998_v54  ;;  %v3052_v4 = vmul.f32 %v2998_v54, %v2998_v54  ;;  %v2717_v27 = vadd.f32 %v2683_v44, %v2586_v63  ;;  %v2045_v44 = vadd.f32 %v5130_v17, %v5006_v38  ;;  %v2824_v7 = vpop.f32.mrf.mxu1  ;;  %v5372_v54 = vld [vmem:[#allocation10_spill] sm:$0xff] }
 0x3bb   : > { %v2048_v38 = vadd.f32 %v5139_v12, %v5019_v10 }
 0x3bc   : > { %v3067_v3 = vadd.f32 %v3066_v33, %v3052_v4  ;;  %v2848_v26 = vadd.f32 %v2814_v40, %v2717_v27  ;;  %v2196_v1 = vadd.f32 %v5081_v14, %v2045_v44  ;;  %v2955_v47 = vpop.f32.mrf.mxu2  ;;  %v2050_v33 = vadd.f32 %v5370_v56, %v5027_v50  ;;  %v2695_v45 = vpop.f32.mrf.mxu0  ;;  %v5373_v4 = vld [vmem:[#allocation4_spill] sm:$0xff] }
 0x3bd   : > { %v2197_v13 = vadd.f32 %v5096_v43, %v2048_v38  ;;  %v5374_v50 = vld [vmem:[#allocation28_spill] sm:$0xff] }
 0x3be   : > { %v2979_v57 = vadd.f32 %v2945_v23, %v2848_v26  ;;  %v2053_v27 = vadd.f32 %v5374_v50, %v5373_v4  ;;  %v5389_v4 = vld [vmem:[#allocation7_spill] sm:$0xff]  ;;  %v5390_v50 = vld [vmem:[#allocation36_spill] sm:$0xff] }
 0x3bf   : > { %v2554_v46 = vpop.f32.mrf.mxu3  ;;  %v2328_v19 = vadd.f32 %v5098_v52, %v2197_v13 }
 0x3c0   : > { %v2999_v2 = vadd.f32 %v5187_v25, %v2979_v57  ;;  %v2587_v36 = vadd.f32 %v2554_v46, %v2456_v5 }
 0x3c1   : > { %v2459_v63 = vadd.f32 %v5372_v54, %v2328_v19 }
 0x3c2   : > { %3015 = vst [vmem:[%s5196_s23 + $0x20] sm:$0xff] %v2999_v2  ;;  %v3030_v18 = vadd.f32 %v3029_v35, %v2999_v2  ;;  %v3053_v32 = vmul.f32 %v2999_v2, %v2999_v2  ;;  %v2718_v40 = vadd.f32 %v2685_v16, %v2587_v36  ;;  %v2826_v42 = vpop.f32.mrf.mxu1  ;;  %v5376_v2 = vld [vmem:[#allocation14_spill] sm:$0xff] }
 0x3c3   : > { %v2199_v36 = vadd.f32 %v5376_v2, %v2053_v27  ;;  %v2060_v27 = vadd.f32 %v5390_v50, %v5389_v4  ;;  %v5403_v4 = vld [vmem:[#allocation33_spill] sm:$0xff] }
 0x3c4   : > { %v3068_v6 = vadd.f32 %v3067_v3, %v3053_v32  ;;  %v2849_v23 = vadd.f32 %v2816_v37, %v2718_v40  ;;  %v2327_v37 = vadd.f32 %v5090_v34, %v2196_v1  ;;  %v2957_v24 = vpop.f32.mrf.mxu2  ;;  %v5379_v1 = vld [vmem:[#allocation5_spill] sm:$0xff] }
 0x3c6   : > { %v2980_v9 = vadd.f32 %v2947_v53, %v2849_v23  ;;  %v2458_v30 = vadd.f32 %v5087_v21, %v2327_v37  ;;  %v5378_v23 = vld [vmem:[#allocation15_spill] sm:$0xff] }
 0x3c7   : > { %v2557_v22 = vpop.f32.mrf.mxu3 }
 0x3c8   : > { %v3000_v20 = vadd.f32 %v5187_v25, %v2980_v9  ;;  %v2588_v29 = vadd.f32 %v2557_v22, %v2457_v11  ;;  %v5380_v9 = vld [vmem:[#allocation31_spill] sm:$0xff] }
 0x3c9   : > { %v2055_v11 = vadd.f32 %v5380_v9, %v5379_v1 }
 0x3ca   : > { %3016 = vst [vmem:[%s5196_s23 + $0x28] sm:$0xff] %v3000_v20  ;;  %v3031_v17 = vadd.f32 %v3030_v18, %v3000_v20  ;;  %v3054_v41 = vmul.f32 %v3000_v20, %v3000_v20  ;;  %v2719_v16 = vadd.f32 %v2688_v59, %v2588_v29  ;;  %v5371_v59 = vld [vmem:[#allocation11_spill] sm:$0xff]  ;;  %v2698_v18 = vpop.f32.mrf.mxu0 }
 0x3cb   : > { %v2198_v21 = vadd.f32 %v5371_v59, %v2050_v33  ;;  %v5385_v33 = vld [vmem:[#allocation18_spill] sm:$0xff] }
 0x3cc   : > { %v3069_v31 = vadd.f32 %v3068_v6, %v3054_v41  ;;  %v2850_v14 = vadd.f32 %v2819_v28, %v2719_v16  ;;  %v2829_v6 = vpop.f32.mrf.mxu1  ;;  %v2960_v38 = vpop.f32.mrf.mxu2  ;;  %v5381_v16 = vld [vmem:[#allocation17_spill] sm:$0xff] }
 0x3cd   : > { %v2329_v57 = vadd.f32 %v5375_v49, %v2198_v21  ;;  %v2200_v37 = vadd.f32 %v5381_v16, %v2055_v11  ;;  %v5395_v11 = vld [vmem:[#allocation24_spill] sm:$0xff] }
 0x3ce   : > { %v2981_v53 = vadd.f32 %v2950_v61, %v2850_v14 }
 0x3cf   : > { %v2559_v8 = vpop.f32.mrf.mxu3  ;;  %v2460_v44 = vadd.f32 %v5377_v0, %v2329_v57 }
 0x3d0   : > { %v3001_v10 = vadd.f32 %v5187_v25, %v2981_v53  ;;  %v2589_v12 = vadd.f32 %v2559_v8, %v2458_v30  ;;  %v5384_v8 = vld [vmem:[#allocation35_spill] sm:$0xff] }
 0x3d2   : > { %3017 = vst [vmem:[%s5196_s23 + $0x30] sm:$0xff] %v3001_v10  ;;  %v3032_v34 = vadd.f32 %v3031_v17, %v3001_v10  ;;  %v3055_v55 = vmul.f32 %v3001_v10, %v3001_v10  ;;  %v2720_v48 = vadd.f32 %v2690_v15, %v2589_v12  ;;  %v2700_v30 = vpop.f32.mrf.mxu0 }
 0x3d4   : > { %v3070_v43 = vadd.f32 %v3069_v31, %v3055_v55  ;;  %v2851_v60 = vadd.f32 %v2821_v39, %v2720_v48  ;;  %v5382_v31 = vld [vmem:[#allocation16_spill] sm:$0xff]  ;;  %v2831_v55 = vpop.f32.mrf.mxu1  ;;  %v2962_v59 = vpop.f32.mrf.mxu2 }
 0x3d6   : > { %v2982_v62 = vadd.f32 %v2952_v51, %v2851_v60  ;;  %v2330_v51 = vadd.f32 %v5378_v23, %v2199_v36  ;;  %v5386_v60 = vld [vmem:[#allocation20_spill] sm:$0xff] }
 0x3d7   : > { %v2562_v28 = vpop.f32.mrf.mxu3 }
 0x3d8   : > { %v3002_v52 = vadd.f32 %v5187_v25, %v2982_v62  ;;  %v2590_v35 = vadd.f32 %v2562_v28, %v2459_v63  ;;  %v2461_v14 = vadd.f32 %v5382_v31, %v2330_v51  ;;  %v5387_v62 = vld [vmem:[#allocation19_spill] sm:$0xff] }
 0x3da   : > { %3018 = vst [vmem:[%s5196_s23 + $0x38] sm:$0xff] %v3002_v52  ;;  %v3033_v61 = vadd.f32 %v3032_v34, %v3002_v52  ;;  %v3056_v3 = vmul.f32 %v3002_v52, %v3002_v52  ;;  %v2721_v26 = vadd.f32 %v2693_v58, %v2590_v35  ;;  %v2331_v34 = vadd.f32 %v5385_v33, %v2200_v37  ;;  %v5388_v52 = vld [vmem:[#allocation21_spill] sm:$0xff]  ;;  %v5397_v37 = vld [vmem:[#allocation26_spill] sm:$0xff] }
 0x3dc   : > { %v3071_v5 = vadd.f32 %v3070_v43, %v3056_v3  ;;  %v2852_v46 = vadd.f32 %v2824_v7, %v2721_v26  ;;  %v2462_v54 = vadd.f32 %v5387_v62, %v2331_v34  ;;  %v2703_v26 = vpop.f32.mrf.mxu0 }
 0x3de   : > { %v2983_v15 = vadd.f32 %v2955_v47, %v2852_v46  ;;  %v5383_v47 = vld [vmem:[#allocation6_spill] sm:$0xff]  ;;  %v5391_v46 = vld [vmem:[#allocation23_spill] sm:$0xff] }
 0x3df   : > { %v2564_v32 = vpop.f32.mrf.mxu3  ;;  %v2058_v10 = vadd.f32 %v5384_v8, %v5383_v47  ;;  %v2202_v2 = vadd.f32 %v5391_v46, %v2060_v27  ;;  %v5399_v8 = vld [vmem:[#allocation9_spill] sm:$0xff] }
 0x3e0   : > { %v3003_v40 = vadd.f32 %v5187_v25, %v2983_v15  ;;  %v2591_v39 = vadd.f32 %v2564_v32, %v2460_v44  ;;  %v5392_v15 = vld [vmem:[#allocation22_spill] sm:$0xff]  ;;  %v2965_v44 = vpop.f32.mrf.mxu2 }
 0x3e2   : > { %3019 = vst [vmem:[%s5196_s23 + $0x40] sm:$0xff] %v3003_v40  ;;  %v3034_v22 = vadd.f32 %v3033_v61, %v3003_v40  ;;  %v3057_v20 = vmul.f32 %v3003_v40, %v3003_v40  ;;  %v2722_v29 = vadd.f32 %v2695_v45, %v2591_v39  ;;  %v2201_v45 = vadd.f32 %v5386_v60, %v2058_v10  ;;  %v5393_v39 = vld [vmem:[#allocation8_spill] sm:$0xff]  ;;  %v5400_v10 = vld [vmem:[#allocation38_spill] sm:$0xff] }
 0x3e4   : > { %v3072_v17 = vadd.f32 %v3071_v5, %v3057_v20  ;;  %v2853_v41 = vadd.f32 %v2826_v42, %v2722_v29  ;;  %v2332_v35 = vadd.f32 %v5388_v52, %v2201_v45  ;;  %v2834_v5 = vpop.f32.mrf.mxu1  ;;  %v5402_v45 = vld [vmem:[#allocation30_spill] sm:$0xff] }
 0x3e6   : > { %v2984_v58 = vadd.f32 %v2957_v24, %v2853_v41  ;;  %v2463_v0 = vadd.f32 %v5392_v15, %v2332_v35 }
 0x3e7   : > { %v2567_v13 = vpop.f32.mrf.mxu3 }
 0x3e8   : > { %v3004_v7 = vadd.f32 %v5187_v25, %v2984_v58  ;;  %v2592_v53 = vadd.f32 %v2567_v13, %v2461_v14 }
 0x3ea   : > { %3020 = vst [vmem:[%s5196_s23 + $0x48] sm:$0xff] %v3004_v7  ;;  %v3035_v12 = vadd.f32 %v3034_v22, %v3004_v7  ;;  %v3058_v19 = vmul.f32 %v3004_v7, %v3004_v7  ;;  %v2723_v56 = vadd.f32 %v2698_v18, %v2592_v53  ;;  %v2333_v22 = vadd.f32 %v5395_v11, %v2202_v2  ;;  %v2967_v53 = vpop.f32.mrf.mxu2 }
 0x3ec   : > { %v3073_v48 = vadd.f32 %v3072_v17, %v3058_v19  ;;  %v2854_v43 = vadd.f32 %v2829_v6, %v2723_v56  ;;  %v5394_v6 = vld [vmem:[#allocation37_spill] sm:$0xff]  ;;  %v5396_v17 = vld [vmem:[#allocation27_spill] sm:$0xff]  ;;  %v2464_v58 = vadd.f32 %v5397_v37, %v2333_v22  ;;  %v2836_v31 = vpop.f32.mrf.mxu1 }
 0x3ed   : > { %v2063_v23 = vadd.f32 %v5394_v6, %v5393_v39 }
 0x3ee   : > { %v2985_v21 = vadd.f32 %v2960_v38, %v2854_v43  ;;  %v2705_v38 = vpop.f32.mrf.mxu0 }
 0x3ef   : > { %v2569_v63 = vpop.f32.mrf.mxu3  ;;  %v2203_v41 = vadd.f32 %v5396_v17, %v2063_v23 }
 0x3f0   : > { %v3005_v42 = vadd.f32 %v5187_v25, %v2985_v21  ;;  %v2593_v28 = vadd.f32 %v2569_v63, %v2462_v54 }
 0x3f2   : > { %3021 = vst [vmem:[%s5196_s23 + $0x50] sm:$0xff] %v3005_v42  ;;  %v3036_v24 = vadd.f32 %v3035_v12, %v3005_v42  ;;  %v3059_v61 = vmul.f32 %v3005_v42, %v3005_v42  ;;  %v2724_v3 = vadd.f32 %v2700_v30, %v2593_v28  ;;  %v5398_v30 = vld [vmem:[#allocation29_spill] sm:$0xff]  ;;  %v2065_v12 = vadd.f32 %v5400_v10, %v5399_v8  ;;  %v2970_v27 = vpop.f32.mrf.mxu2 }
 0x3f3   : > { %v2334_v47 = vadd.f32 %v5398_v30, %v2203_v41 }
 0x3f4   : > { %v3074_v49 = vadd.f32 %v3073_v48, %v3059_v61  ;;  %v2855_v57 = vadd.f32 %v2831_v55, %v2724_v3  ;;  %v5401_v48 = vld [vmem:[#allocation32_spill] sm:$0xff]  ;;  %v2839_v42 = vpop.f32.mrf.mxu1 }
 0x3f5   : > { %v2204_v43 = vadd.f32 %v5401_v48, %v2065_v12 }
 0x3f6   : > { %v2986_v36 = vadd.f32 %v2962_v59, %v2855_v57  ;;  %v2465_v59 = vadd.f32 %v5402_v45, %v2334_v47  ;;  %v2708_v21 = vpop.f32.mrf.mxu0 }
 0x3f7   : > { %v2572_v18 = vpop.f32.mrf.mxu3  ;;  %v2335_v50 = vadd.f32 %v5403_v4, %v2204_v43 }
 0x3f8   : > { %v3006_v32 = vadd.f32 %v5187_v25, %v2986_v36  ;;  %v2594_v40 = vadd.f32 %v2572_v18, %v2463_v0 }
 0x3fa   : > { %3022 = vst [vmem:[%s5196_s23 + $0x58] sm:$0xff] %v3006_v32  ;;  %v3037_v51 = vadd.f32 %v3036_v24, %v3006_v32  ;;  %v3060_v1 = vmul.f32 %v3006_v32, %v3006_v32  ;;  %v2725_v9 = vadd.f32 %v2703_v26, %v2594_v40  ;;  %v5404_v26 = vld [vmem:[#allocation34_spill] sm:$0xff]  ;;  %v2972_v40 = vpop.f32.mrf.mxu2 }
 0x3fc   : > { %v3075_v20 = vadd.f32 %v3074_v49, %v3060_v1  ;;  %v2856_v29 = vadd.f32 %v2834_v5, %v2725_v9  ;;  %v2466_v49 = vadd.f32 %v5404_v26, %v2335_v50 }
 0x3fe   : > { %v2987_v16 = vadd.f32 %v2965_v44, %v2856_v29  ;;  %v2710_v2 = vpop.f32.mrf.mxu0  ;;  %v2841_v44 = vpop.f32.mrf.mxu1 }
 0x3ff   : > { %v2574_v14 = vpop.f32.mrf.mxu3 }
 0x400   : > { %v3007_v13 = vadd.f32 %v5187_v25, %v2987_v16  ;;  %v2595_v7 = vadd.f32 %v2574_v14, %v2464_v58 }
 0x402   : > { %3023 = vst [vmem:[%s5196_s23 + $0x60] sm:$0xff] %v3007_v13  ;;  %v3038_v19 = vadd.f32 %v3037_v51, %v3007_v13  ;;  %v3061_v56 = vmul.f32 %v3007_v13, %v3007_v13  ;;  %v2726_v33 = vadd.f32 %v2705_v38, %v2595_v7 }
 0x404   : > { %v3076_v34 = vadd.f32 %v3075_v20, %v3061_v56  ;;  %v2857_v55 = vadd.f32 %v2836_v31, %v2726_v33 }
 0x406   : > { %v2988_v60 = vadd.f32 %v2967_v53, %v2857_v55 }
 0x407   : > { %v2577_v62 = vpop.f32.mrf.mxu3 }
 0x408   : > { %v3008_v54 = vadd.f32 %v5187_v25, %v2988_v60  ;;  %v2596_v63 = vadd.f32 %v2577_v62, %v2465_v59 }
 0x40a   : > { %3024 = vst [vmem:[%s5196_s23 + $0x68] sm:$0xff] %v3008_v54  ;;  %v3039_v28 = vadd.f32 %v3038_v19, %v3008_v54  ;;  %v3062_v52 = vmul.f32 %v3008_v54, %v3008_v54  ;;  %v2727_v35 = vadd.f32 %v2708_v21, %v2596_v63 }
 0x40c   : > { %v3077_v24 = vadd.f32 %v3076_v34, %v3062_v52  ;;  %v2858_v61 = vadd.f32 %v2839_v42, %v2727_v35 }
 0x40e   : > { %v2989_v3 = vadd.f32 %v2970_v27, %v2858_v61 }
 0x40f   : > { %v2579_v57 = vpop.f32.mrf.mxu3 }
 0x410   : > { %v3009_v5 = vadd.f32 %v5187_v25, %v2989_v3  ;;  %v2597_v46 = vadd.f32 %v2579_v57, %v2466_v49 }
 0x412   : > { %3025 = vst [vmem:[%s5196_s23 + $0x70] sm:$0xff] %v3009_v5  ;;  %v3040_v36 = vadd.f32 %v3039_v28, %v3009_v5  ;;  %v3063_v15 = vmul.f32 %v3009_v5, %v3009_v5  ;;  %v2728_v0 = vadd.f32 %v2710_v2, %v2597_v46 }
 0x414   : > { %v3078_v18 = vadd.f32 %v3077_v24, %v3063_v15  ;;  %v2859_v32 = vadd.f32 %v2841_v44, %v2728_v0 }
 0x416   : > { %v2990_v39 = vadd.f32 %v2972_v40, %v2859_v32 }
 0x418   : > { %v3010_v6 = vadd.f32 %v5187_v25, %v2990_v39 }
 0x41a   : > { %3026 = vst [vmem:[%s5196_s23 + $0x78] sm:$0xff] %v3010_v6  ;;  %v3041_v23 = vadd.f32 %v3040_v36, %v3010_v6  ;;  %v3064_v51 = vmul.f32 %v3010_v6, %v3010_v6 }
 0x41c   : > { %v3042_v1 = vrot.slane %v3041_v23, 4  ;;  %v3079_v9 = vadd.f32 %v3078_v18, %v3064_v51 }
 0x41e   : > { %v3043_v11 = vadd.f32 %v3042_v1, %v3041_v23  ;;  %v3080_v22 = vrot.slane %v3079_v9, 4 }
 0x420   : > { %v3044_v20 = vrot.slane %v3043_v11, 2  ;;  %v3081_v29 = vadd.f32 %v3080_v22, %v3079_v9 }
 0x422   : > { %v3045_v38 = vadd.f32 %v3044_v20, %v3043_v11  ;;  %v3082_v17 = vrot.slane %v3081_v29, 2 }
 0x424   : > { %v3046_v41 = vrot.slane %v3045_v38, 1  ;;  %v3083_v16 = vadd.f32 %v3082_v17, %v3081_v29 }
 0x426   : > { %v3047_v37 = vadd.f32 %v3046_v41, %v3045_v38  ;;  %v3084_v25 = vrot.slane %v3083_v16, 1 }
 0x428   : > { %3048 = vst [vmem:[%s580_s28] sm:$0x1] %v3047_v37  ;;  %v3085_v58 = vadd.f32 %v3084_v25, %v3083_v16 }
 0x42a   : > { %3086 = vst [vmem:[%s587_s27] sm:$0x1] %v3085_v58 }
 0x42b PF: > { %s22_s21 = sadd.s32 1, %s4255_s21   ;;  %s5405_s14 = sld [smem:[#allocation3_spill]] }
 0x42c   : > { %p19_p13 = scmp.ge.s32.totalorder %s22_s21, 6   ;;  %s5406_s17 = smov %s4247_s19 }
 0x42d   : > { %s5407_s18 = smov %s4251_s20  ;;  %s5408_s19 = smov %s5411_s22 }
 0x42e   :  { %21 = sbr.rel (!%p19_p13) target bundleno = 3 (0x3), region = 129 }
 0x431   : > { %s5409_s20 = smov %s5405_s14 }

</bundles_post_ra>
